<compile_context>
chip_gen: v7x
topology: tpu7x:2x2x1
jax: 0.10.0
libtpu: 0.0.40
codegen_flags: <defaults>
</compile_context>

<pallas_src>
import jax
import jax.numpy as jnp
from jax.experimental import pallas as pl
from jax.experimental.pallas import tpu as pltpu


# ----------------------------------------------------------------------------
# Fused BiLSTM-CRF forward kernel.
# ----------------------------------------------------------------------------
def bilstm_crf_kernel(ids_ref, emb_ref,
                      wih_f_ref, whh_f_ref, b_f_ref,
                      wih_b_ref, whh_b_ref, b_b_ref,
                      wtag_f_ref, wtag_b_ref, btag_ref,
                      trans_ref, start_ref, end_ref,
                      h0_ref, c0_ref,
                      emis_ref, logz_ref):
    TB = ids_ref.shape[0]                 # T * B, time-major rows
    V = emb_ref.shape[0]
    B = h0_ref.shape[0]
    T = TB // B
    K = trans_ref.shape[0]

    # ---- embedding lookup as a one-hot matmul (MXU), no per-row dynamic gathers ----
    ids = ids_ref[...]                                            # (T*B, 1) int32
    iota = jax.lax.broadcasted_iota(jnp.int32, (TB, V), 1)        # (T*B, V)
    onehot = (ids == iota).astype(jnp.float32)                    # (T*B, V)
    x_all = jnp.dot(onehot, emb_ref[...],
                    preferred_element_type=jnp.float32)           # (T*B, E) time-major

    # ---- hoisted, loop-invariant loads (per-gate leading-axis layout) ----
    whh_f = [whh_f_ref[k] for k in range(4)]                      # four (H, H)
    whh_b = [whh_b_ref[k] for k in range(4)]
    h0 = h0_ref[...]
    c0 = c0_ref[...]

    # ---- input-to-hidden projections for ALL timesteps, one matmul per gate ----
    ig_f = [jnp.dot(x_all, wih_f_ref[k], preferred_element_type=jnp.float32)
            + b_f_ref[k] for k in range(4)]                       # each (T*B, H)
    ig_b = [jnp.dot(x_all, wih_b_ref[k], preferred_element_type=jnp.float32)
            + b_b_ref[k] for k in range(4)]

    def run_direction(ig, whh, reverse):
        h, c = h0, c0
        hs = [None] * T
        order = range(T - 1, -1, -1) if reverse else range(T)
        for t in order:                                           # fully unrolled
            r0 = t * B
            pre = [ig[k][r0:r0 + B, :]
                   + jnp.dot(h, whh[k], preferred_element_type=jnp.float32)
                   for k in range(4)]
            i_g = jax.nn.sigmoid(pre[0])
            f_g = jax.nn.sigmoid(pre[1])
            g_g = jnp.tanh(pre[2])
            o_g = jax.nn.sigmoid(pre[3])
            c = f_g * c + i_g * g_g
            h = o_g * jnp.tanh(c)
            hs[t] = h
        return hs

    hs_f = run_direction(ig_f, whh_f, reverse=False)
    hs_b = run_direction(ig_b, whh_b, reverse=True)

    hf = jnp.concatenate(hs_f, axis=0)                            # (T*B, H), register-resident
    hb = jnp.concatenate(hs_b, axis=0)                            # (T*B, H)

    # ---- emission projection: one matmul per direction (h-concat folded away) ----
    emis = (jnp.dot(hf, wtag_f_ref[...], preferred_element_type=jnp.float32)
            + jnp.dot(hb, wtag_b_ref[...], preferred_element_type=jnp.float32)
            + btag_ref[...])                                      # (T*B, K)

    emis_ref[...] = emis                                          # single full-ref store

    # ---- CRF forward algorithm (vectorized logsumexp over previous tag) ----
    trans = trans_ref[...]                                        # (K, K), hoisted
    alpha = emis[0:B, :] + start_ref[...]                         # (B, K)
    for t in range(1, T):                                         # fully unrolled
        s = alpha[:, :, None] + trans[None, :, :]                 # (B, K, K): i -> j
        m = jnp.max(s, axis=1)                                    # (B, K)
        alpha = (m + jnp.log(jnp.sum(jnp.exp(s - m[:, None, :]), axis=1))
                 + emis[t * B:(t + 1) * B, :])
    final = alpha + end_ref[...]                                  # (B, K)
    mf = jnp.max(final, axis=-1, keepdims=True)
    logz_ref[...] = mf + jnp.log(jnp.sum(jnp.exp(final - mf), axis=-1,
                                         keepdims=True))


def bilstm_crf_forward(token_ids, params):
    B, T = token_ids.shape
    K = params["transitions"].shape[0]
    # time-major (t*B + b) flat id vector for the in-kernel one-hot gather
    ids_tm = token_ids.astype(jnp.int32).T.reshape(T * B, 1)
    emis, logz = pl.pallas_call(
        bilstm_crf_kernel,
        out_shape=(jax.ShapeDtypeStruct((T * B, K), jnp.float32),
                   jax.ShapeDtypeStruct((B, 1), jnp.float32)),
        in_specs=[pl.BlockSpec(memory_space=pltpu.MemorySpace.VMEM)] * 16,
        out_specs=(pl.BlockSpec(memory_space=pltpu.MemorySpace.VMEM),
                   pl.BlockSpec(memory_space=pltpu.MemorySpace.VMEM)),
    )(ids_tm, params["embedding"],
      params["wih_f"], params["whh_f"], params["b_f"],
      params["wih_b"], params["whh_b"], params["b_b"],
      params["w_tag_f"], params["w_tag_b"], params["b_tag"],
      params["transitions"], params["start_trans"], params["end_trans"],
      params["h0"], params["c0"])
    return emis.reshape(T, B, K), logz[:, 0]


# ----------------------------------------------------------------------------
# Pure-JAX reference (same math) for a correctness self-check.
# ----------------------------------------------------------------------------
def reference_forward(token_ids, params):
    x = jnp.take(params["embedding"], token_ids, axis=0)          # (B, T, E)
    x = jnp.transpose(x, (1, 0, 2)).astype(jnp.float32)           # (T, B, E)
    T = x.shape[0]

    def lstm(wih, whh, b, reverse):
        h, c = params["h0"], params["c0"]
        hs = [None] * T
        order = range(T - 1, -1, -1) if reverse else range(T)
        for t in order:
            pre = [x[t] @ wih[k] + h @ whh[k] + b[k] for k in range(4)]
            i = jax.nn.sigmoid(pre[0])
            f = jax.nn.sigmoid(pre[1])
            g = jnp.tanh(pre[2])
            o = jax.nn.sigmoid(pre[3])
            c = f * c + i * g
            h = o * jnp.tanh(c)
            hs[t] = h
        return jnp.stack(hs, axis=0)                              # (T, B, H)

    hf = lstm(params["wih_f"], params["whh_f"], params["b_f"], False)
    hb = lstm(params["wih_b"], params["whh_b"], params["b_b"], True)
    emis = hf @ params["w_tag_f"] + hb @ params["w_tag_b"] + params["b_tag"]

    alpha = emis[0] + params["start_trans"]
    for t in range(1, T):
        s = alpha[:, :, None] + params["transitions"][None, :, :]
        alpha = jax.scipy.special.logsumexp(s, axis=1) + emis[t]
    final = alpha + params["end_trans"]
    return emis, jax.scipy.special.logsumexp(final, axis=-1)


# ----------------------------------------------------------------------------
# Parameters (per-gate weight layout: leading axis of size 4 = i, f, g, o).
# ----------------------------------------------------------------------------
def make_params(key, vocab=20, embed=32, hidden=16, tags=8, batch=2):
    ks = jax.random.split(key, 13)
    n = lambda k, shape: (0.1 * jax.random.normal(k, shape)).astype(jnp.float32)
    return {
        "embedding": n(ks[0], (vocab, embed)),
        # forward-direction LSTM (per-gate blocks)
        "wih_f": n(ks[1], (4, embed, hidden)),
        "whh_f": n(ks[2], (4, hidden, hidden)),
        "b_f": n(ks[3], (4, 1, hidden)),
        # backward-direction LSTM
        "wih_b": n(ks[4], (4, embed, hidden)),
        "whh_b": n(ks[5], (4, hidden, hidden)),
        "b_b": n(ks[6], (4, 1, hidden)),
        # hidden2tag, split into fwd / bwd halves (replaces the h concat)
        "w_tag_f": n(ks[7], (hidden, tags)),
        "w_tag_b": n(ks[8], (hidden, tags)),
        "b_tag": n(ks[9], (1, tags)),
        # CRF parameters
        "transitions": n(ks[10], (tags, tags)),
        "start_trans": n(ks[11], (1, tags)),
        "end_trans": n(ks[12], (1, tags)),
        # initial LSTM state
        "h0": jnp.zeros((batch, hidden), jnp.float32),
        "c0": jnp.zeros((batch, hidden), jnp.float32),
    }


if __name__ == "__main__":
    key = jax.random.PRNGKey(0)
    B, T, VOCAB, EMBED, HIDDEN, TAGS = 2, 8, 20, 32, 16, 8
    params = make_params(key, vocab=VOCAB, embed=EMBED, hidden=HIDDEN,
                         tags=TAGS, batch=B)
    token_ids = jax.random.randint(jax.random.fold_in(key, 1), (B, T), 0, VOCAB,
                                   dtype=jnp.int32)

    emissions, log_z = jax.jit(bilstm_crf_forward)(token_ids, params)
    jax.block_until_ready((emissions, log_z))

    ref_emis, ref_logz = reference_forward(token_ids, params)

    assert emissions.shape == (T, B, TAGS) and log_z.shape == (B,)
    assert bool(jnp.all(jnp.isfinite(emissions))) and bool(jnp.all(jnp.isfinite(log_z)))
    assert jnp.allclose(emissions, ref_emis, atol=2e-3, rtol=2e-3)
    assert jnp.allclose(log_z, ref_logz, atol=2e-3, rtol=2e-3)
    print("KERNEL_OK")
</pallas_src>

<mosaic_0001>
module attributes {stable_mosaic.version = 11 : i64} {
  func.func @bilstm_crf_kernel(%arg0: memref<16x1xi32, #tpu.memory_space<vmem>>, %arg1: memref<20x32xf32, #tpu.memory_space<vmem>>, %arg2: memref<4x32x16xf32, #tpu.memory_space<vmem>>, %arg3: memref<4x16x16xf32, #tpu.memory_space<vmem>>, %arg4: memref<4x1x16xf32, #tpu.memory_space<vmem>>, %arg5: memref<4x32x16xf32, #tpu.memory_space<vmem>>, %arg6: memref<4x16x16xf32, #tpu.memory_space<vmem>>, %arg7: memref<4x1x16xf32, #tpu.memory_space<vmem>>, %arg8: memref<16x8xf32, #tpu.memory_space<vmem>>, %arg9: memref<16x8xf32, #tpu.memory_space<vmem>>, %arg10: memref<1x8xf32, #tpu.memory_space<vmem>>, %arg11: memref<8x8xf32, #tpu.memory_space<vmem>>, %arg12: memref<1x8xf32, #tpu.memory_space<vmem>>, %arg13: memref<1x8xf32, #tpu.memory_space<vmem>>, %arg14: memref<2x16xf32, #tpu.memory_space<vmem>>, %arg15: memref<2x16xf32, #tpu.memory_space<vmem>>, %arg16: memref<16x8xf32, #tpu.memory_space<vmem>>, %arg17: memref<2x1xf32, #tpu.memory_space<vmem>>) attributes {dimension_semantics = [], scalar_prefetch = 0 : i64, scratch_operands = 0 : i64, tpu.core_type = #tpu.core_type<tc>} {
    %c0 = arith.constant 0 : index
    %c0_0 = arith.constant 0 : index
    %0 = vector.load %arg0[%c0, %c0_0] : memref<16x1xi32, #tpu.memory_space<vmem>>, vector<16x1xi32>
    %1 = tpu.iota {dimensions = array<i32: 1>} : vector<16x20xi32>
    %2 = vector.broadcast %0 : vector<16x1xi32> to vector<16x20xi32>
    %3 = arith.cmpi eq, %2, %1 : vector<16x20xi32>
    %4 = arith.extui %3 : vector<16x20xi1> to vector<16x20xi32>
    %5 = arith.sitofp %4 : vector<16x20xi32> to vector<16x20xf32>
    %c0_1 = arith.constant 0 : index
    %c0_2 = arith.constant 0 : index
    %6 = vector.load %arg1[%c0_1, %c0_2] : memref<20x32xf32, #tpu.memory_space<vmem>>, vector<20x32xf32>
    %cst = arith.constant dense<0.000000e+00> : vector<16x32xf32>
    %7 = tpu.matmul %5, %6, %cst {dimension_numbers = #tpu.dot_dimension_numbers<[1], [0], [0], [1], [0, 0, 1, 1], [], []>} : vector<16x20xf32>, vector<20x32xf32>, vector<16x32xf32> -> vector<16x32xf32>
    %c0_3 = arith.constant 0 : index
    %c0_4 = arith.constant 0 : index
    %c0_5 = arith.constant 0 : index
    %8 = vector.load %arg3[%c0_3, %c0_4, %c0_5] : memref<4x16x16xf32, #tpu.memory_space<vmem>>, vector<1x16x16xf32>
    %9 = vector.shape_cast %8 : vector<1x16x16xf32> to vector<16x16xf32>
    %c1 = arith.constant 1 : index
    %c0_6 = arith.constant 0 : index
    %c0_7 = arith.constant 0 : index
    %10 = vector.load %arg3[%c1, %c0_6, %c0_7] : memref<4x16x16xf32, #tpu.memory_space<vmem>>, vector<1x16x16xf32>
    %11 = vector.shape_cast %10 : vector<1x16x16xf32> to vector<16x16xf32>
    %c2 = arith.constant 2 : index
    %c0_8 = arith.constant 0 : index
    %c0_9 = arith.constant 0 : index
    %12 = vector.load %arg3[%c2, %c0_8, %c0_9] : memref<4x16x16xf32, #tpu.memory_space<vmem>>, vector<1x16x16xf32>
    %13 = vector.shape_cast %12 : vector<1x16x16xf32> to vector<16x16xf32>
    %c3 = arith.constant 3 : index
    %c0_10 = arith.constant 0 : index
    %c0_11 = arith.constant 0 : index
    %14 = vector.load %arg3[%c3, %c0_10, %c0_11] : memref<4x16x16xf32, #tpu.memory_space<vmem>>, vector<1x16x16xf32>
    %15 = vector.shape_cast %14 : vector<1x16x16xf32> to vector<16x16xf32>
    %c0_12 = arith.constant 0 : index
    %c0_13 = arith.constant 0 : index
    %c0_14 = arith.constant 0 : index
    %16 = vector.load %arg6[%c0_12, %c0_13, %c0_14] : memref<4x16x16xf32, #tpu.memory_space<vmem>>, vector<1x16x16xf32>
    %17 = vector.shape_cast %16 : vector<1x16x16xf32> to vector<16x16xf32>
    %c1_15 = arith.constant 1 : index
    %c0_16 = arith.constant 0 : index
    %c0_17 = arith.constant 0 : index
    %18 = vector.load %arg6[%c1_15, %c0_16, %c0_17] : memref<4x16x16xf32, #tpu.memory_space<vmem>>, vector<1x16x16xf32>
    %19 = vector.shape_cast %18 : vector<1x16x16xf32> to vector<16x16xf32>
    %c2_18 = arith.constant 2 : index
    %c0_19 = arith.constant 0 : index
    %c0_20 = arith.constant 0 : index
    %20 = vector.load %arg6[%c2_18, %c0_19, %c0_20] : memref<4x16x16xf32, #tpu.memory_space<vmem>>, vector<1x16x16xf32>
    %21 = vector.shape_cast %20 : vector<1x16x16xf32> to vector<16x16xf32>
    %c3_21 = arith.constant 3 : index
    %c0_22 = arith.constant 0 : index
    %c0_23 = arith.constant 0 : index
    %22 = vector.load %arg6[%c3_21, %c0_22, %c0_23] : memref<4x16x16xf32, #tpu.memory_space<vmem>>, vector<1x16x16xf32>
    %23 = vector.shape_cast %22 : vector<1x16x16xf32> to vector<16x16xf32>
    %c0_24 = arith.constant 0 : index
    %c0_25 = arith.constant 0 : index
    %24 = vector.load %arg14[%c0_24, %c0_25] : memref<2x16xf32, #tpu.memory_space<vmem>>, vector<2x16xf32>
    %c0_26 = arith.constant 0 : index
    %c0_27 = arith.constant 0 : index
    %25 = vector.load %arg15[%c0_26, %c0_27] : memref<2x16xf32, #tpu.memory_space<vmem>>, vector<2x16xf32>
    %c0_28 = arith.constant 0 : index
    %c0_29 = arith.constant 0 : index
    %c0_30 = arith.constant 0 : index
    %26 = vector.load %arg2[%c0_28, %c0_29, %c0_30] : memref<4x32x16xf32, #tpu.memory_space<vmem>>, vector<1x32x16xf32>
    %27 = vector.shape_cast %26 : vector<1x32x16xf32> to vector<32x16xf32>
    %cst_31 = arith.constant dense<0.000000e+00> : vector<16x16xf32>
    %28 = tpu.matmul %7, %27, %cst_31 {dimension_numbers = #tpu.dot_dimension_numbers<[1], [0], [0], [1], [0, 0, 1, 1], [], []>} : vector<16x32xf32>, vector<32x16xf32>, vector<16x16xf32> -> vector<16x16xf32>
    %c0_32 = arith.constant 0 : index
    %c0_33 = arith.constant 0 : index
    %c0_34 = arith.constant 0 : index
    %29 = vector.load %arg4[%c0_32, %c0_33, %c0_34] : memref<4x1x16xf32, #tpu.memory_space<vmem>>, vector<1x1x16xf32>
    %30 = vector.shape_cast %29 : vector<1x1x16xf32> to vector<1x16xf32>
    %31 = vector.broadcast %30 : vector<1x16xf32> to vector<16x16xf32>
    %32 = arith.addf %28, %31 : vector<16x16xf32>
    %c1_35 = arith.constant 1 : index
    %c0_36 = arith.constant 0 : index
    %c0_37 = arith.constant 0 : index
    %33 = vector.load %arg2[%c1_35, %c0_36, %c0_37] : memref<4x32x16xf32, #tpu.memory_space<vmem>>, vector<1x32x16xf32>
    %34 = vector.shape_cast %33 : vector<1x32x16xf32> to vector<32x16xf32>
    %cst_38 = arith.constant dense<0.000000e+00> : vector<16x16xf32>
    %35 = tpu.matmul %7, %34, %cst_38 {dimension_numbers = #tpu.dot_dimension_numbers<[1], [0], [0], [1], [0, 0, 1, 1], [], []>} : vector<16x32xf32>, vector<32x16xf32>, vector<16x16xf32> -> vector<16x16xf32>
    %c1_39 = arith.constant 1 : index
    %c0_40 = arith.constant 0 : index
    %c0_41 = arith.constant 0 : index
    %36 = vector.load %arg4[%c1_39, %c0_40, %c0_41] : memref<4x1x16xf32, #tpu.memory_space<vmem>>, vector<1x1x16xf32>
    %37 = vector.shape_cast %36 : vector<1x1x16xf32> to vector<1x16xf32>
    %38 = vector.broadcast %37 : vector<1x16xf32> to vector<16x16xf32>
    %39 = arith.addf %35, %38 : vector<16x16xf32>
    %c2_42 = arith.constant 2 : index
    %c0_43 = arith.constant 0 : index
    %c0_44 = arith.constant 0 : index
    %40 = vector.load %arg2[%c2_42, %c0_43, %c0_44] : memref<4x32x16xf32, #tpu.memory_space<vmem>>, vector<1x32x16xf32>
    %41 = vector.shape_cast %40 : vector<1x32x16xf32> to vector<32x16xf32>
    %cst_45 = arith.constant dense<0.000000e+00> : vector<16x16xf32>
    %42 = tpu.matmul %7, %41, %cst_45 {dimension_numbers = #tpu.dot_dimension_numbers<[1], [0], [0], [1], [0, 0, 1, 1], [], []>} : vector<16x32xf32>, vector<32x16xf32>, vector<16x16xf32> -> vector<16x16xf32>
    %c2_46 = arith.constant 2 : index
    %c0_47 = arith.constant 0 : index
    %c0_48 = arith.constant 0 : index
    %43 = vector.load %arg4[%c2_46, %c0_47, %c0_48] : memref<4x1x16xf32, #tpu.memory_space<vmem>>, vector<1x1x16xf32>
    %44 = vector.shape_cast %43 : vector<1x1x16xf32> to vector<1x16xf32>
    %45 = vector.broadcast %44 : vector<1x16xf32> to vector<16x16xf32>
    %46 = arith.addf %42, %45 : vector<16x16xf32>
    %c3_49 = arith.constant 3 : index
    %c0_50 = arith.constant 0 : index
    %c0_51 = arith.constant 0 : index
    %47 = vector.load %arg2[%c3_49, %c0_50, %c0_51] : memref<4x32x16xf32, #tpu.memory_space<vmem>>, vector<1x32x16xf32>
    %48 = vector.shape_cast %47 : vector<1x32x16xf32> to vector<32x16xf32>
    %cst_52 = arith.constant dense<0.000000e+00> : vector<16x16xf32>
    %49 = tpu.matmul %7, %48, %cst_52 {dimension_numbers = #tpu.dot_dimension_numbers<[1], [0], [0], [1], [0, 0, 1, 1], [], []>} : vector<16x32xf32>, vector<32x16xf32>, vector<16x16xf32> -> vector<16x16xf32>
    %c3_53 = arith.constant 3 : index
    %c0_54 = arith.constant 0 : index
    %c0_55 = arith.constant 0 : index
    %50 = vector.load %arg4[%c3_53, %c0_54, %c0_55] : memref<4x1x16xf32, #tpu.memory_space<vmem>>, vector<1x1x16xf32>
    %51 = vector.shape_cast %50 : vector<1x1x16xf32> to vector<1x16xf32>
    %52 = vector.broadcast %51 : vector<1x16xf32> to vector<16x16xf32>
    %53 = arith.addf %49, %52 : vector<16x16xf32>
    %c0_56 = arith.constant 0 : index
    %c0_57 = arith.constant 0 : index
    %c0_58 = arith.constant 0 : index
    %54 = vector.load %arg5[%c0_56, %c0_57, %c0_58] : memref<4x32x16xf32, #tpu.memory_space<vmem>>, vector<1x32x16xf32>
    %55 = vector.shape_cast %54 : vector<1x32x16xf32> to vector<32x16xf32>
    %cst_59 = arith.constant dense<0.000000e+00> : vector<16x16xf32>
    %56 = tpu.matmul %7, %55, %cst_59 {dimension_numbers = #tpu.dot_dimension_numbers<[1], [0], [0], [1], [0, 0, 1, 1], [], []>} : vector<16x32xf32>, vector<32x16xf32>, vector<16x16xf32> -> vector<16x16xf32>
    %c0_60 = arith.constant 0 : index
    %c0_61 = arith.constant 0 : index
    %c0_62 = arith.constant 0 : index
    %57 = vector.load %arg7[%c0_60, %c0_61, %c0_62] : memref<4x1x16xf32, #tpu.memory_space<vmem>>, vector<1x1x16xf32>
    %58 = vector.shape_cast %57 : vector<1x1x16xf32> to vector<1x16xf32>
    %59 = vector.broadcast %58 : vector<1x16xf32> to vector<16x16xf32>
    %60 = arith.addf %56, %59 : vector<16x16xf32>
    %c1_63 = arith.constant 1 : index
    %c0_64 = arith.constant 0 : index
    %c0_65 = arith.constant 0 : index
    %61 = vector.load %arg5[%c1_63, %c0_64, %c0_65] : memref<4x32x16xf32, #tpu.memory_space<vmem>>, vector<1x32x16xf32>
    %62 = vector.shape_cast %61 : vector<1x32x16xf32> to vector<32x16xf32>
    %cst_66 = arith.constant dense<0.000000e+00> : vector<16x16xf32>
    %63 = tpu.matmul %7, %62, %cst_66 {dimension_numbers = #tpu.dot_dimension_numbers<[1], [0], [0], [1], [0, 0, 1, 1], [], []>} : vector<16x32xf32>, vector<32x16xf32>, vector<16x16xf32> -> vector<16x16xf32>
    %c1_67 = arith.constant 1 : index
    %c0_68 = arith.constant 0 : index
    %c0_69 = arith.constant 0 : index
    %64 = vector.load %arg7[%c1_67, %c0_68, %c0_69] : memref<4x1x16xf32, #tpu.memory_space<vmem>>, vector<1x1x16xf32>
    %65 = vector.shape_cast %64 : vector<1x1x16xf32> to vector<1x16xf32>
    %66 = vector.broadcast %65 : vector<1x16xf32> to vector<16x16xf32>
    %67 = arith.addf %63, %66 : vector<16x16xf32>
    %c2_70 = arith.constant 2 : index
    %c0_71 = arith.constant 0 : index
    %c0_72 = arith.constant 0 : index
    %68 = vector.load %arg5[%c2_70, %c0_71, %c0_72] : memref<4x32x16xf32, #tpu.memory_space<vmem>>, vector<1x32x16xf32>
    %69 = vector.shape_cast %68 : vector<1x32x16xf32> to vector<32x16xf32>
    %cst_73 = arith.constant dense<0.000000e+00> : vector<16x16xf32>
    %70 = tpu.matmul %7, %69, %cst_73 {dimension_numbers = #tpu.dot_dimension_numbers<[1], [0], [0], [1], [0, 0, 1, 1], [], []>} : vector<16x32xf32>, vector<32x16xf32>, vector<16x16xf32> -> vector<16x16xf32>
    %c2_74 = arith.constant 2 : index
    %c0_75 = arith.constant 0 : index
    %c0_76 = arith.constant 0 : index
    %71 = vector.load %arg7[%c2_74, %c0_75, %c0_76] : memref<4x1x16xf32, #tpu.memory_space<vmem>>, vector<1x1x16xf32>
    %72 = vector.shape_cast %71 : vector<1x1x16xf32> to vector<1x16xf32>
    %73 = vector.broadcast %72 : vector<1x16xf32> to vector<16x16xf32>
    %74 = arith.addf %70, %73 : vector<16x16xf32>
    %c3_77 = arith.constant 3 : index
    %c0_78 = arith.constant 0 : index
    %c0_79 = arith.constant 0 : index
    %75 = vector.load %arg5[%c3_77, %c0_78, %c0_79] : memref<4x32x16xf32, #tpu.memory_space<vmem>>, vector<1x32x16xf32>
    %76 = vector.shape_cast %75 : vector<1x32x16xf32> to vector<32x16xf32>
    %cst_80 = arith.constant dense<0.000000e+00> : vector<16x16xf32>
    %77 = tpu.matmul %7, %76, %cst_80 {dimension_numbers = #tpu.dot_dimension_numbers<[1], [0], [0], [1], [0, 0, 1, 1], [], []>} : vector<16x32xf32>, vector<32x16xf32>, vector<16x16xf32> -> vector<16x16xf32>
    %c3_81 = arith.constant 3 : index
    %c0_82 = arith.constant 0 : index
    %c0_83 = arith.constant 0 : index
    %78 = vector.load %arg7[%c3_81, %c0_82, %c0_83] : memref<4x1x16xf32, #tpu.memory_space<vmem>>, vector<1x1x16xf32>
    %79 = vector.shape_cast %78 : vector<1x1x16xf32> to vector<1x16xf32>
    %80 = vector.broadcast %79 : vector<1x16xf32> to vector<16x16xf32>
    %81 = arith.addf %77, %80 : vector<16x16xf32>
    %82 = vector.extract_strided_slice %32 {offsets = [0, 0], sizes = [2, 16], strides = [1, 1]} : vector<16x16xf32> to vector<2x16xf32>
    %cst_84 = arith.constant dense<0.000000e+00> : vector<2x16xf32>
    %83 = tpu.matmul %24, %9, %cst_84 {dimension_numbers = #tpu.dot_dimension_numbers<[1], [0], [0], [1], [0, 0, 1, 1], [], []>} : vector<2x16xf32>, vector<16x16xf32>, vector<2x16xf32> -> vector<2x16xf32>
    %84 = arith.addf %82, %83 : vector<2x16xf32>
    %85 = vector.extract_strided_slice %39 {offsets = [0, 0], sizes = [2, 16], strides = [1, 1]} : vector<16x16xf32> to vector<2x16xf32>
    %cst_85 = arith.constant dense<0.000000e+00> : vector<2x16xf32>
    %86 = tpu.matmul %24, %11, %cst_85 {dimension_numbers = #tpu.dot_dimension_numbers<[1], [0], [0], [1], [0, 0, 1, 1], [], []>} : vector<2x16xf32>, vector<16x16xf32>, vector<2x16xf32> -> vector<2x16xf32>
    %87 = arith.addf %85, %86 : vector<2x16xf32>
    %88 = vector.extract_strided_slice %46 {offsets = [0, 0], sizes = [2, 16], strides = [1, 1]} : vector<16x16xf32> to vector<2x16xf32>
    %cst_86 = arith.constant dense<0.000000e+00> : vector<2x16xf32>
    %89 = tpu.matmul %24, %13, %cst_86 {dimension_numbers = #tpu.dot_dimension_numbers<[1], [0], [0], [1], [0, 0, 1, 1], [], []>} : vector<2x16xf32>, vector<16x16xf32>, vector<2x16xf32> -> vector<2x16xf32>
    %90 = arith.addf %88, %89 : vector<2x16xf32>
    %91 = vector.extract_strided_slice %53 {offsets = [0, 0], sizes = [2, 16], strides = [1, 1]} : vector<16x16xf32> to vector<2x16xf32>
    %cst_87 = arith.constant dense<0.000000e+00> : vector<2x16xf32>
    %92 = tpu.matmul %24, %15, %cst_87 {dimension_numbers = #tpu.dot_dimension_numbers<[1], [0], [0], [1], [0, 0, 1, 1], [], []>} : vector<2x16xf32>, vector<16x16xf32>, vector<2x16xf32> -> vector<2x16xf32>
    %93 = arith.addf %91, %92 : vector<2x16xf32>
    %94 = arith.negf %84 : vector<2x16xf32>
    %95 = math.exp %94 : vector<2x16xf32>
    %cst_88 = arith.constant 1.000000e+00 : f32
    %96 = vector.broadcast %cst_88 : f32 to vector<2x16xf32>
    %97 = arith.addf %96, %95 : vector<2x16xf32>
    %98 = arith.divf %96, %97 : vector<2x16xf32>
    %99 = arith.negf %87 : vector<2x16xf32>
    %100 = math.exp %99 : vector<2x16xf32>
    %cst_89 = arith.constant 1.000000e+00 : f32
    %101 = vector.broadcast %cst_89 : f32 to vector<2x16xf32>
    %102 = arith.addf %101, %100 : vector<2x16xf32>
    %103 = arith.divf %101, %102 : vector<2x16xf32>
    %104 = math.tanh %90 : vector<2x16xf32>
    %105 = arith.negf %93 : vector<2x16xf32>
    %106 = math.exp %105 : vector<2x16xf32>
    %cst_90 = arith.constant 1.000000e+00 : f32
    %107 = vector.broadcast %cst_90 : f32 to vector<2x16xf32>
    %108 = arith.addf %107, %106 : vector<2x16xf32>
    %109 = arith.divf %107, %108 : vector<2x16xf32>
    %110 = arith.mulf %103, %25 : vector<2x16xf32>
    %111 = arith.mulf %98, %104 : vector<2x16xf32>
    %112 = arith.addf %110, %111 : vector<2x16xf32>
    %113 = math.tanh %112 : vector<2x16xf32>
    %114 = arith.mulf %109, %113 : vector<2x16xf32>
    %115 = vector.extract_strided_slice %32 {offsets = [2, 0], sizes = [2, 16], strides = [1, 1]} : vector<16x16xf32> to vector<2x16xf32>
    %cst_91 = arith.constant dense<0.000000e+00> : vector<2x16xf32>
    %116 = tpu.matmul %114, %9, %cst_91 {dimension_numbers = #tpu.dot_dimension_numbers<[1], [0], [0], [1], [0, 0, 1, 1], [], []>} : vector<2x16xf32>, vector<16x16xf32>, vector<2x16xf32> -> vector<2x16xf32>
    %117 = arith.addf %115, %116 : vector<2x16xf32>
    %118 = vector.extract_strided_slice %39 {offsets = [2, 0], sizes = [2, 16], strides = [1, 1]} : vector<16x16xf32> to vector<2x16xf32>
    %cst_92 = arith.constant dense<0.000000e+00> : vector<2x16xf32>
    %119 = tpu.matmul %114, %11, %cst_92 {dimension_numbers = #tpu.dot_dimension_numbers<[1], [0], [0], [1], [0, 0, 1, 1], [], []>} : vector<2x16xf32>, vector<16x16xf32>, vector<2x16xf32> -> vector<2x16xf32>
    %120 = arith.addf %118, %119 : vector<2x16xf32>
    %121 = vector.extract_strided_slice %46 {offsets = [2, 0], sizes = [2, 16], strides = [1, 1]} : vector<16x16xf32> to vector<2x16xf32>
    %cst_93 = arith.constant dense<0.000000e+00> : vector<2x16xf32>
    %122 = tpu.matmul %114, %13, %cst_93 {dimension_numbers = #tpu.dot_dimension_numbers<[1], [0], [0], [1], [0, 0, 1, 1], [], []>} : vector<2x16xf32>, vector<16x16xf32>, vector<2x16xf32> -> vector<2x16xf32>
    %123 = arith.addf %121, %122 : vector<2x16xf32>
    %124 = vector.extract_strided_slice %53 {offsets = [2, 0], sizes = [2, 16], strides = [1, 1]} : vector<16x16xf32> to vector<2x16xf32>
    %cst_94 = arith.constant dense<0.000000e+00> : vector<2x16xf32>
    %125 = tpu.matmul %114, %15, %cst_94 {dimension_numbers = #tpu.dot_dimension_numbers<[1], [0], [0], [1], [0, 0, 1, 1], [], []>} : vector<2x16xf32>, vector<16x16xf32>, vector<2x16xf32> -> vector<2x16xf32>
    %126 = arith.addf %124, %125 : vector<2x16xf32>
    %127 = arith.negf %117 : vector<2x16xf32>
    %128 = math.exp %127 : vector<2x16xf32>
    %cst_95 = arith.constant 1.000000e+00 : f32
    %129 = vector.broadcast %cst_95 : f32 to vector<2x16xf32>
    %130 = arith.addf %129, %128 : vector<2x16xf32>
    %131 = arith.divf %129, %130 : vector<2x16xf32>
    %132 = arith.negf %120 : vector<2x16xf32>
    %133 = math.exp %132 : vector<2x16xf32>
    %cst_96 = arith.constant 1.000000e+00 : f32
    %134 = vector.broadcast %cst_96 : f32 to vector<2x16xf32>
    %135 = arith.addf %134, %133 : vector<2x16xf32>
    %136 = arith.divf %134, %135 : vector<2x16xf32>
    %137 = math.tanh %123 : vector<2x16xf32>
    %138 = arith.negf %126 : vector<2x16xf32>
    %139 = math.exp %138 : vector<2x16xf32>
    %cst_97 = arith.constant 1.000000e+00 : f32
    %140 = vector.broadcast %cst_97 : f32 to vector<2x16xf32>
    %141 = arith.addf %140, %139 : vector<2x16xf32>
    %142 = arith.divf %140, %141 : vector<2x16xf32>
    %143 = arith.mulf %136, %112 : vector<2x16xf32>
    %144 = arith.mulf %131, %137 : vector<2x16xf32>
    %145 = arith.addf %143, %144 : vector<2x16xf32>
    %146 = math.tanh %145 : vector<2x16xf32>
    %147 = arith.mulf %142, %146 : vector<2x16xf32>
    %148 = vector.extract_strided_slice %32 {offsets = [4, 0], sizes = [2, 16], strides = [1, 1]} : vector<16x16xf32> to vector<2x16xf32>
    %cst_98 = arith.constant dense<0.000000e+00> : vector<2x16xf32>
    %149 = tpu.matmul %147, %9, %cst_98 {dimension_numbers = #tpu.dot_dimension_numbers<[1], [0], [0], [1], [0, 0, 1, 1], [], []>} : vector<2x16xf32>, vector<16x16xf32>, vector<2x16xf32> -> vector<2x16xf32>
    %150 = arith.addf %148, %149 : vector<2x16xf32>
    %151 = vector.extract_strided_slice %39 {offsets = [4, 0], sizes = [2, 16], strides = [1, 1]} : vector<16x16xf32> to vector<2x16xf32>
    %cst_99 = arith.constant dense<0.000000e+00> : vector<2x16xf32>
    %152 = tpu.matmul %147, %11, %cst_99 {dimension_numbers = #tpu.dot_dimension_numbers<[1], [0], [0], [1], [0, 0, 1, 1], [], []>} : vector<2x16xf32>, vector<16x16xf32>, vector<2x16xf32> -> vector<2x16xf32>
    %153 = arith.addf %151, %152 : vector<2x16xf32>
    %154 = vector.extract_strided_slice %46 {offsets = [4, 0], sizes = [2, 16], strides = [1, 1]} : vector<16x16xf32> to vector<2x16xf32>
    %cst_100 = arith.constant dense<0.000000e+00> : vector<2x16xf32>
    %155 = tpu.matmul %147, %13, %cst_100 {dimension_numbers = #tpu.dot_dimension_numbers<[1], [0], [0], [1], [0, 0, 1, 1], [], []>} : vector<2x16xf32>, vector<16x16xf32>, vector<2x16xf32> -> vector<2x16xf32>
    %156 = arith.addf %154, %155 : vector<2x16xf32>
    %157 = vector.extract_strided_slice %53 {offsets = [4, 0], sizes = [2, 16], strides = [1, 1]} : vector<16x16xf32> to vector<2x16xf32>
    %cst_101 = arith.constant dense<0.000000e+00> : vector<2x16xf32>
    %158 = tpu.matmul %147, %15, %cst_101 {dimension_numbers = #tpu.dot_dimension_numbers<[1], [0], [0], [1], [0, 0, 1, 1], [], []>} : vector<2x16xf32>, vector<16x16xf32>, vector<2x16xf32> -> vector<2x16xf32>
    %159 = arith.addf %157, %158 : vector<2x16xf32>
    %160 = arith.negf %150 : vector<2x16xf32>
    %161 = math.exp %160 : vector<2x16xf32>
    %cst_102 = arith.constant 1.000000e+00 : f32
    %162 = vector.broadcast %cst_102 : f32 to vector<2x16xf32>
    %163 = arith.addf %162, %161 : vector<2x16xf32>
    %164 = arith.divf %162, %163 : vector<2x16xf32>
    %165 = arith.negf %153 : vector<2x16xf32>
    %166 = math.exp %165 : vector<2x16xf32>
    %cst_103 = arith.constant 1.000000e+00 : f32
    %167 = vector.broadcast %cst_103 : f32 to vector<2x16xf32>
    %168 = arith.addf %167, %166 : vector<2x16xf32>
    %169 = arith.divf %167, %168 : vector<2x16xf32>
    %170 = math.tanh %156 : vector<2x16xf32>
    %171 = arith.negf %159 : vector<2x16xf32>
    %172 = math.exp %171 : vector<2x16xf32>
    %cst_104 = arith.constant 1.000000e+00 : f32
    %173 = vector.broadcast %cst_104 : f32 to vector<2x16xf32>
    %174 = arith.addf %173, %172 : vector<2x16xf32>
    %175 = arith.divf %173, %174 : vector<2x16xf32>
    %176 = arith.mulf %169, %145 : vector<2x16xf32>
    %177 = arith.mulf %164, %170 : vector<2x16xf32>
    %178 = arith.addf %176, %177 : vector<2x16xf32>
    %179 = math.tanh %178 : vector<2x16xf32>
    %180 = arith.mulf %175, %179 : vector<2x16xf32>
    %181 = vector.extract_strided_slice %32 {offsets = [6, 0], sizes = [2, 16], strides = [1, 1]} : vector<16x16xf32> to vector<2x16xf32>
    %cst_105 = arith.constant dense<0.000000e+00> : vector<2x16xf32>
    %182 = tpu.matmul %180, %9, %cst_105 {dimension_numbers = #tpu.dot_dimension_numbers<[1], [0], [0], [1], [0, 0, 1, 1], [], []>} : vector<2x16xf32>, vector<16x16xf32>, vector<2x16xf32> -> vector<2x16xf32>
    %183 = arith.addf %181, %182 : vector<2x16xf32>
    %184 = vector.extract_strided_slice %39 {offsets = [6, 0], sizes = [2, 16], strides = [1, 1]} : vector<16x16xf32> to vector<2x16xf32>
    %cst_106 = arith.constant dense<0.000000e+00> : vector<2x16xf32>
    %185 = tpu.matmul %180, %11, %cst_106 {dimension_numbers = #tpu.dot_dimension_numbers<[1], [0], [0], [1], [0, 0, 1, 1], [], []>} : vector<2x16xf32>, vector<16x16xf32>, vector<2x16xf32> -> vector<2x16xf32>
    %186 = arith.addf %184, %185 : vector<2x16xf32>
    %187 = vector.extract_strided_slice %46 {offsets = [6, 0], sizes = [2, 16], strides = [1, 1]} : vector<16x16xf32> to vector<2x16xf32>
    %cst_107 = arith.constant dense<0.000000e+00> : vector<2x16xf32>
    %188 = tpu.matmul %180, %13, %cst_107 {dimension_numbers = #tpu.dot_dimension_numbers<[1], [0], [0], [1], [0, 0, 1, 1], [], []>} : vector<2x16xf32>, vector<16x16xf32>, vector<2x16xf32> -> vector<2x16xf32>
    %189 = arith.addf %187, %188 : vector<2x16xf32>
    %190 = vector.extract_strided_slice %53 {offsets = [6, 0], sizes = [2, 16], strides = [1, 1]} : vector<16x16xf32> to vector<2x16xf32>
    %cst_108 = arith.constant dense<0.000000e+00> : vector<2x16xf32>
    %191 = tpu.matmul %180, %15, %cst_108 {dimension_numbers = #tpu.dot_dimension_numbers<[1], [0], [0], [1], [0, 0, 1, 1], [], []>} : vector<2x16xf32>, vector<16x16xf32>, vector<2x16xf32> -> vector<2x16xf32>
    %192 = arith.addf %190, %191 : vector<2x16xf32>
    %193 = arith.negf %183 : vector<2x16xf32>
    %194 = math.exp %193 : vector<2x16xf32>
    %cst_109 = arith.constant 1.000000e+00 : f32
    %195 = vector.broadcast %cst_109 : f32 to vector<2x16xf32>
    %196 = arith.addf %195, %194 : vector<2x16xf32>
    %197 = arith.divf %195, %196 : vector<2x16xf32>
    %198 = arith.negf %186 : vector<2x16xf32>
    %199 = math.exp %198 : vector<2x16xf32>
    %cst_110 = arith.constant 1.000000e+00 : f32
    %200 = vector.broadcast %cst_110 : f32 to vector<2x16xf32>
    %201 = arith.addf %200, %199 : vector<2x16xf32>
    %202 = arith.divf %200, %201 : vector<2x16xf32>
    %203 = math.tanh %189 : vector<2x16xf32>
    %204 = arith.negf %192 : vector<2x16xf32>
    %205 = math.exp %204 : vector<2x16xf32>
    %cst_111 = arith.constant 1.000000e+00 : f32
    %206 = vector.broadcast %cst_111 : f32 to vector<2x16xf32>
    %207 = arith.addf %206, %205 : vector<2x16xf32>
    %208 = arith.divf %206, %207 : vector<2x16xf32>
    %209 = arith.mulf %202, %178 : vector<2x16xf32>
    %210 = arith.mulf %197, %203 : vector<2x16xf32>
    %211 = arith.addf %209, %210 : vector<2x16xf32>
    %212 = math.tanh %211 : vector<2x16xf32>
    %213 = arith.mulf %208, %212 : vector<2x16xf32>
    %214 = vector.extract_strided_slice %32 {offsets = [8, 0], sizes = [2, 16], strides = [1, 1]} : vector<16x16xf32> to vector<2x16xf32>
    %cst_112 = arith.constant dense<0.000000e+00> : vector<2x16xf32>
    %215 = tpu.matmul %213, %9, %cst_112 {dimension_numbers = #tpu.dot_dimension_numbers<[1], [0], [0], [1], [0, 0, 1, 1], [], []>} : vector<2x16xf32>, vector<16x16xf32>, vector<2x16xf32> -> vector<2x16xf32>
    %216 = arith.addf %214, %215 : vector<2x16xf32>
    %217 = vector.extract_strided_slice %39 {offsets = [8, 0], sizes = [2, 16], strides = [1, 1]} : vector<16x16xf32> to vector<2x16xf32>
    %cst_113 = arith.constant dense<0.000000e+00> : vector<2x16xf32>
    %218 = tpu.matmul %213, %11, %cst_113 {dimension_numbers = #tpu.dot_dimension_numbers<[1], [0], [0], [1], [0, 0, 1, 1], [], []>} : vector<2x16xf32>, vector<16x16xf32>, vector<2x16xf32> -> vector<2x16xf32>
    %219 = arith.addf %217, %218 : vector<2x16xf32>
    %220 = vector.extract_strided_slice %46 {offsets = [8, 0], sizes = [2, 16], strides = [1, 1]} : vector<16x16xf32> to vector<2x16xf32>
    %cst_114 = arith.constant dense<0.000000e+00> : vector<2x16xf32>
    %221 = tpu.matmul %213, %13, %cst_114 {dimension_numbers = #tpu.dot_dimension_numbers<[1], [0], [0], [1], [0, 0, 1, 1], [], []>} : vector<2x16xf32>, vector<16x16xf32>, vector<2x16xf32> -> vector<2x16xf32>
    %222 = arith.addf %220, %221 : vector<2x16xf32>
    %223 = vector.extract_strided_slice %53 {offsets = [8, 0], sizes = [2, 16], strides = [1, 1]} : vector<16x16xf32> to vector<2x16xf32>
    %cst_115 = arith.constant dense<0.000000e+00> : vector<2x16xf32>
    %224 = tpu.matmul %213, %15, %cst_115 {dimension_numbers = #tpu.dot_dimension_numbers<[1], [0], [0], [1], [0, 0, 1, 1], [], []>} : vector<2x16xf32>, vector<16x16xf32>, vector<2x16xf32> -> vector<2x16xf32>
    %225 = arith.addf %223, %224 : vector<2x16xf32>
    %226 = arith.negf %216 : vector<2x16xf32>
    %227 = math.exp %226 : vector<2x16xf32>
    %cst_116 = arith.constant 1.000000e+00 : f32
    %228 = vector.broadcast %cst_116 : f32 to vector<2x16xf32>
    %229 = arith.addf %228, %227 : vector<2x16xf32>
    %230 = arith.divf %228, %229 : vector<2x16xf32>
    %231 = arith.negf %219 : vector<2x16xf32>
    %232 = math.exp %231 : vector<2x16xf32>
    %cst_117 = arith.constant 1.000000e+00 : f32
    %233 = vector.broadcast %cst_117 : f32 to vector<2x16xf32>
    %234 = arith.addf %233, %232 : vector<2x16xf32>
    %235 = arith.divf %233, %234 : vector<2x16xf32>
    %236 = math.tanh %222 : vector<2x16xf32>
    %237 = arith.negf %225 : vector<2x16xf32>
    %238 = math.exp %237 : vector<2x16xf32>
    %cst_118 = arith.constant 1.000000e+00 : f32
    %239 = vector.broadcast %cst_118 : f32 to vector<2x16xf32>
    %240 = arith.addf %239, %238 : vector<2x16xf32>
    %241 = arith.divf %239, %240 : vector<2x16xf32>
    %242 = arith.mulf %235, %211 : vector<2x16xf32>
    %243 = arith.mulf %230, %236 : vector<2x16xf32>
    %244 = arith.addf %242, %243 : vector<2x16xf32>
    %245 = math.tanh %244 : vector<2x16xf32>
    %246 = arith.mulf %241, %245 : vector<2x16xf32>
    %247 = vector.extract_strided_slice %32 {offsets = [10, 0], sizes = [2, 16], strides = [1, 1]} : vector<16x16xf32> to vector<2x16xf32>
    %cst_119 = arith.constant dense<0.000000e+00> : vector<2x16xf32>
    %248 = tpu.matmul %246, %9, %cst_119 {dimension_numbers = #tpu.dot_dimension_numbers<[1], [0], [0], [1], [0, 0, 1, 1], [], []>} : vector<2x16xf32>, vector<16x16xf32>, vector<2x16xf32> -> vector<2x16xf32>
    %249 = arith.addf %247, %248 : vector<2x16xf32>
    %250 = vector.extract_strided_slice %39 {offsets = [10, 0], sizes = [2, 16], strides = [1, 1]} : vector<16x16xf32> to vector<2x16xf32>
    %cst_120 = arith.constant dense<0.000000e+00> : vector<2x16xf32>
    %251 = tpu.matmul %246, %11, %cst_120 {dimension_numbers = #tpu.dot_dimension_numbers<[1], [0], [0], [1], [0, 0, 1, 1], [], []>} : vector<2x16xf32>, vector<16x16xf32>, vector<2x16xf32> -> vector<2x16xf32>
    %252 = arith.addf %250, %251 : vector<2x16xf32>
    %253 = vector.extract_strided_slice %46 {offsets = [10, 0], sizes = [2, 16], strides = [1, 1]} : vector<16x16xf32> to vector<2x16xf32>
    %cst_121 = arith.constant dense<0.000000e+00> : vector<2x16xf32>
    %254 = tpu.matmul %246, %13, %cst_121 {dimension_numbers = #tpu.dot_dimension_numbers<[1], [0], [0], [1], [0, 0, 1, 1], [], []>} : vector<2x16xf32>, vector<16x16xf32>, vector<2x16xf32> -> vector<2x16xf32>
    %255 = arith.addf %253, %254 : vector<2x16xf32>
    %256 = vector.extract_strided_slice %53 {offsets = [10, 0], sizes = [2, 16], strides = [1, 1]} : vector<16x16xf32> to vector<2x16xf32>
    %cst_122 = arith.constant dense<0.000000e+00> : vector<2x16xf32>
    %257 = tpu.matmul %246, %15, %cst_122 {dimension_numbers = #tpu.dot_dimension_numbers<[1], [0], [0], [1], [0, 0, 1, 1], [], []>} : vector<2x16xf32>, vector<16x16xf32>, vector<2x16xf32> -> vector<2x16xf32>
    %258 = arith.addf %256, %257 : vector<2x16xf32>
    %259 = arith.negf %249 : vector<2x16xf32>
    %260 = math.exp %259 : vector<2x16xf32>
    %cst_123 = arith.constant 1.000000e+00 : f32
    %261 = vector.broadcast %cst_123 : f32 to vector<2x16xf32>
    %262 = arith.addf %261, %260 : vector<2x16xf32>
    %263 = arith.divf %261, %262 : vector<2x16xf32>
    %264 = arith.negf %252 : vector<2x16xf32>
    %265 = math.exp %264 : vector<2x16xf32>
    %cst_124 = arith.constant 1.000000e+00 : f32
    %266 = vector.broadcast %cst_124 : f32 to vector<2x16xf32>
    %267 = arith.addf %266, %265 : vector<2x16xf32>
    %268 = arith.divf %266, %267 : vector<2x16xf32>
    %269 = math.tanh %255 : vector<2x16xf32>
    %270 = arith.negf %258 : vector<2x16xf32>
    %271 = math.exp %270 : vector<2x16xf32>
    %cst_125 = arith.constant 1.000000e+00 : f32
    %272 = vector.broadcast %cst_125 : f32 to vector<2x16xf32>
    %273 = arith.addf %272, %271 : vector<2x16xf32>
    %274 = arith.divf %272, %273 : vector<2x16xf32>
    %275 = arith.mulf %268, %244 : vector<2x16xf32>
    %276 = arith.mulf %263, %269 : vector<2x16xf32>
    %277 = arith.addf %275, %276 : vector<2x16xf32>
    %278 = math.tanh %277 : vector<2x16xf32>
    %279 = arith.mulf %274, %278 : vector<2x16xf32>
    %280 = vector.extract_strided_slice %32 {offsets = [12, 0], sizes = [2, 16], strides = [1, 1]} : vector<16x16xf32> to vector<2x16xf32>
    %cst_126 = arith.constant dense<0.000000e+00> : vector<2x16xf32>
    %281 = tpu.matmul %279, %9, %cst_126 {dimension_numbers = #tpu.dot_dimension_numbers<[1], [0], [0], [1], [0, 0, 1, 1], [], []>} : vector<2x16xf32>, vector<16x16xf32>, vector<2x16xf32> -> vector<2x16xf32>
    %282 = arith.addf %280, %281 : vector<2x16xf32>
    %283 = vector.extract_strided_slice %39 {offsets = [12, 0], sizes = [2, 16], strides = [1, 1]} : vector<16x16xf32> to vector<2x16xf32>
    %cst_127 = arith.constant dense<0.000000e+00> : vector<2x16xf32>
    %284 = tpu.matmul %279, %11, %cst_127 {dimension_numbers = #tpu.dot_dimension_numbers<[1], [0], [0], [1], [0, 0, 1, 1], [], []>} : vector<2x16xf32>, vector<16x16xf32>, vector<2x16xf32> -> vector<2x16xf32>
    %285 = arith.addf %283, %284 : vector<2x16xf32>
    %286 = vector.extract_strided_slice %46 {offsets = [12, 0], sizes = [2, 16], strides = [1, 1]} : vector<16x16xf32> to vector<2x16xf32>
    %cst_128 = arith.constant dense<0.000000e+00> : vector<2x16xf32>
    %287 = tpu.matmul %279, %13, %cst_128 {dimension_numbers = #tpu.dot_dimension_numbers<[1], [0], [0], [1], [0, 0, 1, 1], [], []>} : vector<2x16xf32>, vector<16x16xf32>, vector<2x16xf32> -> vector<2x16xf32>
    %288 = arith.addf %286, %287 : vector<2x16xf32>
    %289 = vector.extract_strided_slice %53 {offsets = [12, 0], sizes = [2, 16], strides = [1, 1]} : vector<16x16xf32> to vector<2x16xf32>
    %cst_129 = arith.constant dense<0.000000e+00> : vector<2x16xf32>
    %290 = tpu.matmul %279, %15, %cst_129 {dimension_numbers = #tpu.dot_dimension_numbers<[1], [0], [0], [1], [0, 0, 1, 1], [], []>} : vector<2x16xf32>, vector<16x16xf32>, vector<2x16xf32> -> vector<2x16xf32>
    %291 = arith.addf %289, %290 : vector<2x16xf32>
    %292 = arith.negf %282 : vector<2x16xf32>
    %293 = math.exp %292 : vector<2x16xf32>
    %cst_130 = arith.constant 1.000000e+00 : f32
    %294 = vector.broadcast %cst_130 : f32 to vector<2x16xf32>
    %295 = arith.addf %294, %293 : vector<2x16xf32>
    %296 = arith.divf %294, %295 : vector<2x16xf32>
    %297 = arith.negf %285 : vector<2x16xf32>
    %298 = math.exp %297 : vector<2x16xf32>
    %cst_131 = arith.constant 1.000000e+00 : f32
    %299 = vector.broadcast %cst_131 : f32 to vector<2x16xf32>
    %300 = arith.addf %299, %298 : vector<2x16xf32>
    %301 = arith.divf %299, %300 : vector<2x16xf32>
    %302 = math.tanh %288 : vector<2x16xf32>
    %303 = arith.negf %291 : vector<2x16xf32>
    %304 = math.exp %303 : vector<2x16xf32>
    %cst_132 = arith.constant 1.000000e+00 : f32
    %305 = vector.broadcast %cst_132 : f32 to vector<2x16xf32>
    %306 = arith.addf %305, %304 : vector<2x16xf32>
    %307 = arith.divf %305, %306 : vector<2x16xf32>
    %308 = arith.mulf %301, %277 : vector<2x16xf32>
    %309 = arith.mulf %296, %302 : vector<2x16xf32>
    %310 = arith.addf %308, %309 : vector<2x16xf32>
    %311 = math.tanh %310 : vector<2x16xf32>
    %312 = arith.mulf %307, %311 : vector<2x16xf32>
    %313 = vector.extract_strided_slice %32 {offsets = [14, 0], sizes = [2, 16], strides = [1, 1]} : vector<16x16xf32> to vector<2x16xf32>
    %cst_133 = arith.constant dense<0.000000e+00> : vector<2x16xf32>
    %314 = tpu.matmul %312, %9, %cst_133 {dimension_numbers = #tpu.dot_dimension_numbers<[1], [0], [0], [1], [0, 0, 1, 1], [], []>} : vector<2x16xf32>, vector<16x16xf32>, vector<2x16xf32> -> vector<2x16xf32>
    %315 = arith.addf %313, %314 : vector<2x16xf32>
    %316 = vector.extract_strided_slice %39 {offsets = [14, 0], sizes = [2, 16], strides = [1, 1]} : vector<16x16xf32> to vector<2x16xf32>
    %cst_134 = arith.constant dense<0.000000e+00> : vector<2x16xf32>
    %317 = tpu.matmul %312, %11, %cst_134 {dimension_numbers = #tpu.dot_dimension_numbers<[1], [0], [0], [1], [0, 0, 1, 1], [], []>} : vector<2x16xf32>, vector<16x16xf32>, vector<2x16xf32> -> vector<2x16xf32>
    %318 = arith.addf %316, %317 : vector<2x16xf32>
    %319 = vector.extract_strided_slice %46 {offsets = [14, 0], sizes = [2, 16], strides = [1, 1]} : vector<16x16xf32> to vector<2x16xf32>
    %cst_135 = arith.constant dense<0.000000e+00> : vector<2x16xf32>
    %320 = tpu.matmul %312, %13, %cst_135 {dimension_numbers = #tpu.dot_dimension_numbers<[1], [0], [0], [1], [0, 0, 1, 1], [], []>} : vector<2x16xf32>, vector<16x16xf32>, vector<2x16xf32> -> vector<2x16xf32>
    %321 = arith.addf %319, %320 : vector<2x16xf32>
    %322 = vector.extract_strided_slice %53 {offsets = [14, 0], sizes = [2, 16], strides = [1, 1]} : vector<16x16xf32> to vector<2x16xf32>
    %cst_136 = arith.constant dense<0.000000e+00> : vector<2x16xf32>
    %323 = tpu.matmul %312, %15, %cst_136 {dimension_numbers = #tpu.dot_dimension_numbers<[1], [0], [0], [1], [0, 0, 1, 1], [], []>} : vector<2x16xf32>, vector<16x16xf32>, vector<2x16xf32> -> vector<2x16xf32>
    %324 = arith.addf %322, %323 : vector<2x16xf32>
    %325 = arith.negf %315 : vector<2x16xf32>
    %326 = math.exp %325 : vector<2x16xf32>
    %cst_137 = arith.constant 1.000000e+00 : f32
    %327 = vector.broadcast %cst_137 : f32 to vector<2x16xf32>
    %328 = arith.addf %327, %326 : vector<2x16xf32>
    %329 = arith.divf %327, %328 : vector<2x16xf32>
    %330 = arith.negf %318 : vector<2x16xf32>
    %331 = math.exp %330 : vector<2x16xf32>
    %cst_138 = arith.constant 1.000000e+00 : f32
    %332 = vector.broadcast %cst_138 : f32 to vector<2x16xf32>
    %333 = arith.addf %332, %331 : vector<2x16xf32>
    %334 = arith.divf %332, %333 : vector<2x16xf32>
    %335 = math.tanh %321 : vector<2x16xf32>
    %336 = arith.negf %324 : vector<2x16xf32>
    %337 = math.exp %336 : vector<2x16xf32>
    %cst_139 = arith.constant 1.000000e+00 : f32
    %338 = vector.broadcast %cst_139 : f32 to vector<2x16xf32>
    %339 = arith.addf %338, %337 : vector<2x16xf32>
    %340 = arith.divf %338, %339 : vector<2x16xf32>
    %341 = arith.mulf %334, %310 : vector<2x16xf32>
    %342 = arith.mulf %329, %335 : vector<2x16xf32>
    %343 = arith.addf %341, %342 : vector<2x16xf32>
    %344 = math.tanh %343 : vector<2x16xf32>
    %345 = arith.mulf %340, %344 : vector<2x16xf32>
    %346 = vector.extract_strided_slice %60 {offsets = [14, 0], sizes = [2, 16], strides = [1, 1]} : vector<16x16xf32> to vector<2x16xf32>
    %cst_140 = arith.constant dense<0.000000e+00> : vector<2x16xf32>
    %347 = tpu.matmul %24, %17, %cst_140 {dimension_numbers = #tpu.dot_dimension_numbers<[1], [0], [0], [1], [0, 0, 1, 1], [], []>} : vector<2x16xf32>, vector<16x16xf32>, vector<2x16xf32> -> vector<2x16xf32>
    %348 = arith.addf %346, %347 : vector<2x16xf32>
    %349 = vector.extract_strided_slice %67 {offsets = [14, 0], sizes = [2, 16], strides = [1, 1]} : vector<16x16xf32> to vector<2x16xf32>
    %cst_141 = arith.constant dense<0.000000e+00> : vector<2x16xf32>
    %350 = tpu.matmul %24, %19, %cst_141 {dimension_numbers = #tpu.dot_dimension_numbers<[1], [0], [0], [1], [0, 0, 1, 1], [], []>} : vector<2x16xf32>, vector<16x16xf32>, vector<2x16xf32> -> vector<2x16xf32>
    %351 = arith.addf %349, %350 : vector<2x16xf32>
    %352 = vector.extract_strided_slice %74 {offsets = [14, 0], sizes = [2, 16], strides = [1, 1]} : vector<16x16xf32> to vector<2x16xf32>
    %cst_142 = arith.constant dense<0.000000e+00> : vector<2x16xf32>
    %353 = tpu.matmul %24, %21, %cst_142 {dimension_numbers = #tpu.dot_dimension_numbers<[1], [0], [0], [1], [0, 0, 1, 1], [], []>} : vector<2x16xf32>, vector<16x16xf32>, vector<2x16xf32> -> vector<2x16xf32>
    %354 = arith.addf %352, %353 : vector<2x16xf32>
    %355 = vector.extract_strided_slice %81 {offsets = [14, 0], sizes = [2, 16], strides = [1, 1]} : vector<16x16xf32> to vector<2x16xf32>
    %cst_143 = arith.constant dense<0.000000e+00> : vector<2x16xf32>
    %356 = tpu.matmul %24, %23, %cst_143 {dimension_numbers = #tpu.dot_dimension_numbers<[1], [0], [0], [1], [0, 0, 1, 1], [], []>} : vector<2x16xf32>, vector<16x16xf32>, vector<2x16xf32> -> vector<2x16xf32>
    %357 = arith.addf %355, %356 : vector<2x16xf32>
    %358 = arith.negf %348 : vector<2x16xf32>
    %359 = math.exp %358 : vector<2x16xf32>
    %cst_144 = arith.constant 1.000000e+00 : f32
    %360 = vector.broadcast %cst_144 : f32 to vector<2x16xf32>
    %361 = arith.addf %360, %359 : vector<2x16xf32>
    %362 = arith.divf %360, %361 : vector<2x16xf32>
    %363 = arith.negf %351 : vector<2x16xf32>
    %364 = math.exp %363 : vector<2x16xf32>
    %cst_145 = arith.constant 1.000000e+00 : f32
    %365 = vector.broadcast %cst_145 : f32 to vector<2x16xf32>
    %366 = arith.addf %365, %364 : vector<2x16xf32>
    %367 = arith.divf %365, %366 : vector<2x16xf32>
    %368 = math.tanh %354 : vector<2x16xf32>
    %369 = arith.negf %357 : vector<2x16xf32>
    %370 = math.exp %369 : vector<2x16xf32>
    %cst_146 = arith.constant 1.000000e+00 : f32
    %371 = vector.broadcast %cst_146 : f32 to vector<2x16xf32>
    %372 = arith.addf %371, %370 : vector<2x16xf32>
    %373 = arith.divf %371, %372 : vector<2x16xf32>
    %374 = arith.mulf %367, %25 : vector<2x16xf32>
    %375 = arith.mulf %362, %368 : vector<2x16xf32>
    %376 = arith.addf %374, %375 : vector<2x16xf32>
    %377 = math.tanh %376 : vector<2x16xf32>
    %378 = arith.mulf %373, %377 : vector<2x16xf32>
    %379 = vector.extract_strided_slice %60 {offsets = [12, 0], sizes = [2, 16], strides = [1, 1]} : vector<16x16xf32> to vector<2x16xf32>
    %cst_147 = arith.constant dense<0.000000e+00> : vector<2x16xf32>
    %380 = tpu.matmul %378, %17, %cst_147 {dimension_numbers = #tpu.dot_dimension_numbers<[1], [0], [0], [1], [0, 0, 1, 1], [], []>} : vector<2x16xf32>, vector<16x16xf32>, vector<2x16xf32> -> vector<2x16xf32>
    %381 = arith.addf %379, %380 : vector<2x16xf32>
    %382 = vector.extract_strided_slice %67 {offsets = [12, 0], sizes = [2, 16], strides = [1, 1]} : vector<16x16xf32> to vector<2x16xf32>
    %cst_148 = arith.constant dense<0.000000e+00> : vector<2x16xf32>
    %383 = tpu.matmul %378, %19, %cst_148 {dimension_numbers = #tpu.dot_dimension_numbers<[1], [0], [0], [1], [0, 0, 1, 1], [], []>} : vector<2x16xf32>, vector<16x16xf32>, vector<2x16xf32> -> vector<2x16xf32>
    %384 = arith.addf %382, %383 : vector<2x16xf32>
    %385 = vector.extract_strided_slice %74 {offsets = [12, 0], sizes = [2, 16], strides = [1, 1]} : vector<16x16xf32> to vector<2x16xf32>
    %cst_149 = arith.constant dense<0.000000e+00> : vector<2x16xf32>
    %386 = tpu.matmul %378, %21, %cst_149 {dimension_numbers = #tpu.dot_dimension_numbers<[1], [0], [0], [1], [0, 0, 1, 1], [], []>} : vector<2x16xf32>, vector<16x16xf32>, vector<2x16xf32> -> vector<2x16xf32>
    %387 = arith.addf %385, %386 : vector<2x16xf32>
    %388 = vector.extract_strided_slice %81 {offsets = [12, 0], sizes = [2, 16], strides = [1, 1]} : vector<16x16xf32> to vector<2x16xf32>
    %cst_150 = arith.constant dense<0.000000e+00> : vector<2x16xf32>
    %389 = tpu.matmul %378, %23, %cst_150 {dimension_numbers = #tpu.dot_dimension_numbers<[1], [0], [0], [1], [0, 0, 1, 1], [], []>} : vector<2x16xf32>, vector<16x16xf32>, vector<2x16xf32> -> vector<2x16xf32>
    %390 = arith.addf %388, %389 : vector<2x16xf32>
    %391 = arith.negf %381 : vector<2x16xf32>
    %392 = math.exp %391 : vector<2x16xf32>
    %cst_151 = arith.constant 1.000000e+00 : f32
    %393 = vector.broadcast %cst_151 : f32 to vector<2x16xf32>
    %394 = arith.addf %393, %392 : vector<2x16xf32>
    %395 = arith.divf %393, %394 : vector<2x16xf32>
    %396 = arith.negf %384 : vector<2x16xf32>
    %397 = math.exp %396 : vector<2x16xf32>
    %cst_152 = arith.constant 1.000000e+00 : f32
    %398 = vector.broadcast %cst_152 : f32 to vector<2x16xf32>
    %399 = arith.addf %398, %397 : vector<2x16xf32>
    %400 = arith.divf %398, %399 : vector<2x16xf32>
    %401 = math.tanh %387 : vector<2x16xf32>
    %402 = arith.negf %390 : vector<2x16xf32>
    %403 = math.exp %402 : vector<2x16xf32>
    %cst_153 = arith.constant 1.000000e+00 : f32
    %404 = vector.broadcast %cst_153 : f32 to vector<2x16xf32>
    %405 = arith.addf %404, %403 : vector<2x16xf32>
    %406 = arith.divf %404, %405 : vector<2x16xf32>
    %407 = arith.mulf %400, %376 : vector<2x16xf32>
    %408 = arith.mulf %395, %401 : vector<2x16xf32>
    %409 = arith.addf %407, %408 : vector<2x16xf32>
    %410 = math.tanh %409 : vector<2x16xf32>
    %411 = arith.mulf %406, %410 : vector<2x16xf32>
    %412 = vector.extract_strided_slice %60 {offsets = [10, 0], sizes = [2, 16], strides = [1, 1]} : vector<16x16xf32> to vector<2x16xf32>
    %cst_154 = arith.constant dense<0.000000e+00> : vector<2x16xf32>
    %413 = tpu.matmul %411, %17, %cst_154 {dimension_numbers = #tpu.dot_dimension_numbers<[1], [0], [0], [1], [0, 0, 1, 1], [], []>} : vector<2x16xf32>, vector<16x16xf32>, vector<2x16xf32> -> vector<2x16xf32>
    %414 = arith.addf %412, %413 : vector<2x16xf32>
    %415 = vector.extract_strided_slice %67 {offsets = [10, 0], sizes = [2, 16], strides = [1, 1]} : vector<16x16xf32> to vector<2x16xf32>
    %cst_155 = arith.constant dense<0.000000e+00> : vector<2x16xf32>
    %416 = tpu.matmul %411, %19, %cst_155 {dimension_numbers = #tpu.dot_dimension_numbers<[1], [0], [0], [1], [0, 0, 1, 1], [], []>} : vector<2x16xf32>, vector<16x16xf32>, vector<2x16xf32> -> vector<2x16xf32>
    %417 = arith.addf %415, %416 : vector<2x16xf32>
    %418 = vector.extract_strided_slice %74 {offsets = [10, 0], sizes = [2, 16], strides = [1, 1]} : vector<16x16xf32> to vector<2x16xf32>
    %cst_156 = arith.constant dense<0.000000e+00> : vector<2x16xf32>
    %419 = tpu.matmul %411, %21, %cst_156 {dimension_numbers = #tpu.dot_dimension_numbers<[1], [0], [0], [1], [0, 0, 1, 1], [], []>} : vector<2x16xf32>, vector<16x16xf32>, vector<2x16xf32> -> vector<2x16xf32>
    %420 = arith.addf %418, %419 : vector<2x16xf32>
    %421 = vector.extract_strided_slice %81 {offsets = [10, 0], sizes = [2, 16], strides = [1, 1]} : vector<16x16xf32> to vector<2x16xf32>
    %cst_157 = arith.constant dense<0.000000e+00> : vector<2x16xf32>
    %422 = tpu.matmul %411, %23, %cst_157 {dimension_numbers = #tpu.dot_dimension_numbers<[1], [0], [0], [1], [0, 0, 1, 1], [], []>} : vector<2x16xf32>, vector<16x16xf32>, vector<2x16xf32> -> vector<2x16xf32>
    %423 = arith.addf %421, %422 : vector<2x16xf32>
    %424 = arith.negf %414 : vector<2x16xf32>
    %425 = math.exp %424 : vector<2x16xf32>
    %cst_158 = arith.constant 1.000000e+00 : f32
    %426 = vector.broadcast %cst_158 : f32 to vector<2x16xf32>
    %427 = arith.addf %426, %425 : vector<2x16xf32>
    %428 = arith.divf %426, %427 : vector<2x16xf32>
    %429 = arith.negf %417 : vector<2x16xf32>
    %430 = math.exp %429 : vector<2x16xf32>
    %cst_159 = arith.constant 1.000000e+00 : f32
    %431 = vector.broadcast %cst_159 : f32 to vector<2x16xf32>
    %432 = arith.addf %431, %430 : vector<2x16xf32>
    %433 = arith.divf %431, %432 : vector<2x16xf32>
    %434 = math.tanh %420 : vector<2x16xf32>
    %435 = arith.negf %423 : vector<2x16xf32>
    %436 = math.exp %435 : vector<2x16xf32>
    %cst_160 = arith.constant 1.000000e+00 : f32
    %437 = vector.broadcast %cst_160 : f32 to vector<2x16xf32>
    %438 = arith.addf %437, %436 : vector<2x16xf32>
    %439 = arith.divf %437, %438 : vector<2x16xf32>
    %440 = arith.mulf %433, %409 : vector<2x16xf32>
    %441 = arith.mulf %428, %434 : vector<2x16xf32>
    %442 = arith.addf %440, %441 : vector<2x16xf32>
    %443 = math.tanh %442 : vector<2x16xf32>
    %444 = arith.mulf %439, %443 : vector<2x16xf32>
    %445 = vector.extract_strided_slice %60 {offsets = [8, 0], sizes = [2, 16], strides = [1, 1]} : vector<16x16xf32> to vector<2x16xf32>
    %cst_161 = arith.constant dense<0.000000e+00> : vector<2x16xf32>
    %446 = tpu.matmul %444, %17, %cst_161 {dimension_numbers = #tpu.dot_dimension_numbers<[1], [0], [0], [1], [0, 0, 1, 1], [], []>} : vector<2x16xf32>, vector<16x16xf32>, vector<2x16xf32> -> vector<2x16xf32>
    %447 = arith.addf %445, %446 : vector<2x16xf32>
    %448 = vector.extract_strided_slice %67 {offsets = [8, 0], sizes = [2, 16], strides = [1, 1]} : vector<16x16xf32> to vector<2x16xf32>
    %cst_162 = arith.constant dense<0.000000e+00> : vector<2x16xf32>
    %449 = tpu.matmul %444, %19, %cst_162 {dimension_numbers = #tpu.dot_dimension_numbers<[1], [0], [0], [1], [0, 0, 1, 1], [], []>} : vector<2x16xf32>, vector<16x16xf32>, vector<2x16xf32> -> vector<2x16xf32>
    %450 = arith.addf %448, %449 : vector<2x16xf32>
    %451 = vector.extract_strided_slice %74 {offsets = [8, 0], sizes = [2, 16], strides = [1, 1]} : vector<16x16xf32> to vector<2x16xf32>
    %cst_163 = arith.constant dense<0.000000e+00> : vector<2x16xf32>
    %452 = tpu.matmul %444, %21, %cst_163 {dimension_numbers = #tpu.dot_dimension_numbers<[1], [0], [0], [1], [0, 0, 1, 1], [], []>} : vector<2x16xf32>, vector<16x16xf32>, vector<2x16xf32> -> vector<2x16xf32>
    %453 = arith.addf %451, %452 : vector<2x16xf32>
    %454 = vector.extract_strided_slice %81 {offsets = [8, 0], sizes = [2, 16], strides = [1, 1]} : vector<16x16xf32> to vector<2x16xf32>
    %cst_164 = arith.constant dense<0.000000e+00> : vector<2x16xf32>
    %455 = tpu.matmul %444, %23, %cst_164 {dimension_numbers = #tpu.dot_dimension_numbers<[1], [0], [0], [1], [0, 0, 1, 1], [], []>} : vector<2x16xf32>, vector<16x16xf32>, vector<2x16xf32> -> vector<2x16xf32>
    %456 = arith.addf %454, %455 : vector<2x16xf32>
    %457 = arith.negf %447 : vector<2x16xf32>
    %458 = math.exp %457 : vector<2x16xf32>
    %cst_165 = arith.constant 1.000000e+00 : f32
    %459 = vector.broadcast %cst_165 : f32 to vector<2x16xf32>
    %460 = arith.addf %459, %458 : vector<2x16xf32>
    %461 = arith.divf %459, %460 : vector<2x16xf32>
    %462 = arith.negf %450 : vector<2x16xf32>
    %463 = math.exp %462 : vector<2x16xf32>
    %cst_166 = arith.constant 1.000000e+00 : f32
    %464 = vector.broadcast %cst_166 : f32 to vector<2x16xf32>
    %465 = arith.addf %464, %463 : vector<2x16xf32>
    %466 = arith.divf %464, %465 : vector<2x16xf32>
    %467 = math.tanh %453 : vector<2x16xf32>
    %468 = arith.negf %456 : vector<2x16xf32>
    %469 = math.exp %468 : vector<2x16xf32>
    %cst_167 = arith.constant 1.000000e+00 : f32
    %470 = vector.broadcast %cst_167 : f32 to vector<2x16xf32>
    %471 = arith.addf %470, %469 : vector<2x16xf32>
    %472 = arith.divf %470, %471 : vector<2x16xf32>
    %473 = arith.mulf %466, %442 : vector<2x16xf32>
    %474 = arith.mulf %461, %467 : vector<2x16xf32>
    %475 = arith.addf %473, %474 : vector<2x16xf32>
    %476 = math.tanh %475 : vector<2x16xf32>
    %477 = arith.mulf %472, %476 : vector<2x16xf32>
    %478 = vector.extract_strided_slice %60 {offsets = [6, 0], sizes = [2, 16], strides = [1, 1]} : vector<16x16xf32> to vector<2x16xf32>
    %cst_168 = arith.constant dense<0.000000e+00> : vector<2x16xf32>
    %479 = tpu.matmul %477, %17, %cst_168 {dimension_numbers = #tpu.dot_dimension_numbers<[1], [0], [0], [1], [0, 0, 1, 1], [], []>} : vector<2x16xf32>, vector<16x16xf32>, vector<2x16xf32> -> vector<2x16xf32>
    %480 = arith.addf %478, %479 : vector<2x16xf32>
    %481 = vector.extract_strided_slice %67 {offsets = [6, 0], sizes = [2, 16], strides = [1, 1]} : vector<16x16xf32> to vector<2x16xf32>
    %cst_169 = arith.constant dense<0.000000e+00> : vector<2x16xf32>
    %482 = tpu.matmul %477, %19, %cst_169 {dimension_numbers = #tpu.dot_dimension_numbers<[1], [0], [0], [1], [0, 0, 1, 1], [], []>} : vector<2x16xf32>, vector<16x16xf32>, vector<2x16xf32> -> vector<2x16xf32>
    %483 = arith.addf %481, %482 : vector<2x16xf32>
    %484 = vector.extract_strided_slice %74 {offsets = [6, 0], sizes = [2, 16], strides = [1, 1]} : vector<16x16xf32> to vector<2x16xf32>
    %cst_170 = arith.constant dense<0.000000e+00> : vector<2x16xf32>
    %485 = tpu.matmul %477, %21, %cst_170 {dimension_numbers = #tpu.dot_dimension_numbers<[1], [0], [0], [1], [0, 0, 1, 1], [], []>} : vector<2x16xf32>, vector<16x16xf32>, vector<2x16xf32> -> vector<2x16xf32>
    %486 = arith.addf %484, %485 : vector<2x16xf32>
    %487 = vector.extract_strided_slice %81 {offsets = [6, 0], sizes = [2, 16], strides = [1, 1]} : vector<16x16xf32> to vector<2x16xf32>
    %cst_171 = arith.constant dense<0.000000e+00> : vector<2x16xf32>
    %488 = tpu.matmul %477, %23, %cst_171 {dimension_numbers = #tpu.dot_dimension_numbers<[1], [0], [0], [1], [0, 0, 1, 1], [], []>} : vector<2x16xf32>, vector<16x16xf32>, vector<2x16xf32> -> vector<2x16xf32>
    %489 = arith.addf %487, %488 : vector<2x16xf32>
    %490 = arith.negf %480 : vector<2x16xf32>
    %491 = math.exp %490 : vector<2x16xf32>
    %cst_172 = arith.constant 1.000000e+00 : f32
    %492 = vector.broadcast %cst_172 : f32 to vector<2x16xf32>
    %493 = arith.addf %492, %491 : vector<2x16xf32>
    %494 = arith.divf %492, %493 : vector<2x16xf32>
    %495 = arith.negf %483 : vector<2x16xf32>
    %496 = math.exp %495 : vector<2x16xf32>
    %cst_173 = arith.constant 1.000000e+00 : f32
    %497 = vector.broadcast %cst_173 : f32 to vector<2x16xf32>
    %498 = arith.addf %497, %496 : vector<2x16xf32>
    %499 = arith.divf %497, %498 : vector<2x16xf32>
    %500 = math.tanh %486 : vector<2x16xf32>
    %501 = arith.negf %489 : vector<2x16xf32>
    %502 = math.exp %501 : vector<2x16xf32>
    %cst_174 = arith.constant 1.000000e+00 : f32
    %503 = vector.broadcast %cst_174 : f32 to vector<2x16xf32>
    %504 = arith.addf %503, %502 : vector<2x16xf32>
    %505 = arith.divf %503, %504 : vector<2x16xf32>
    %506 = arith.mulf %499, %475 : vector<2x16xf32>
    %507 = arith.mulf %494, %500 : vector<2x16xf32>
    %508 = arith.addf %506, %507 : vector<2x16xf32>
    %509 = math.tanh %508 : vector<2x16xf32>
    %510 = arith.mulf %505, %509 : vector<2x16xf32>
    %511 = vector.extract_strided_slice %60 {offsets = [4, 0], sizes = [2, 16], strides = [1, 1]} : vector<16x16xf32> to vector<2x16xf32>
    %cst_175 = arith.constant dense<0.000000e+00> : vector<2x16xf32>
    %512 = tpu.matmul %510, %17, %cst_175 {dimension_numbers = #tpu.dot_dimension_numbers<[1], [0], [0], [1], [0, 0, 1, 1], [], []>} : vector<2x16xf32>, vector<16x16xf32>, vector<2x16xf32> -> vector<2x16xf32>
    %513 = arith.addf %511, %512 : vector<2x16xf32>
    %514 = vector.extract_strided_slice %67 {offsets = [4, 0], sizes = [2, 16], strides = [1, 1]} : vector<16x16xf32> to vector<2x16xf32>
    %cst_176 = arith.constant dense<0.000000e+00> : vector<2x16xf32>
    %515 = tpu.matmul %510, %19, %cst_176 {dimension_numbers = #tpu.dot_dimension_numbers<[1], [0], [0], [1], [0, 0, 1, 1], [], []>} : vector<2x16xf32>, vector<16x16xf32>, vector<2x16xf32> -> vector<2x16xf32>
    %516 = arith.addf %514, %515 : vector<2x16xf32>
    %517 = vector.extract_strided_slice %74 {offsets = [4, 0], sizes = [2, 16], strides = [1, 1]} : vector<16x16xf32> to vector<2x16xf32>
    %cst_177 = arith.constant dense<0.000000e+00> : vector<2x16xf32>
    %518 = tpu.matmul %510, %21, %cst_177 {dimension_numbers = #tpu.dot_dimension_numbers<[1], [0], [0], [1], [0, 0, 1, 1], [], []>} : vector<2x16xf32>, vector<16x16xf32>, vector<2x16xf32> -> vector<2x16xf32>
    %519 = arith.addf %517, %518 : vector<2x16xf32>
    %520 = vector.extract_strided_slice %81 {offsets = [4, 0], sizes = [2, 16], strides = [1, 1]} : vector<16x16xf32> to vector<2x16xf32>
    %cst_178 = arith.constant dense<0.000000e+00> : vector<2x16xf32>
    %521 = tpu.matmul %510, %23, %cst_178 {dimension_numbers = #tpu.dot_dimension_numbers<[1], [0], [0], [1], [0, 0, 1, 1], [], []>} : vector<2x16xf32>, vector<16x16xf32>, vector<2x16xf32> -> vector<2x16xf32>
    %522 = arith.addf %520, %521 : vector<2x16xf32>
    %523 = arith.negf %513 : vector<2x16xf32>
    %524 = math.exp %523 : vector<2x16xf32>
    %cst_179 = arith.constant 1.000000e+00 : f32
    %525 = vector.broadcast %cst_179 : f32 to vector<2x16xf32>
    %526 = arith.addf %525, %524 : vector<2x16xf32>
    %527 = arith.divf %525, %526 : vector<2x16xf32>
    %528 = arith.negf %516 : vector<2x16xf32>
    %529 = math.exp %528 : vector<2x16xf32>
    %cst_180 = arith.constant 1.000000e+00 : f32
    %530 = vector.broadcast %cst_180 : f32 to vector<2x16xf32>
    %531 = arith.addf %530, %529 : vector<2x16xf32>
    %532 = arith.divf %530, %531 : vector<2x16xf32>
    %533 = math.tanh %519 : vector<2x16xf32>
    %534 = arith.negf %522 : vector<2x16xf32>
    %535 = math.exp %534 : vector<2x16xf32>
    %cst_181 = arith.constant 1.000000e+00 : f32
    %536 = vector.broadcast %cst_181 : f32 to vector<2x16xf32>
    %537 = arith.addf %536, %535 : vector<2x16xf32>
    %538 = arith.divf %536, %537 : vector<2x16xf32>
    %539 = arith.mulf %532, %508 : vector<2x16xf32>
    %540 = arith.mulf %527, %533 : vector<2x16xf32>
    %541 = arith.addf %539, %540 : vector<2x16xf32>
    %542 = math.tanh %541 : vector<2x16xf32>
    %543 = arith.mulf %538, %542 : vector<2x16xf32>
    %544 = vector.extract_strided_slice %60 {offsets = [2, 0], sizes = [2, 16], strides = [1, 1]} : vector<16x16xf32> to vector<2x16xf32>
    %cst_182 = arith.constant dense<0.000000e+00> : vector<2x16xf32>
    %545 = tpu.matmul %543, %17, %cst_182 {dimension_numbers = #tpu.dot_dimension_numbers<[1], [0], [0], [1], [0, 0, 1, 1], [], []>} : vector<2x16xf32>, vector<16x16xf32>, vector<2x16xf32> -> vector<2x16xf32>
    %546 = arith.addf %544, %545 : vector<2x16xf32>
    %547 = vector.extract_strided_slice %67 {offsets = [2, 0], sizes = [2, 16], strides = [1, 1]} : vector<16x16xf32> to vector<2x16xf32>
    %cst_183 = arith.constant dense<0.000000e+00> : vector<2x16xf32>
    %548 = tpu.matmul %543, %19, %cst_183 {dimension_numbers = #tpu.dot_dimension_numbers<[1], [0], [0], [1], [0, 0, 1, 1], [], []>} : vector<2x16xf32>, vector<16x16xf32>, vector<2x16xf32> -> vector<2x16xf32>
    %549 = arith.addf %547, %548 : vector<2x16xf32>
    %550 = vector.extract_strided_slice %74 {offsets = [2, 0], sizes = [2, 16], strides = [1, 1]} : vector<16x16xf32> to vector<2x16xf32>
    %cst_184 = arith.constant dense<0.000000e+00> : vector<2x16xf32>
    %551 = tpu.matmul %543, %21, %cst_184 {dimension_numbers = #tpu.dot_dimension_numbers<[1], [0], [0], [1], [0, 0, 1, 1], [], []>} : vector<2x16xf32>, vector<16x16xf32>, vector<2x16xf32> -> vector<2x16xf32>
    %552 = arith.addf %550, %551 : vector<2x16xf32>
    %553 = vector.extract_strided_slice %81 {offsets = [2, 0], sizes = [2, 16], strides = [1, 1]} : vector<16x16xf32> to vector<2x16xf32>
    %cst_185 = arith.constant dense<0.000000e+00> : vector<2x16xf32>
    %554 = tpu.matmul %543, %23, %cst_185 {dimension_numbers = #tpu.dot_dimension_numbers<[1], [0], [0], [1], [0, 0, 1, 1], [], []>} : vector<2x16xf32>, vector<16x16xf32>, vector<2x16xf32> -> vector<2x16xf32>
    %555 = arith.addf %553, %554 : vector<2x16xf32>
    %556 = arith.negf %546 : vector<2x16xf32>
    %557 = math.exp %556 : vector<2x16xf32>
    %cst_186 = arith.constant 1.000000e+00 : f32
    %558 = vector.broadcast %cst_186 : f32 to vector<2x16xf32>
    %559 = arith.addf %558, %557 : vector<2x16xf32>
    %560 = arith.divf %558, %559 : vector<2x16xf32>
    %561 = arith.negf %549 : vector<2x16xf32>
    %562 = math.exp %561 : vector<2x16xf32>
    %cst_187 = arith.constant 1.000000e+00 : f32
    %563 = vector.broadcast %cst_187 : f32 to vector<2x16xf32>
    %564 = arith.addf %563, %562 : vector<2x16xf32>
    %565 = arith.divf %563, %564 : vector<2x16xf32>
    %566 = math.tanh %552 : vector<2x16xf32>
    %567 = arith.negf %555 : vector<2x16xf32>
    %568 = math.exp %567 : vector<2x16xf32>
    %cst_188 = arith.constant 1.000000e+00 : f32
    %569 = vector.broadcast %cst_188 : f32 to vector<2x16xf32>
    %570 = arith.addf %569, %568 : vector<2x16xf32>
    %571 = arith.divf %569, %570 : vector<2x16xf32>
    %572 = arith.mulf %565, %541 : vector<2x16xf32>
    %573 = arith.mulf %560, %566 : vector<2x16xf32>
    %574 = arith.addf %572, %573 : vector<2x16xf32>
    %575 = math.tanh %574 : vector<2x16xf32>
    %576 = arith.mulf %571, %575 : vector<2x16xf32>
    %577 = vector.extract_strided_slice %60 {offsets = [0, 0], sizes = [2, 16], strides = [1, 1]} : vector<16x16xf32> to vector<2x16xf32>
    %cst_189 = arith.constant dense<0.000000e+00> : vector<2x16xf32>
    %578 = tpu.matmul %576, %17, %cst_189 {dimension_numbers = #tpu.dot_dimension_numbers<[1], [0], [0], [1], [0, 0, 1, 1], [], []>} : vector<2x16xf32>, vector<16x16xf32>, vector<2x16xf32> -> vector<2x16xf32>
    %579 = arith.addf %577, %578 : vector<2x16xf32>
    %580 = vector.extract_strided_slice %67 {offsets = [0, 0], sizes = [2, 16], strides = [1, 1]} : vector<16x16xf32> to vector<2x16xf32>
    %cst_190 = arith.constant dense<0.000000e+00> : vector<2x16xf32>
    %581 = tpu.matmul %576, %19, %cst_190 {dimension_numbers = #tpu.dot_dimension_numbers<[1], [0], [0], [1], [0, 0, 1, 1], [], []>} : vector<2x16xf32>, vector<16x16xf32>, vector<2x16xf32> -> vector<2x16xf32>
    %582 = arith.addf %580, %581 : vector<2x16xf32>
    %583 = vector.extract_strided_slice %74 {offsets = [0, 0], sizes = [2, 16], strides = [1, 1]} : vector<16x16xf32> to vector<2x16xf32>
    %cst_191 = arith.constant dense<0.000000e+00> : vector<2x16xf32>
    %584 = tpu.matmul %576, %21, %cst_191 {dimension_numbers = #tpu.dot_dimension_numbers<[1], [0], [0], [1], [0, 0, 1, 1], [], []>} : vector<2x16xf32>, vector<16x16xf32>, vector<2x16xf32> -> vector<2x16xf32>
    %585 = arith.addf %583, %584 : vector<2x16xf32>
    %586 = vector.extract_strided_slice %81 {offsets = [0, 0], sizes = [2, 16], strides = [1, 1]} : vector<16x16xf32> to vector<2x16xf32>
    %cst_192 = arith.constant dense<0.000000e+00> : vector<2x16xf32>
    %587 = tpu.matmul %576, %23, %cst_192 {dimension_numbers = #tpu.dot_dimension_numbers<[1], [0], [0], [1], [0, 0, 1, 1], [], []>} : vector<2x16xf32>, vector<16x16xf32>, vector<2x16xf32> -> vector<2x16xf32>
    %588 = arith.addf %586, %587 : vector<2x16xf32>
    %589 = arith.negf %579 : vector<2x16xf32>
    %590 = math.exp %589 : vector<2x16xf32>
    %cst_193 = arith.constant 1.000000e+00 : f32
    %591 = vector.broadcast %cst_193 : f32 to vector<2x16xf32>
    %592 = arith.addf %591, %590 : vector<2x16xf32>
    %593 = arith.divf %591, %592 : vector<2x16xf32>
    %594 = arith.negf %582 : vector<2x16xf32>
    %595 = math.exp %594 : vector<2x16xf32>
    %cst_194 = arith.constant 1.000000e+00 : f32
    %596 = vector.broadcast %cst_194 : f32 to vector<2x16xf32>
    %597 = arith.addf %596, %595 : vector<2x16xf32>
    %598 = arith.divf %596, %597 : vector<2x16xf32>
    %599 = math.tanh %585 : vector<2x16xf32>
    %600 = arith.negf %588 : vector<2x16xf32>
    %601 = math.exp %600 : vector<2x16xf32>
    %cst_195 = arith.constant 1.000000e+00 : f32
    %602 = vector.broadcast %cst_195 : f32 to vector<2x16xf32>
    %603 = arith.addf %602, %601 : vector<2x16xf32>
    %604 = arith.divf %602, %603 : vector<2x16xf32>
    %605 = arith.mulf %598, %574 : vector<2x16xf32>
    %606 = arith.mulf %593, %599 : vector<2x16xf32>
    %607 = arith.addf %605, %606 : vector<2x16xf32>
    %608 = math.tanh %607 : vector<2x16xf32>
    %609 = arith.mulf %604, %608 : vector<2x16xf32>
    %610 = tpu.concatenate %114, %147, %180, %213, %246, %279, %312, %345 in 0 : vector<2x16xf32>, vector<2x16xf32>, vector<2x16xf32>, vector<2x16xf32>, vector<2x16xf32>, vector<2x16xf32>, vector<2x16xf32>, vector<2x16xf32> -> vector<16x16xf32>
    %611 = tpu.concatenate %609, %576, %543, %510, %477, %444, %411, %378 in 0 : vector<2x16xf32>, vector<2x16xf32>, vector<2x16xf32>, vector<2x16xf32>, vector<2x16xf32>, vector<2x16xf32>, vector<2x16xf32>, vector<2x16xf32> -> vector<16x16xf32>
    %c0_196 = arith.constant 0 : index
    %c0_197 = arith.constant 0 : index
    %612 = vector.load %arg8[%c0_196, %c0_197] : memref<16x8xf32, #tpu.memory_space<vmem>>, vector<16x8xf32>
    %cst_198 = arith.constant dense<0.000000e+00> : vector<16x8xf32>
    %613 = tpu.matmul %610, %612, %cst_198 {dimension_numbers = #tpu.dot_dimension_numbers<[1], [0], [0], [1], [0, 0, 1, 1], [], []>} : vector<16x16xf32>, vector<16x8xf32>, vector<16x8xf32> -> vector<16x8xf32>
    %c0_199 = arith.constant 0 : index
    %c0_200 = arith.constant 0 : index
    %614 = vector.load %arg9[%c0_199, %c0_200] : memref<16x8xf32, #tpu.memory_space<vmem>>, vector<16x8xf32>
    %cst_201 = arith.constant dense<0.000000e+00> : vector<16x8xf32>
    %615 = tpu.matmul %611, %614, %cst_201 {dimension_numbers = #tpu.dot_dimension_numbers<[1], [0], [0], [1], [0, 0, 1, 1], [], []>} : vector<16x16xf32>, vector<16x8xf32>, vector<16x8xf32> -> vector<16x8xf32>
    %616 = arith.addf %613, %615 : vector<16x8xf32>
    %c0_202 = arith.constant 0 : index
    %c0_203 = arith.constant 0 : index
    %617 = vector.load %arg10[%c0_202, %c0_203] : memref<1x8xf32, #tpu.memory_space<vmem>>, vector<1x8xf32>
    %618 = vector.broadcast %617 : vector<1x8xf32> to vector<16x8xf32>
    %619 = arith.addf %616, %618 : vector<16x8xf32>
    %c0_204 = arith.constant 0 : index
    %c0_205 = arith.constant 0 : index
    %620 = vector.load %arg16[%c0_204, %c0_205] : memref<16x8xf32, #tpu.memory_space<vmem>>, vector<16x8xf32>
    tpu.vector_store %arg16[%c0_204, %c0_205], %619 {strides = array<i32>} : memref<16x8xf32, #tpu.memory_space<vmem>>, vector<16x8xf32>,
    %c0_206 = arith.constant 0 : index
    %c0_207 = arith.constant 0 : index
    %621 = vector.load %arg11[%c0_206, %c0_207] : memref<8x8xf32, #tpu.memory_space<vmem>>, vector<8x8xf32>
    %622 = vector.extract_strided_slice %619 {offsets = [0, 0], sizes = [2, 8], strides = [1, 1]} : vector<16x8xf32> to vector<2x8xf32>
    %c0_208 = arith.constant 0 : index
    %c0_209 = arith.constant 0 : index
    %623 = vector.load %arg12[%c0_208, %c0_209] : memref<1x8xf32, #tpu.memory_space<vmem>>, vector<1x8xf32>
    %624 = vector.broadcast %623 : vector<1x8xf32> to vector<2x8xf32>
    %625 = arith.addf %622, %624 : vector<2x8xf32>
    %626 = vector.shape_cast %625 : vector<2x8xf32> to vector<2x8x1xf32>
    %627 = vector.shape_cast %621 : vector<8x8xf32> to vector<1x8x8xf32>
    %628 = vector.broadcast %626 : vector<2x8x1xf32> to vector<2x8x8xf32>
    %629 = vector.broadcast %627 : vector<1x8x8xf32> to vector<2x8x8xf32>
    %630 = arith.addf %628, %629 : vector<2x8x8xf32>
    %cst_210 = arith.constant dense<0xFF800000> : vector<2x8xf32>
    %631 = vector.multi_reduction <maximumf>, %630, %cst_210 [1] : vector<2x8x8xf32> to vector<2x8xf32>
    %632 = vector.shape_cast %631 : vector<2x8xf32> to vector<2x1x8xf32>
    %633 = vector.broadcast %632 : vector<2x1x8xf32> to vector<2x8x8xf32>
    %634 = arith.subf %630, %633 : vector<2x8x8xf32>
    %635 = math.exp %634 : vector<2x8x8xf32>
    %cst_211 = arith.constant dense<0.000000e+00> : vector<2x8xf32>
    %636 = vector.multi_reduction <add>, %635, %cst_211 [1] : vector<2x8x8xf32> to vector<2x8xf32>
    %637 = math.log %636 : vector<2x8xf32>
    %638 = arith.addf %631, %637 : vector<2x8xf32>
    %639 = vector.extract_strided_slice %619 {offsets = [2, 0], sizes = [2, 8], strides = [1, 1]} : vector<16x8xf32> to vector<2x8xf32>
    %640 = arith.addf %638, %639 : vector<2x8xf32>
    %641 = vector.shape_cast %640 : vector<2x8xf32> to vector<2x8x1xf32>
    %642 = vector.shape_cast %621 : vector<8x8xf32> to vector<1x8x8xf32>
    %643 = vector.broadcast %641 : vector<2x8x1xf32> to vector<2x8x8xf32>
    %644 = vector.broadcast %642 : vector<1x8x8xf32> to vector<2x8x8xf32>
    %645 = arith.addf %643, %644 : vector<2x8x8xf32>
    %cst_212 = arith.constant dense<0xFF800000> : vector<2x8xf32>
    %646 = vector.multi_reduction <maximumf>, %645, %cst_212 [1] : vector<2x8x8xf32> to vector<2x8xf32>
    %647 = vector.shape_cast %646 : vector<2x8xf32> to vector<2x1x8xf32>
    %648 = vector.broadcast %647 : vector<2x1x8xf32> to vector<2x8x8xf32>
    %649 = arith.subf %645, %648 : vector<2x8x8xf32>
    %650 = math.exp %649 : vector<2x8x8xf32>
    %cst_213 = arith.constant dense<0.000000e+00> : vector<2x8xf32>
    %651 = vector.multi_reduction <add>, %650, %cst_213 [1] : vector<2x8x8xf32> to vector<2x8xf32>
    %652 = math.log %651 : vector<2x8xf32>
    %653 = arith.addf %646, %652 : vector<2x8xf32>
    %654 = vector.extract_strided_slice %619 {offsets = [4, 0], sizes = [2, 8], strides = [1, 1]} : vector<16x8xf32> to vector<2x8xf32>
    %655 = arith.addf %653, %654 : vector<2x8xf32>
    %656 = vector.shape_cast %655 : vector<2x8xf32> to vector<2x8x1xf32>
    %657 = vector.shape_cast %621 : vector<8x8xf32> to vector<1x8x8xf32>
    %658 = vector.broadcast %656 : vector<2x8x1xf32> to vector<2x8x8xf32>
    %659 = vector.broadcast %657 : vector<1x8x8xf32> to vector<2x8x8xf32>
    %660 = arith.addf %658, %659 : vector<2x8x8xf32>
    %cst_214 = arith.constant dense<0xFF800000> : vector<2x8xf32>
    %661 = vector.multi_reduction <maximumf>, %660, %cst_214 [1] : vector<2x8x8xf32> to vector<2x8xf32>
    %662 = vector.shape_cast %661 : vector<2x8xf32> to vector<2x1x8xf32>
    %663 = vector.broadcast %662 : vector<2x1x8xf32> to vector<2x8x8xf32>
    %664 = arith.subf %660, %663 : vector<2x8x8xf32>
    %665 = math.exp %664 : vector<2x8x8xf32>
    %cst_215 = arith.constant dense<0.000000e+00> : vector<2x8xf32>
    %666 = vector.multi_reduction <add>, %665, %cst_215 [1] : vector<2x8x8xf32> to vector<2x8xf32>
    %667 = math.log %666 : vector<2x8xf32>
    %668 = arith.addf %661, %667 : vector<2x8xf32>
    %669 = vector.extract_strided_slice %619 {offsets = [6, 0], sizes = [2, 8], strides = [1, 1]} : vector<16x8xf32> to vector<2x8xf32>
    %670 = arith.addf %668, %669 : vector<2x8xf32>
    %671 = vector.shape_cast %670 : vector<2x8xf32> to vector<2x8x1xf32>
    %672 = vector.shape_cast %621 : vector<8x8xf32> to vector<1x8x8xf32>
    %673 = vector.broadcast %671 : vector<2x8x1xf32> to vector<2x8x8xf32>
    %674 = vector.broadcast %672 : vector<1x8x8xf32> to vector<2x8x8xf32>
    %675 = arith.addf %673, %674 : vector<2x8x8xf32>
    %cst_216 = arith.constant dense<0xFF800000> : vector<2x8xf32>
    %676 = vector.multi_reduction <maximumf>, %675, %cst_216 [1] : vector<2x8x8xf32> to vector<2x8xf32>
    %677 = vector.shape_cast %676 : vector<2x8xf32> to vector<2x1x8xf32>
    %678 = vector.broadcast %677 : vector<2x1x8xf32> to vector<2x8x8xf32>
    %679 = arith.subf %675, %678 : vector<2x8x8xf32>
    %680 = math.exp %679 : vector<2x8x8xf32>
    %cst_217 = arith.constant dense<0.000000e+00> : vector<2x8xf32>
    %681 = vector.multi_reduction <add>, %680, %cst_217 [1] : vector<2x8x8xf32> to vector<2x8xf32>
    %682 = math.log %681 : vector<2x8xf32>
    %683 = arith.addf %676, %682 : vector<2x8xf32>
    %684 = vector.extract_strided_slice %619 {offsets = [8, 0], sizes = [2, 8], strides = [1, 1]} : vector<16x8xf32> to vector<2x8xf32>
    %685 = arith.addf %683, %684 : vector<2x8xf32>
    %686 = vector.shape_cast %685 : vector<2x8xf32> to vector<2x8x1xf32>
    %687 = vector.shape_cast %621 : vector<8x8xf32> to vector<1x8x8xf32>
    %688 = vector.broadcast %686 : vector<2x8x1xf32> to vector<2x8x8xf32>
    %689 = vector.broadcast %687 : vector<1x8x8xf32> to vector<2x8x8xf32>
    %690 = arith.addf %688, %689 : vector<2x8x8xf32>
    %cst_218 = arith.constant dense<0xFF800000> : vector<2x8xf32>
    %691 = vector.multi_reduction <maximumf>, %690, %cst_218 [1] : vector<2x8x8xf32> to vector<2x8xf32>
    %692 = vector.shape_cast %691 : vector<2x8xf32> to vector<2x1x8xf32>
    %693 = vector.broadcast %692 : vector<2x1x8xf32> to vector<2x8x8xf32>
    %694 = arith.subf %690, %693 : vector<2x8x8xf32>
    %695 = math.exp %694 : vector<2x8x8xf32>
    %cst_219 = arith.constant dense<0.000000e+00> : vector<2x8xf32>
    %696 = vector.multi_reduction <add>, %695, %cst_219 [1] : vector<2x8x8xf32> to vector<2x8xf32>
    %697 = math.log %696 : vector<2x8xf32>
    %698 = arith.addf %691, %697 : vector<2x8xf32>
    %699 = vector.extract_strided_slice %619 {offsets = [10, 0], sizes = [2, 8], strides = [1, 1]} : vector<16x8xf32> to vector<2x8xf32>
    %700 = arith.addf %698, %699 : vector<2x8xf32>
    %701 = vector.shape_cast %700 : vector<2x8xf32> to vector<2x8x1xf32>
    %702 = vector.shape_cast %621 : vector<8x8xf32> to vector<1x8x8xf32>
    %703 = vector.broadcast %701 : vector<2x8x1xf32> to vector<2x8x8xf32>
    %704 = vector.broadcast %702 : vector<1x8x8xf32> to vector<2x8x8xf32>
    %705 = arith.addf %703, %704 : vector<2x8x8xf32>
    %cst_220 = arith.constant dense<0xFF800000> : vector<2x8xf32>
    %706 = vector.multi_reduction <maximumf>, %705, %cst_220 [1] : vector<2x8x8xf32> to vector<2x8xf32>
    %707 = vector.shape_cast %706 : vector<2x8xf32> to vector<2x1x8xf32>
    %708 = vector.broadcast %707 : vector<2x1x8xf32> to vector<2x8x8xf32>
    %709 = arith.subf %705, %708 : vector<2x8x8xf32>
    %710 = math.exp %709 : vector<2x8x8xf32>
    %cst_221 = arith.constant dense<0.000000e+00> : vector<2x8xf32>
    %711 = vector.multi_reduction <add>, %710, %cst_221 [1] : vector<2x8x8xf32> to vector<2x8xf32>
    %712 = math.log %711 : vector<2x8xf32>
    %713 = arith.addf %706, %712 : vector<2x8xf32>
    %714 = vector.extract_strided_slice %619 {offsets = [12, 0], sizes = [2, 8], strides = [1, 1]} : vector<16x8xf32> to vector<2x8xf32>
    %715 = arith.addf %713, %714 : vector<2x8xf32>
    %716 = vector.shape_cast %715 : vector<2x8xf32> to vector<2x8x1xf32>
    %717 = vector.shape_cast %621 : vector<8x8xf32> to vector<1x8x8xf32>
    %718 = vector.broadcast %716 : vector<2x8x1xf32> to vector<2x8x8xf32>
    %719 = vector.broadcast %717 : vector<1x8x8xf32> to vector<2x8x8xf32>
    %720 = arith.addf %718, %719 : vector<2x8x8xf32>
    %cst_222 = arith.constant dense<0xFF800000> : vector<2x8xf32>
    %721 = vector.multi_reduction <maximumf>, %720, %cst_222 [1] : vector<2x8x8xf32> to vector<2x8xf32>
    %722 = vector.shape_cast %721 : vector<2x8xf32> to vector<2x1x8xf32>
    %723 = vector.broadcast %722 : vector<2x1x8xf32> to vector<2x8x8xf32>
    %724 = arith.subf %720, %723 : vector<2x8x8xf32>
    %725 = math.exp %724 : vector<2x8x8xf32>
    %cst_223 = arith.constant dense<0.000000e+00> : vector<2x8xf32>
    %726 = vector.multi_reduction <add>, %725, %cst_223 [1] : vector<2x8x8xf32> to vector<2x8xf32>
    %727 = math.log %726 : vector<2x8xf32>
    %728 = arith.addf %721, %727 : vector<2x8xf32>
    %729 = vector.extract_strided_slice %619 {offsets = [14, 0], sizes = [2, 8], strides = [1, 1]} : vector<16x8xf32> to vector<2x8xf32>
    %730 = arith.addf %728, %729 : vector<2x8xf32>
    %c0_224 = arith.constant 0 : index
    %c0_225 = arith.constant 0 : index
    %731 = vector.load %arg13[%c0_224, %c0_225] : memref<1x8xf32, #tpu.memory_space<vmem>>, vector<1x8xf32>
    %732 = vector.broadcast %731 : vector<1x8xf32> to vector<2x8xf32>
    %733 = arith.addf %730, %732 : vector<2x8xf32>
    %cst_226 = arith.constant dense<0xFF800000> : vector<2xf32>
    %734 = vector.multi_reduction <maximumf>, %733, %cst_226 [1] : vector<2x8xf32> to vector<2xf32>
    %735 = vector.shape_cast %734 : vector<2xf32> to vector<2x1xf32>
    %736 = vector.broadcast %735 : vector<2x1xf32> to vector<2x8xf32>
    %737 = arith.subf %733, %736 : vector<2x8xf32>
    %738 = math.exp %737 : vector<2x8xf32>
    %cst_227 = arith.constant dense<0.000000e+00> : vector<2xf32>
    %739 = vector.multi_reduction <add>, %738, %cst_227 [1] : vector<2x8xf32> to vector<2xf32>
    %740 = vector.shape_cast %739 : vector<2xf32> to vector<2x1xf32>
    %741 = math.log %740 : vector<2x1xf32>
    %742 = arith.addf %735, %741 : vector<2x1xf32>
    %c0_228 = arith.constant 0 : index
    %c0_229 = arith.constant 0 : index
    %743 = vector.load %arg17[%c0_228, %c0_229] : memref<2x1xf32, #tpu.memory_space<vmem>>, vector<2x1xf32>
    tpu.vector_store %arg17[%c0_228, %c0_229], %742 {strides = array<i32>} : memref<2x1xf32, #tpu.memory_space<vmem>>, vector<2x1xf32>,
    return
  }
}

</mosaic_0001>

<bundles_post_ra>
// kernel: bilstm_crf_forward.1
= control target key start
LH: loop header
LB: loop body
LE: loop exit
PB: predicated region body
PF: predicated region fallthrough
CT: control target
= control target key end

     0   :  { %s9392_s0 = inlined_call_operand.vmem [shape: s32[16,1], index: 0, kind: input, shape index: {}]   ;;  %s9393_s1 = inlined_call_operand.vmem [shape: f32[20,32], index: 1, kind: input, shape index: {}]   ;;  %s9394_s2 = inlined_call_operand.vmem [shape: f32[4,32,16], index: 2, kind: input, shape index: {}]   ;;  %s9395_s3 = inlined_call_operand.vmem [shape: f32[4,16,16], index: 3, kind: input, shape index: {}]   ;;  %s9396_s4 = inlined_call_operand.vmem [shape: f32[4,1,16], index: 4, kind: input, shape index: {}]   ;;  %s9397_s5 = inlined_call_operand.vmem [shape: f32[4,32,16], index: 5, kind: input, shape index: {}]   ;;  %s9398_s6 = inlined_call_operand.vmem [shape: f32[4,16,16], index: 6, kind: input, shape index: {}]   ;;  %s9399_s7 = inlined_call_operand.vmem [shape: f32[4,1,16], index: 7, kind: input, shape index: {}]   ;;  %s9400_s8 = inlined_call_operand.vmem [shape: f32[16,8], index: 8, kind: input, shape index: {}]   ;;  %s9401_s9 = inlined_call_operand.vmem [shape: f32[16,8], index: 9, kind: input, shape index: {}]   ;;  %s9402_s10 = inlined_call_operand.vmem [shape: f32[1,8], index: 10, kind: input, shape index: {}]   ;;  %s9403_s11 = inlined_call_operand.vmem [shape: f32[8,8], index: 11, kind: input, shape index: {}]   ;;  %s9404_s12 = inlined_call_operand.vmem [shape: f32[1,8], index: 12, kind: input, shape index: {}]   ;;  %s9405_s13 = inlined_call_operand.vmem [shape: f32[1,8], index: 13, kind: input, shape index: {}]   ;;  %s9406_s14 = inlined_call_operand.vmem [shape: f32[2,16], index: 14, kind: input, shape index: {}]   ;;  %s9407_s15 = inlined_call_operand.vmem [shape: f32[2,16], index: 15, kind: input, shape index: {}]   ;;  %s9408_s16 = inlined_call_operand.hbm [shape: f32[16,8], index: 16, kind: output, shape index: {0}]   ;;  %s9409_s17 = inlined_call_operand.vmem [shape: f32[2,1], index: 17, kind: output, shape index: {1}]  }
   0x1   :  { %9412 = sst [smem:[#allocation5_spill]] %s9392_s0 }
   0x2   :  { %9413 = sst [smem:[#allocation6_spill]] %s9393_s1 }
   0x3   :  { %9414 = sst [smem:[#allocation7_spill]] %s9403_s11 }
   0x4   :  { %s9415_s26 = sld [smem:[#allocation5_spill]]  ;;  %s9416_s11 = sld [smem:[#allocation6_spill]]  ;;  %v8386_v2 = vmov 0  }
   0x5   :  { %8043 = vset.pattern.permute.xlu0 %v8386_v2 }
   0xa   :  { %v56_v0 = vld [vmem:[%s9415_s26] sm:$0xff]  ;;  %v73_v3 = vld [vmem:[%s9416_s11 + $0x8] sm:$0xff] }
   0xb   :  { %v72_v1 = vld [vmem:[%s9416_s11] sm:$0xff] }
   0xc   :  { %23 = vsyncpa [#allocation3], 0  ;;  %61 = vperm.xlu0 %8043, %v56_v0   ;;  %v7766_v4 = vpack.c.bf16 %v73_v3, %v72_v1  ;;  %v57_v5 = vld [vmem:[%s9415_s26 + $0x8] sm:$0xff]  ;;  %v74_v6 = vld [vmem:[%s9416_s11 + $0x10] sm:$0xf]  ;;  %vm82_vm0 = vcmask 1043456   ;;  %v58_v16 = vlaneseq }
   0xd   :  { %v185_v7 = vld [vmem:[%s9394_s2] sm:$0xff]  ;;  %v186_v8 = vld [vmem:[%s9394_s2 + $0x8] sm:$0xff]  ;;  %v187_v12 = vld [vmem:[%s9394_s2 + $0x10] sm:$0xff]  ;;  %vm75_vm1 = vcmask 162816   ;;  %v8387_v19 = vmov 0.0   ;;  %vm196_vm4 = vcmask 261120  }
   0xe   :  { %7767 = vmatprep.subr.bf16.mxu0 %v7766_v4  ;;  %v6784_v9 = vld [vmem:[%s9394_s2 + $0x20] sm:$0xff]  ;;  %v7770_v10 = vpack.c.bf16 %v186_v8, %v185_v7  ;;  %v6785_v11 = vld [vmem:[%s9394_s2 + $0x28] sm:$0xff]  ;;  %v188_v13 = vld [vmem:[%s9394_s2 + $0x18] sm:$0xff]  ;;  %v59_v17 = vand.u32 127, %v58_v16  ;;  %v8388_v3 = vmov 0.0|0.0   ;;  %vm892_vm5 = vcmask 130048  }
   0xf   :  { %7769 = vmatpush3.bf16.msra.mxu0 %v7766_v4  ;;  %v7778_v14 = vpack.c.bf16 %v6785_v11, %v6784_v9  ;;  %v7774_v15 = vpack.c.bf16 %v188_v13, %v187_v12  ;;  %v6786_v21 = vld [vmem:[%s9394_s2 + $0x30] sm:$0xff]  ;;  %v6787_v22 = vld [vmem:[%s9394_s2 + $0x38] sm:$0xff]  ;;  %v6792_v26 = vld [vmem:[%s9394_s2 + $0x40] sm:$0xff]  ;;  %vm8389_vm6 = vmmov 0   ;;  %vm6066_vm7 = vcmask 1041408   ;;  %s9417_s29 = sld [smem:[#allocation7_spill]] }
  0x10   :  { %64 = vperm.xlu0 %8043, %v57_v5   ;;  %7211 = vmatprep.subr.msk.mxu0 %vm82_vm0, %v74_v6  ;;  %v7782_v24 = vpack.c.bf16 %v6787_v22, %v6786_v21  ;;  %v6793_v27 = vld [vmem:[%s9394_s2 + $0x48] sm:$0xff]  ;;  %v6800_v28 = vld [vmem:[%s9394_s2 + $0x60] sm:$0xff]  ;;  %v6794_v32 = vld [vmem:[%s9394_s2 + $0x50] sm:$0xff]  ;;  %vm6069_vm8 = vcmask 1045504   ;;  %vm6255_vm9 = vcmask 64512   ;;  %vm6714_vm10 = vcmask 1041409  }
  0x11   :  { %7771 = vmatprep.subr.bf16.mxu1 %v7770_v10  ;;  %v7786_v29 = vpack.c.bf16 %v6793_v27, %v6792_v26  ;;  %v6801_v30 = vld [vmem:[%s9394_s2 + $0x68] sm:$0xff]  ;;  %v6795_v33 = vld [vmem:[%s9394_s2 + $0x58] sm:$0xff]  ;;  %v6802_v34 = vld [vmem:[%s9394_s2 + $0x70] sm:$0xff]  ;;  %vm6717_vm11 = vcmask 58368  }
  0x12   :  { %7773 = vmatpush3.bf16.msra.mxu1 %v7770_v10  ;;  %v7794_v31 = vpack.c.bf16 %v6801_v30, %v6800_v28  ;;  %v6803_v35 = vld [vmem:[%s9394_s2 + $0x78] sm:$0xff]  ;;  %v542_v38 = vld [vmem:[%s9397_s5] sm:$0xff]  ;;  %v7790_v39 = vpack.c.bf16 %v6795_v33, %v6794_v32  ;;  %v543_v41 = vld [vmem:[%s9397_s5 + $0x8] sm:$0xff] }
  0x13   :  { %7212 = vmatpush3.msk.msra.mxu0 %vm82_vm0, %v74_v6  ;;  %7775 = vmatprep.subr.bf16.mxu1 %v7774_v15  ;;  %v7798_v40 = vpack.c.bf16 %v6803_v35, %v6802_v34  ;;  %v6811_v42 = vld [vmem:[%s9397_s5 + $0x20] sm:$0xff]  ;;  %v6812_v43 = vld [vmem:[%s9397_s5 + $0x28] sm:$0xff]  ;;  %v7802_v44 = vpack.c.bf16 %v543_v41, %v542_v38  ;;  %v544_v46 = vld [vmem:[%s9397_s5 + $0x10] sm:$0xff] }
  0x14   :  { %7779 = vmatprep.subr.bf16.mxu0 %v7778_v14  ;;  %v7810_v45 = vpack.c.bf16 %v6812_v43, %v6811_v42  ;;  %v545_v47 = vld [vmem:[%s9397_s5 + $0x18] sm:$0xff]  ;;  %v6813_v48 = vld [vmem:[%s9397_s5 + $0x30] sm:$0xff]  ;;  %v6819_v52 = vld [vmem:[%s9397_s5 + $0x40] sm:$0xff] }
  0x15   :  { %v6814_v49 = vld [vmem:[%s9397_s5 + $0x38] sm:$0xff]  ;;  %v7806_v50 = vpack.c.bf16 %v545_v47, %v544_v46  ;;  %v6820_v53 = vld [vmem:[%s9397_s5 + $0x48] sm:$0xff]  ;;  %v6827_v54 = vld [vmem:[%s9397_s5 + $0x60] sm:$0xff] }
  0x16   :  { %7777 = vmatpush3.bf16.msra.mxu1 %v7774_v15  ;;  %v7814_v51 = vpack.c.bf16 %v6814_v49, %v6813_v48  ;;  %v6828_v55 = vld [vmem:[%s9397_s5 + $0x68] sm:$0xff]  ;;  %v7818_v56 = vpack.c.bf16 %v6820_v53, %v6819_v52  ;;  %v6821_v58 = vld [vmem:[%s9397_s5 + $0x50] sm:$0xff]  ;;  %v6822_v59 = vld [vmem:[%s9397_s5 + $0x58] sm:$0xff] }
  0x17   :  { %7787 = vmatprep.subr.bf16.mxu1 %v7786_v29  ;;  %v7826_v57 = vpack.c.bf16 %v6828_v55, %v6827_v54  ;;  %v6829_v60 = vld [vmem:[%s9397_s5 + $0x70] sm:$0xff]  ;;  %v6830_v61 = vld [vmem:[%s9397_s5 + $0x78] sm:$0xff]  ;;  %v7822_v62 = vpack.c.bf16 %v6822_v59, %v6821_v58  ;;  %v161_v0 = vld [vmem:[%s9395_s3] sm:$0xff] }
  0x18   :  { %v7830_v63 = vpack.c.bf16 %v6830_v61, %v6829_v60  ;;  %v162_v1 = vld [vmem:[%s9395_s3 + $0x8] sm:$0xff]  ;;  %v6769_v4 = vld [vmem:[%s9395_s3 + $0x10] sm:$0xff]  ;;  %v6770_v5 = vld [vmem:[%s9395_s3 + $0x18] sm:$0xff] }
  0x19   :  { %v8627_v2 = vpack.c.bf16 %v162_v1, %v161_v0  ;;  %v8645_v6 = vld [vmem:[%s9406_s14] sm:$0x3]  ;;  %v8647_v7 = vpack.c.bf16 %v6770_v5, %v6769_v4  ;;  %v6772_v9 = vld [vmem:[%s9395_s3 + $0x28] sm:$0xff]  ;;  %v6773_v11 = vld [vmem:[%s9395_s3 + $0x30] sm:$0xff] }
  0x1a   :  { %v6771_v8 = vld [vmem:[%s9395_s3 + $0x20] sm:$0xff]  ;;  %v6774_v12 = vld [vmem:[%s9395_s3 + $0x38] sm:$0xff] }
  0x1b   :  { %v8667_v10 = vpack.c.bf16 %v6772_v9, %v6771_v8  ;;  %v8681_v13 = vpack.c.bf16 %v6774_v12, %v6773_v11  ;;  %v6789_v15 = vld [vmem:[%s9396_s4 + $0x1] ss:$0 sm:$0xff]  ;;  %v8719_v32 = vld [vmem:[%s9399_s7] ss:$0 sm:$0xff]  ;;  %v8746_v42 = vld [vmem:[%s9399_s7 + $0x3] ss:$0 sm:$0xff] }
  0x1c   :  { %v8726_v34 = vld [vmem:[%s9399_s7 + $0x1] ss:$0 sm:$0xff] }
  0x8b   :  { %v62_v18 = vpop.permute.xlu0 %61 }
  0x8c   :  { %vm66_vm2 = vcmp.eq.s32.totalorder %v62_v18, %v59_v17 }
  0x8d   :  { %v6764_v20 = vsel %vm66_vm2, 1.0, %v8387_v19 }
  0x8e   :  { %7213 = vmatprep.mubr.msk.f32.mxu0 %vm75_vm1, %v6764_v20 }
  0x8f   :  { %v65_v23 = vpop.permute.xlu0 %64 }
  0x90   :  { %vm67_vm3 = vcmp.eq.s32.totalorder %v65_v23, %v59_v17 }
  0x91   :  { %v6765_v25 = vsel %vm67_vm3, 1.0, %v8387_v19 }
  0x92   :  { %7214 = vmatmul.mubr.msk.f32.vlgmr.msra.gmra.mrb[0].mxu0 %vm75_vm1, %v6765_v25  ;;  %v6805_v25 = vld [vmem:[%s9396_s4 + $0x3] ss:$0 sm:$0xff] }
  0x93   :  { %7781 = vmatpush3.bf16.msra.mxu0 %v7778_v14  ;;  %v6781_v14 = vld [vmem:[%s9396_s4] ss:$0 sm:$0xff] }
  0x94   :  { %7783 = vmatprep.subr.bf16.mxu0 %v7782_v24 }
  0x97   :  { %7785 = vmatpush3.bf16.msra.mxu0 %v7782_v24  ;;  %v6797_v24 = vld [vmem:[%s9396_s4 + $0x2] ss:$0 sm:$0xff] }
  0x98   :  { %7795 = vmatprep.subr.bf16.mxu0 %v7794_v31 }
 0x165   :  { %v8551_v36 = vpop.f32.mrb[0].mxu0 }
 0x166   :  { %v152_v37 = vpop.f32.mrb[1].mxu0 }
 0x167   :  { %7224 = vmatprep.mubr.msk.f32.mxu1 %vm196_vm4, %v152_v37  ;;  %7235 = vmatprep.mubr.msk.f32.mxu0 %vm196_vm4, %v152_v37 }
 0x168   :  { %7225 = vmatmul.mubr.msk.f32.vlgmr.msra.gmra.mrb[0].mxu1 %vm196_vm4, %v8551_v36  ;;  %7236 = vmatmul.mubr.msk.f32.vlgmr.msra.gmra.mrb[2].mxu0 %vm196_vm4, %v8551_v36 }
 0x169   :  { %7789 = vmatpush3.bf16.msra.mxu1 %v7786_v29  ;;  %7797 = vmatpush3.bf16.msra.mxu0 %v7794_v31 }
 0x16a   :  { %7246 = vmatprep.mubr.msk.f32.mxu1 %vm196_vm4, %v152_v37  ;;  %7257 = vmatprep.mubr.msk.f32.mxu0 %vm196_vm4, %v152_v37 }
 0x16b   :  { %7791 = vmatprep.subr.bf16.mxu1 %v7790_v39  ;;  %7799 = vmatprep.subr.bf16.mxu0 %v7798_v40 }
 0x16d   :  { %7793 = vmatpush3.bf16.msra.mxu1 %v7790_v39  ;;  %7801 = vmatpush3.bf16.msra.mxu0 %v7798_v40  ;;  %v8739_v40 = vld [vmem:[%s9399_s7 + $0x2] ss:$0 sm:$0xff] }
 0x16e   :  { %7803 = vmatprep.subr.bf16.mxu1 %v7802_v44  ;;  %7811 = vmatprep.subr.bf16.mxu0 %v7810_v45 }
 0x170   :  { %7247 = vmatmul.mubr.msk.f32.vlgmr.msra.gmra.mrb[2].mxu1 %vm196_vm4, %v8551_v36  ;;  %7258 = vmatmul.mubr.msk.f32.vlgmr.msra.gmra.mrb[4].mxu0 %vm196_vm4, %v8551_v36 }
 0x171   :  { %7805 = vmatpush3.bf16.msra.mxu1 %v7802_v44  ;;  %7268 = vmatprep.mubr.msk.f32.mxu1 %vm196_vm4, %v152_v37 }
 0x172   :  { %7813 = vmatpush3.bf16.msra.mxu0 %v7810_v45  ;;  %7279 = vmatprep.mubr.msk.f32.mxu0 %vm196_vm4, %v152_v37 }
 0x173   :  { %7807 = vmatprep.subr.bf16.mxu1 %v7806_v50  ;;  %7815 = vmatprep.subr.bf16.mxu0 %v7814_v51 }
 0x175   :  { %7809 = vmatpush3.bf16.msra.mxu1 %v7806_v50 }
 0x176   :  { %7817 = vmatpush3.bf16.msra.mxu0 %v7814_v51  ;;  %7819 = vmatprep.subr.bf16.mxu1 %v7818_v56 }
 0x177   :  { %7827 = vmatprep.subr.bf16.mxu0 %v7826_v57 }
 0x178   :  { %7269 = vmatmul.mubr.msk.f32.vlgmr.msra.gmra.mrb[4].mxu1 %vm196_vm4, %v8551_v36 }
 0x179   :  { %7280 = vmatmul.mubr.msk.f32.vlgmr.msra.gmra.mrb[6].mxu0 %vm196_vm4, %v8551_v36  ;;  %7821 = vmatpush3.bf16.msra.mxu1 %v7818_v56 }
 0x17a   :  { %7290 = vmatprep.mubr.msk.f32.mxu1 %vm196_vm4, %v152_v37  ;;  %7829 = vmatpush3.bf16.msra.mxu0 %v7826_v57 }
 0x17b   :  { %7301 = vmatprep.mubr.msk.f32.mxu0 %vm196_vm4, %v152_v37  ;;  %7823 = vmatprep.subr.bf16.mxu1 %v7822_v62 }
 0x17c   :  { %7831 = vmatprep.subr.bf16.mxu0 %v7830_v63 }
 0x17d   :  { %7825 = vmatpush3.bf16.msra.mxu1 %v7822_v62 }
 0x17e   :  { %7833 = vmatpush3.bf16.msra.mxu0 %v7830_v63  ;;  %7834 = vmatprep.subr.bf16.mxu1 %v8388_v3 }
 0x17f   :  { %7846 = vmatprep.subr.bf16.mxu0 %v8388_v3 }
 0x180   :  { %7291 = vmatmul.mubr.msk.f32.vlgmr.msra.gmra.mrb[6].mxu1 %vm196_vm4, %v8551_v36 }
 0x181   :  { %7302 = vmatmul.mubr.msk.f32.vlgmr.msra.gmra.mrb[8].mxu0 %vm196_vm4, %v8551_v36  ;;  %7836 = vmatpush3.bf16.msra.mxu1 %v8627_v2 }
 0x182   :  { %7308 = vmatprep.mubr.msk.f32.mxu1 %vm8389_vm6, %v8387_v19  ;;  %7837 = vmatprep.subr.bf16.mxu1 %v8388_v3 }
 0x183   :  { %7848 = vmatpush3.bf16.msra.mxu0 %v8627_v2  ;;  %7336 = vmatprep.mubr.msk.f32.mxu0 %vm8389_vm6, %v8387_v19 }
 0x184   :  { %7309 = vmatmul.mubr.msk.f32.vlgmr.msra.gmra.mrb[8].mxu1 %vm892_vm5, %v8645_v6  ;;  %7852 = vmatprep.subr.bf16.mxu0 %v8388_v3 }
 0x185   :  { %7839 = vmatpush3.bf16.msra.mxu1 %v8647_v7  ;;  %7315 = vmatprep.mubr.msk.f32.mxu1 %vm8389_vm6, %v8387_v19 }
 0x186   :  { %7840 = vmatprep.subr.bf16.mxu1 %v8388_v3 }
 0x188   :  { %7316 = vmatmul.mubr.msk.f32.vlgmr.msra.gmra.mrb[10].mxu1 %vm892_vm5, %v8645_v6 }
 0x189   :  { %7842 = vmatpush3.bf16.msra.mxu1 %v8667_v10  ;;  %7322 = vmatprep.mubr.msk.f32.mxu1 %vm8389_vm6, %v8387_v19 }
 0x18a   :  { %7843 = vmatprep.subr.bf16.mxu1 %v8388_v3 }
 0x18c   :  { %7323 = vmatmul.mubr.msk.f32.vlgmr.msra.gmra.mrb[12].mxu1 %vm892_vm5, %v8645_v6 }
 0x18d   :  { %7845 = vmatpush3.bf16.msra.mxu1 %v8681_v13  ;;  %7329 = vmatprep.mubr.msk.f32.mxu1 %vm8389_vm6, %v8387_v19 }
 0x18e   :  { %7849 = vmatprep.subr.bf16.mxu1 %v8388_v3 }
 0x190   :  { %7330 = vmatmul.mubr.msk.f32.vlgmr.msra.gmra.mrb[14].mxu1 %vm892_vm5, %v8645_v6 }
 0x191   :  { %7851 = vmatpush3.bf16.msra.mxu1 %v8647_v7  ;;  %7343 = vmatprep.mubr.msk.f32.mxu1 %vm8389_vm6, %v8387_v19 }
 0x192   :  { %7855 = vmatprep.subr.bf16.mxu1 %v8388_v3 }
 0x23b   :  { %v7226_v17 = vpop.f32.mrb[0].mxu1  ;;  %v7237_v18 = vpop.f32.mrb[2].mxu0 }
 0x23c   :  { %v8702_v20 = vadd.f32 %v7226_v17, %v6781_v14  ;;  %v8704_v21 = vadd.f32 %v7237_v18, %v6789_v15  ;;  %v269_v22 = vpop.f32.mrb[1].mxu1  ;;  %v357_v23 = vpop.f32.mrb[3].mxu0  ;;  %v8771_v18 = vld [vmem:[%s9407_s15] sm:$0x3] }
 0x23d   :  { %v8753_v47 = vadd.f32 %v6781_v14, %v269_v22  ;;  %v8759_v52 = vadd.f32 %v6789_v15, %v357_v23 }
 0x243   :  { %v7248_v26 = vpop.f32.mrb[2].mxu1  ;;  %v7259_v27 = vpop.f32.mrb[4].mxu0 }
 0x244   :  { %v8712_v28 = vadd.f32 %v7248_v26, %v6797_v24  ;;  %v8714_v29 = vadd.f32 %v7259_v27, %v6805_v25  ;;  %v445_v30 = vpop.f32.mrb[3].mxu1  ;;  %v533_v31 = vpop.f32.mrb[5].mxu0 }
 0x245   :  { %v8762_v60 = vadd.f32 %v6797_v24, %v445_v30  ;;  %v8764_v61 = vadd.f32 %v6805_v25, %v533_v31 }
 0x24b   :  { %v8721_v33 = vpop.f32.mrb[4].mxu1 }
 0x24c   :  { %v8728_v35 = vpop.f32.mrb[6].mxu0  ;;  %v619_v36 = vpop.f32.mrb[5].mxu1 }
 0x24d   :  { %v8731_v37 = vadd.f32 %v8719_v32, %v619_v36  ;;  %v707_v38 = vpop.f32.mrb[7].mxu0 }
 0x24e   :  { %v8734_v39 = vadd.f32 %v8726_v34, %v707_v38 }
 0x253   :  { %v8741_v41 = vpop.f32.mrb[6].mxu1 }
 0x254   :  { %v8748_v43 = vpop.f32.mrb[8].mxu0  ;;  %v795_v44 = vpop.f32.mrb[7].mxu1 }
 0x255   :  { %v8751_v45 = vadd.f32 %v8739_v40, %v795_v44  ;;  %v883_v46 = vpop.f32.mrb[9].mxu0 }
 0x256   :  { %v8756_v48 = vadd.f32 %v8746_v42, %v883_v46 }
 0x257   :  { %v962_v49 = vpop.f32.mrb[8].mxu1 }
 0x258   :  { %v966_v50 = vadd.f32 %v962_v49, %v8753_v47  ;;  %v7310_v51 = vpop.f32.mrb[9].mxu1 }
 0x25a   :  { %v6839_v53 = vmul.f32 -1.442695, %v966_v50 }
 0x25b   :  { %v1033_v54 = vpop.f32.mrb[10].mxu1 }
 0x25c   :  { %8044 = vpow2.f32 %v6839_v53  ;;  %v1037_v55 = vadd.f32 %v1033_v54, %v8759_v52  ;;  %v7317_v56 = vpop.f32.mrb[11].mxu1 }
 0x25e   :  { %v6840_v57 = vmul.f32 -1.442695, %v1037_v55 }
 0x25f   :  { %v1104_v58 = vpop.f32.mrb[12].mxu1 }
 0x260   :  { %8046 = vpow2.f32 %v6840_v57  ;;  %v7324_v59 = vpop.f32.mrb[13].mxu1  ;;  %v1108_v63 = vadd.f32 %v1104_v58, %v8762_v60 }
 0x262   :  { %8048 = vtanh.f32 %v1108_v63 }
 0x263   :  { %v1175_v62 = vpop.f32.mrb[14].mxu1 }
 0x264   :  { %v1179_v0 = vadd.f32 %v1175_v62, %v8764_v61  ;;  %v7331_v1 = vpop.f32.mrb[15].mxu1 }
 0x266   :  { %v8045_v4 = vpop.eup %8044  ;;  %v6841_v5 = vmul.f32 -1.442695, %v1179_v0 }
 0x267   :  { %v1183_v8 = vadd.f32 1.0, %v8045_v4 }
 0x269   :  { %8050 = vrcp.f32 %v1183_v8 }
 0x26a   :  { %v8047_v9 = vpop.eup %8046  ;;  %8052 = vpow2.f32 %v6841_v5 }
 0x26b   :  { %v1189_v11 = vadd.f32 1.0, %v8047_v9 }
 0x26c   :  { %v8049_v12 = vpop.eup %8048 }
 0x26d   :  { %8054 = vrcp.f32 %v1189_v11 }
 0x273   :  { %v8051_v14 = vpop.eup %8050 }
 0x274   :  { %v8053_v15 = vpop.eup %8052  ;;  %v1200_v17 = vmul.f32 %v8051_v14, %v8049_v12 }
 0x275   :  { %v1196_v23 = vadd.f32 1.0, %v8053_v15 }
 0x277   :  { %v8055_v22 = vpop.eup %8054  ;;  %8056 = vrcp.f32 %v1196_v23 }
 0x278   :  { %v1199_v24 = vmul.f32 %v8055_v22, %v8771_v18 }
 0x27a   :  { %v1201_v25 = vadd.f32 %v1200_v17, %v1199_v24 }
 0x27c   :  { %8058 = vtanh.f32 %v1201_v25  ;;  %v1523_v15 = vrot.slane %v1201_v25, 6 }
 0x281   :  { %v8057_v26 = vpop.eup %8056 }
 0x286   :  { %v8059_v27 = vpop.eup %8058 }
 0x287   :  { %v8774_v30 = vmul.f32 %v8059_v27, %v8057_v26 }
 0x289   :  { %7337 = vmatmul.mubr.msk.f32.vlgmr.msra.gmra.mrb[10].mxu0 %vm892_vm5, %v8774_v30  ;;  %7344 = vmatmul.mubr.msk.f32.vlgmr.msra.gmra.mrb[16].mxu1 %vm892_vm5, %v8774_v30 }
 0x28a   :  { %7854 = vmatpush3.bf16.msra.mxu0 %v8667_v10  ;;  %7857 = vmatpush3.bf16.msra.mxu1 %v8681_v13 }
 0x28b   :  { %7350 = vmatprep.mubr.msk.f32.mxu0 %vm8389_vm6, %v8387_v19  ;;  %7357 = vmatprep.mubr.msk.f32.mxu1 %vm8389_vm6, %v8387_v19 }
 0x28c   :  { %7858 = vmatprep.subr.bf16.mxu0 %v8388_v3  ;;  %7861 = vmatprep.subr.bf16.mxu1 %v8388_v3 }
 0x28d   :  { %7351 = vmatmul.mubr.msk.f32.vlgmr.msra.gmra.mrb[12].mxu0 %vm892_vm5, %v8774_v30  ;;  %7358 = vmatmul.mubr.msk.f32.vlgmr.msra.gmra.mrb[18].mxu1 %vm892_vm5, %v8774_v30 }
 0x28e   :  { %7860 = vmatpush3.bf16.msra.mxu0 %v8627_v2  ;;  %7863 = vmatpush3.bf16.msra.mxu1 %v8647_v7 }
 0x28f   :  { %7364 = vmatprep.mubr.msk.f32.mxu0 %vm8389_vm6, %v8387_v19  ;;  %7371 = vmatprep.mubr.msk.f32.mxu1 %vm8389_vm6, %v8387_v19 }
 0x290   :  { %7864 = vmatprep.subr.bf16.mxu0 %v8388_v3  ;;  %7867 = vmatprep.subr.bf16.mxu1 %v8388_v3 }
 0x35c   :  { %v1273_v31 = vpop.f32.mrb[10].mxu0  ;;  %v1347_v36 = vpop.f32.mrb[16].mxu1 }
 0x35d   :  { %v1278_v38 = vrot.slane %v1273_v31, 6  ;;  %v1352_v44 = vrot.slane %v1347_v36, 6  ;;  %v7338_v46 = vpop.f32.mrb[11].mxu0  ;;  %v7345_v49 = vpop.f32.mrb[17].mxu1 }
 0x35f   :  { %v1280_v50 = vadd.f32 %v1278_v38, %v8753_v47  ;;  %v1354_v51 = vadd.f32 %v1352_v44, %v8759_v52 }
 0x360   :  { %v1421_v53 = vpop.f32.mrb[12].mxu0  ;;  %v1495_v54 = vpop.f32.mrb[18].mxu1 }
 0x361   :  { %v6846_v55 = vmul.f32 -1.442695, %v1280_v50  ;;  %v6847_v56 = vmul.f32 -1.442695, %v1354_v51  ;;  %v1500_v57 = vrot.slane %v1495_v54, 6  ;;  %v7352_v58 = vpop.f32.mrb[13].mxu0 }
 0x362   :  { %v7359_v59 = vpop.f32.mrb[19].mxu1  ;;  %v1426_v63 = vrot.slane %v1421_v53, 6 }
 0x363   :  { %8060 = vpow2.f32 %v6846_v55  ;;  %v1502_v62 = vadd.f32 %v1500_v57, %v8764_v61 }
 0x364   :  { %8062 = vpow2.f32 %v6847_v56  ;;  %v1428_v1 = vadd.f32 %v1426_v63, %v8762_v60 }
 0x365   :  { %v6848_v0 = vmul.f32 -1.442695, %v1502_v62 }
 0x367   :  { %8064 = vpow2.f32 %v6848_v0 }
 0x368   :  { %8066 = vtanh.f32 %v1428_v1 }
 0x36d   :  { %v8061_v4 = vpop.eup %8060 }
 0x36e   :  { %v8063_v5 = vpop.eup %8062  ;;  %v1506_v8 = vadd.f32 1.0, %v8061_v4 }
 0x36f   :  { %v1512_v9 = vadd.f32 1.0, %v8063_v5 }
 0x370   :  { %8068 = vrcp.f32 %v1506_v8 }
 0x371   :  { %8070 = vrcp.f32 %v1512_v9  ;;  %v8065_v11 = vpop.eup %8064 }
 0x372   :  { %v8067_v12 = vpop.eup %8066  ;;  %v1519_v23 = vadd.f32 1.0, %v8065_v11 }
 0x374   :  { %8072 = vrcp.f32 %v1519_v23 }
 0x37a   :  { %v8069_v14 = vpop.eup %8068 }
 0x37b   :  { %v8071_v17 = vpop.eup %8070  ;;  %v1526_v22 = vmul.f32 %v8069_v14, %v8067_v12 }
 0x37c   :  { %v1525_v24 = vmul.f32 %v8071_v17, %v1523_v15 }
 0x37e   :  { %v1527_v26 = vadd.f32 %v1526_v22, %v1525_v24  ;;  %v8073_v27 = vpop.eup %8072 }
 0x380   :  { %8074 = vtanh.f32 %v1527_v26  ;;  %v1850_v22 = vrot.slane %v1527_v26, 6 }
 0x38a   :  { %v8075_v31 = vpop.eup %8074 }
 0x38b   :  { %v8804_v36 = vmul.f32 %v8075_v31, %v8073_v27 }
 0x38d   :  { %v1531_v38 = vrot.slane %v8804_v36, 2 }
 0x38f   :  { %7365 = vmatmul.mubr.msk.f32.vlgmr.msra.gmra.mrb[14].mxu0 %vm892_vm5, %v1531_v38  ;;  %7372 = vmatmul.mubr.msk.f32.vlgmr.msra.gmra.mrb[20].mxu1 %vm892_vm5, %v1531_v38 }
 0x390   :  { %7866 = vmatpush3.bf16.msra.mxu0 %v8667_v10  ;;  %7869 = vmatpush3.bf16.msra.mxu1 %v8681_v13 }
 0x391   :  { %7378 = vmatprep.mubr.msk.f32.mxu0 %vm8389_vm6, %v8387_v19  ;;  %7385 = vmatprep.mubr.msk.f32.mxu1 %vm8389_vm6, %v8387_v19 }
 0x392   :  { %7870 = vmatprep.subr.bf16.mxu0 %v8388_v3  ;;  %7873 = vmatprep.subr.bf16.mxu1 %v8388_v3 }
 0x393   :  { %7379 = vmatmul.mubr.msk.f32.vlgmr.msra.gmra.mrb[16].mxu0 %vm892_vm5, %v1531_v38  ;;  %7386 = vmatmul.mubr.msk.f32.vlgmr.msra.gmra.mrb[22].mxu1 %vm892_vm5, %v1531_v38 }
 0x394   :  { %7872 = vmatpush3.bf16.msra.mxu0 %v8627_v2  ;;  %7875 = vmatpush3.bf16.msra.mxu1 %v8647_v7 }
 0x395   :  { %7392 = vmatprep.mubr.msk.f32.mxu0 %vm8389_vm6, %v8387_v19  ;;  %7399 = vmatprep.mubr.msk.f32.mxu1 %vm8389_vm6, %v8387_v19 }
 0x396   :  { %7876 = vmatprep.subr.bf16.mxu0 %v8388_v3  ;;  %7879 = vmatprep.subr.bf16.mxu1 %v8388_v3 }
 0x462   :  { %v1600_v25 = vpop.f32.mrb[14].mxu0  ;;  %v1674_v44 = vpop.f32.mrb[20].mxu1 }
 0x463   :  { %v1605_v46 = vrot.slane %v1600_v25, 4  ;;  %v1679_v49 = vrot.slane %v1674_v44, 4  ;;  %v7366_v50 = vpop.f32.mrb[15].mxu0  ;;  %v7373_v51 = vpop.f32.mrb[21].mxu1 }
 0x465   :  { %v1607_v53 = vadd.f32 %v1605_v46, %v8753_v47  ;;  %v1681_v54 = vadd.f32 %v1679_v49, %v8759_v52  ;;  %v6067_v49 = vsel %vm6066_vm7, %v8774_v30, %v8804_v36 }
 0x466   :  { %v1748_v55 = vpop.f32.mrb[16].mxu0  ;;  %v1822_v56 = vpop.f32.mrb[22].mxu1 }
 0x467   :  { %v6853_v57 = vmul.f32 -1.442695, %v1607_v53  ;;  %v6854_v58 = vmul.f32 -1.442695, %v1681_v54  ;;  %v1827_v59 = vrot.slane %v1822_v56, 4  ;;  %v7380_v62 = vpop.f32.mrb[17].mxu0 }
 0x468   :  { %v7387_v63 = vpop.f32.mrb[23].mxu1  ;;  %v1753_v1 = vrot.slane %v1748_v55, 4 }
 0x469   :  { %8076 = vpow2.f32 %v6853_v57  ;;  %v1829_v0 = vadd.f32 %v1827_v59, %v8764_v61 }
 0x46a   :  { %8078 = vpow2.f32 %v6854_v58  ;;  %v1755_v5 = vadd.f32 %v1753_v1, %v8762_v60 }
 0x46b   :  { %v6855_v4 = vmul.f32 -1.442695, %v1829_v0 }
 0x46d   :  { %8080 = vpow2.f32 %v6855_v4 }
 0x46e   :  { %8082 = vtanh.f32 %v1755_v5 }
 0x473   :  { %v8077_v8 = vpop.eup %8076 }
 0x474   :  { %v8079_v9 = vpop.eup %8078  ;;  %v1833_v11 = vadd.f32 1.0, %v8077_v8 }
 0x475   :  { %v1839_v12 = vadd.f32 1.0, %v8079_v9 }
 0x476   :  { %8084 = vrcp.f32 %v1833_v11 }
 0x477   :  { %8086 = vrcp.f32 %v1839_v12  ;;  %v8081_v14 = vpop.eup %8080 }
 0x478   :  { %v8083_v15 = vpop.eup %8082  ;;  %v1846_v27 = vadd.f32 1.0, %v8081_v14 }
 0x47a   :  { %8088 = vrcp.f32 %v1846_v27 }
 0x480   :  { %v8085_v17 = vpop.eup %8084 }
 0x481   :  { %v8087_v23 = vpop.eup %8086  ;;  %v1853_v24 = vmul.f32 %v8085_v17, %v8083_v15 }
 0x482   :  { %v1852_v31 = vmul.f32 %v8087_v23, %v1850_v22 }
 0x484   :  { %v8831_v38 = vadd.f32 %v1853_v24, %v1852_v31  ;;  %v8089_v25 = vpop.eup %8088 }
 0x486   :  { %8090 = vtanh.f32 %v8831_v38  ;;  %v2177_v23 = vrot.slane %v8831_v38, 6 }
 0x490   :  { %v8091_v44 = vpop.eup %8090 }
 0x491   :  { %v1856_v46 = vmul.f32 %v8091_v44, %v8089_v25 }
 0x493   :  { %v1858_v50 = vrot.slane %v1856_v46, 4  ;;  %v8838_v26 = vsel %vm82_vm0, %v6067_v49, %v1856_v46 }
 0x495   :  { %7393 = vmatmul.mubr.msk.f32.vlgmr.msra.gmra.mrb[18].mxu0 %vm892_vm5, %v1858_v50  ;;  %7400 = vmatmul.mubr.msk.f32.vlgmr.msra.gmra.mrb[24].mxu1 %vm892_vm5, %v1858_v50 }
 0x496   :  { %7878 = vmatpush3.bf16.msra.mxu0 %v8667_v10  ;;  %7881 = vmatpush3.bf16.msra.mxu1 %v8681_v13 }
 0x497   :  { %7406 = vmatprep.mubr.msk.f32.mxu0 %vm8389_vm6, %v8387_v19  ;;  %7413 = vmatprep.mubr.msk.f32.mxu1 %vm8389_vm6, %v8387_v19 }
 0x498   :  { %7882 = vmatprep.subr.bf16.mxu0 %v8388_v3  ;;  %7885 = vmatprep.subr.bf16.mxu1 %v8388_v3 }
 0x499   :  { %7407 = vmatmul.mubr.msk.f32.vlgmr.msra.gmra.mrb[20].mxu0 %vm892_vm5, %v1858_v50  ;;  %7414 = vmatmul.mubr.msk.f32.vlgmr.msra.gmra.mrb[26].mxu1 %vm892_vm5, %v1858_v50 }
 0x49a   :  { %7884 = vmatpush3.bf16.msra.mxu0 %v8627_v2  ;;  %7887 = vmatpush3.bf16.msra.mxu1 %v8647_v7 }
 0x49b   :  { %7420 = vmatprep.mubr.msk.f32.mxu0 %vm8389_vm6, %v8387_v19  ;;  %7427 = vmatprep.mubr.msk.f32.mxu1 %vm8389_vm6, %v8387_v19 }
 0x49c   :  { %7888 = vmatprep.subr.bf16.mxu0 %v8388_v3  ;;  %7891 = vmatprep.subr.bf16.mxu1 %v8388_v3 }
 0x568   :  { %v1927_v30 = vpop.f32.mrb[18].mxu0  ;;  %v2001_v36 = vpop.f32.mrb[24].mxu1 }
 0x569   :  { %v1932_v51 = vrot.slane %v1927_v30, 2  ;;  %v2006_v53 = vrot.slane %v2001_v36, 2  ;;  %v7394_v54 = vpop.f32.mrb[19].mxu0  ;;  %v7401_v55 = vpop.f32.mrb[25].mxu1 }
 0x56b   :  { %v1934_v56 = vadd.f32 %v1932_v51, %v8753_v47  ;;  %v2008_v57 = vadd.f32 %v2006_v53, %v8759_v52 }
 0x56c   :  { %v2075_v58 = vpop.f32.mrb[20].mxu0  ;;  %v2149_v59 = vpop.f32.mrb[26].mxu1 }
 0x56d   :  { %v6860_v62 = vmul.f32 -1.442695, %v1934_v56  ;;  %v6861_v63 = vmul.f32 -1.442695, %v2008_v57  ;;  %v2154_v0 = vrot.slane %v2149_v59, 2  ;;  %v7408_v1 = vpop.f32.mrb[21].mxu0 }
 0x56e   :  { %v7415_v4 = vpop.f32.mrb[27].mxu1  ;;  %v2080_v8 = vrot.slane %v2075_v58, 2 }
 0x56f   :  { %8092 = vpow2.f32 %v6860_v62  ;;  %v2156_v5 = vadd.f32 %v2154_v0, %v8764_v61 }
 0x570   :  { %8094 = vpow2.f32 %v6861_v63  ;;  %v2082_v11 = vadd.f32 %v2080_v8, %v8762_v60 }
 0x571   :  { %v6862_v9 = vmul.f32 -1.442695, %v2156_v5 }
 0x573   :  { %8096 = vpow2.f32 %v6862_v9 }
 0x574   :  { %8098 = vtanh.f32 %v2082_v11 }
 0x579   :  { %v8093_v12 = vpop.eup %8092 }
 0x57a   :  { %v8095_v14 = vpop.eup %8094  ;;  %v2160_v47 = vadd.f32 1.0, %v8093_v12 }
 0x57b   :  { %v2166_v52 = vadd.f32 1.0, %v8095_v14 }
 0x57c   :  { %8100 = vrcp.f32 %v2160_v47 }
 0x57d   :  { %8102 = vrcp.f32 %v2166_v52  ;;  %v8097_v15 = vpop.eup %8096 }
 0x57e   :  { %v8099_v17 = vpop.eup %8098  ;;  %v2173_v61 = vadd.f32 1.0, %v8097_v15 }
 0x580   :  { %8104 = vrcp.f32 %v2173_v61 }
 0x586   :  { %v8101_v22 = vpop.eup %8100 }
 0x587   :  { %v8103_v24 = vpop.eup %8102  ;;  %v2180_v27 = vmul.f32 %v8101_v22, %v8099_v17 }
 0x588   :  { %v2179_v31 = vmul.f32 %v8103_v24, %v2177_v23 }
 0x58a   :  { %v2181_v25 = vadd.f32 %v2180_v27, %v2179_v31  ;;  %v8105_v60 = vpop.eup %8104 }
 0x58c   :  { %8106 = vtanh.f32 %v2181_v25  ;;  %v2492_v14 = vrot.slane %v2181_v25, 6 }
 0x596   :  { %v8107_v44 = vpop.eup %8106 }
 0x597   :  { %v2183_v46 = vmul.f32 %v8107_v44, %v8105_v60 }
 0x599   :  { %v2185_v49 = vrot.slane %v2183_v46, 6  ;;  %v8867_v50 = vsel %vm6069_vm8, %v8838_v26, %v2183_v46 }
 0x59b   :  { %7421 = vmatmul.mubr.msk.f32.vlgmr.msra.gmra.mrb[22].mxu0 %vm892_vm5, %v2185_v49  ;;  %7428 = vmatmul.mubr.msk.f32.vlgmr.msra.gmra.mrb[28].mxu1 %vm892_vm5, %v2185_v49 }
 0x59c   :  { %7890 = vmatpush3.bf16.msra.mxu0 %v8667_v10  ;;  %7893 = vmatpush3.bf16.msra.mxu1 %v8681_v13 }
 0x59d   :  { %7434 = vmatprep.mubr.msk.f32.mxu0 %vm8389_vm6, %v8387_v19  ;;  %7441 = vmatprep.mubr.msk.f32.mxu1 %vm8389_vm6, %v8387_v19 }
 0x59e   :  { %7894 = vmatprep.subr.bf16.mxu0 %v8388_v3  ;;  %7897 = vmatprep.subr.bf16.mxu1 %v8388_v3 }
 0x59f   :  { %7435 = vmatmul.mubr.msk.f32.vlgmr.msra.gmra.mrb[24].mxu0 %vm892_vm5, %v2185_v49  ;;  %7442 = vmatmul.mubr.msk.f32.vlgmr.msra.gmra.mrb[30].mxu1 %vm892_vm5, %v2185_v49 }
 0x5a0   :  { %7896 = vmatpush3.bf16.msra.mxu0 %v8627_v2  ;;  %7899 = vmatpush3.bf16.msra.mxu1 %v8647_v7 }
 0x5a1   :  { %7448 = vmatprep.mubr.msk.f32.mxu0 %vm8389_vm6, %v8387_v19  ;;  %7455 = vmatprep.mubr.msk.f32.mxu1 %vm8389_vm6, %v8387_v19 }
 0x5a2   :  { %7900 = vmatprep.subr.bf16.mxu0 %v8388_v3  ;;  %7903 = vmatprep.subr.bf16.mxu1 %v8388_v3 }
 0x66e   :  { %v2254_v38 = vpop.f32.mrb[22].mxu0  ;;  %v2325_v26 = vpop.f32.mrb[28].mxu1 }
 0x66f   :  { %v2258_v30 = vadd.f32 %v2254_v38, %v8702_v20  ;;  %v2329_v36 = vadd.f32 %v2325_v26, %v8704_v21  ;;  %v7422_v51 = vpop.f32.mrb[23].mxu0  ;;  %v7429_v53 = vpop.f32.mrb[29].mxu1 }
 0x671   :  { %v6867_v54 = vmul.f32 -1.442695, %v2258_v30  ;;  %v6868_v55 = vmul.f32 -1.442695, %v2329_v36 }
 0x672   :  { %v2396_v56 = vpop.f32.mrb[24].mxu0  ;;  %v2467_v57 = vpop.f32.mrb[30].mxu1 }
 0x673   :  { %8108 = vpow2.f32 %v6867_v54  ;;  %v7436_v58 = vpop.f32.mrb[25].mxu0  ;;  %v7443_v59 = vpop.f32.mrb[31].mxu1  ;;  %v2471_v62 = vadd.f32 %v2467_v57, %v8714_v29  ;;  %v2400_v0 = vadd.f32 %v2396_v56, %v8712_v28 }
 0x674   :  { %8110 = vpow2.f32 %v6868_v55 }
 0x675   :  { %v6869_v63 = vmul.f32 -1.442695, %v2471_v62 }
 0x677   :  { %8112 = vpow2.f32 %v6869_v63 }
 0x678   :  { %8114 = vtanh.f32 %v2400_v0 }
 0x67d   :  { %v8109_v1 = vpop.eup %8108 }
 0x67e   :  { %v8111_v4 = vpop.eup %8110  ;;  %v2475_v5 = vadd.f32 1.0, %v8109_v1 }
 0x67f   :  { %v2481_v8 = vadd.f32 1.0, %v8111_v4 }
 0x680   :  { %8116 = vrcp.f32 %v2475_v5 }
 0x681   :  { %8118 = vrcp.f32 %v2481_v8  ;;  %v8113_v9 = vpop.eup %8112 }
 0x682   :  { %v8115_v11 = vpop.eup %8114  ;;  %v2488_v15 = vadd.f32 1.0, %v8113_v9 }
 0x684   :  { %8120 = vrcp.f32 %v2488_v15 }
 0x68a   :  { %v8117_v12 = vpop.eup %8116 }
 0x68b   :  { %v8119_v47 = vpop.eup %8118  ;;  %v2495_v52 = vmul.f32 %v8117_v12, %v8115_v11 }
 0x68c   :  { %v2494_v17 = vmul.f32 %v8119_v47, %v2492_v14 }
 0x68e   :  { %v2496_v22 = vadd.f32 %v2495_v52, %v2494_v17  ;;  %v8121_v23 = vpop.eup %8120 }
 0x690   :  { %8122 = vtanh.f32 %v2496_v22  ;;  %v2818_v9 = vrot.slane %v2496_v22, 6 }
 0x69a   :  { %v8123_v24 = vpop.eup %8122 }
 0x69b   :  { %v8893_v27 = vmul.f32 %v8123_v24, %v8121_v23 }
 0x69d   :  { %7449 = vmatmul.mubr.msk.f32.vlgmr.msra.gmra.mrb[26].mxu0 %vm892_vm5, %v8893_v27  ;;  %7456 = vmatmul.mubr.msk.f32.vlgmr.msra.gmra.mrb[32].mxu1 %vm892_vm5, %v8893_v27 }
 0x69e   :  { %7902 = vmatpush3.bf16.msra.mxu0 %v8667_v10  ;;  %7905 = vmatpush3.bf16.msra.mxu1 %v8681_v13 }
 0x69f   :  { %7462 = vmatprep.mubr.msk.f32.mxu0 %vm8389_vm6, %v8387_v19  ;;  %7469 = vmatprep.mubr.msk.f32.mxu1 %vm8389_vm6, %v8387_v19 }
 0x6a0   :  { %7906 = vmatprep.subr.bf16.mxu0 %v8388_v3  ;;  %7909 = vmatprep.subr.bf16.mxu1 %v8388_v3 }
 0x6a1   :  { %7463 = vmatmul.mubr.msk.f32.vlgmr.msra.gmra.mrb[28].mxu0 %vm892_vm5, %v8893_v27  ;;  %7470 = vmatmul.mubr.msk.f32.vlgmr.msra.gmra.mrb[34].mxu1 %vm892_vm5, %v8893_v27 }
 0x6a2   :  { %7908 = vmatpush3.bf16.msra.mxu0 %v8627_v2  ;;  %7911 = vmatpush3.bf16.msra.mxu1 %v8647_v7 }
 0x6a3   :  { %7476 = vmatprep.mubr.msk.f32.mxu0 %vm8389_vm6, %v8387_v19  ;;  %7483 = vmatprep.mubr.msk.f32.mxu1 %vm8389_vm6, %v8387_v19 }
 0x6a4   :  { %7912 = vmatprep.subr.bf16.mxu0 %v8388_v3  ;;  %7915 = vmatprep.subr.bf16.mxu1 %v8388_v3 }
 0x770   :  { %v2568_v61 = vpop.f32.mrb[26].mxu0  ;;  %v2642_v31 = vpop.f32.mrb[32].mxu1 }
 0x771   :  { %v2573_v25 = vrot.slane %v2568_v61, 6  ;;  %v2647_v60 = vrot.slane %v2642_v31, 6  ;;  %v7450_v44 = vpop.f32.mrb[27].mxu0  ;;  %v7457_v46 = vpop.f32.mrb[33].mxu1 }
 0x773   :  { %v2575_v49 = vadd.f32 %v2573_v25, %v8702_v20  ;;  %v2649_v38 = vadd.f32 %v2647_v60, %v8704_v21 }
 0x774   :  { %v2716_v26 = vpop.f32.mrb[28].mxu0  ;;  %v2790_v30 = vpop.f32.mrb[34].mxu1 }
 0x775   :  { %v6874_v36 = vmul.f32 -1.442695, %v2575_v49  ;;  %v6875_v51 = vmul.f32 -1.442695, %v2649_v38  ;;  %v2795_v53 = vrot.slane %v2790_v30, 6  ;;  %v7464_v54 = vpop.f32.mrb[29].mxu0 }
 0x776   :  { %v7471_v55 = vpop.f32.mrb[35].mxu1  ;;  %v2721_v57 = vrot.slane %v2716_v26, 6 }
 0x777   :  { %8124 = vpow2.f32 %v6874_v36  ;;  %v2797_v56 = vadd.f32 %v2795_v53, %v8714_v29 }
 0x778   :  { %8126 = vpow2.f32 %v6875_v51  ;;  %v2723_v59 = vadd.f32 %v2721_v57, %v8712_v28 }
 0x779   :  { %v6876_v58 = vmul.f32 -1.442695, %v2797_v56 }
 0x77b   :  { %8128 = vpow2.f32 %v6876_v58 }
 0x77c   :  { %8130 = vtanh.f32 %v2723_v59 }
 0x781   :  { %v8125_v62 = vpop.eup %8124 }
 0x782   :  { %v8127_v63 = vpop.eup %8126  ;;  %v2801_v0 = vadd.f32 1.0, %v8125_v62 }
 0x783   :  { %v2807_v1 = vadd.f32 1.0, %v8127_v63 }
 0x784   :  { %8132 = vrcp.f32 %v2801_v0 }
 0x785   :  { %8134 = vrcp.f32 %v2807_v1  ;;  %v8129_v4 = vpop.eup %8128 }
 0x786   :  { %v8131_v5 = vpop.eup %8130  ;;  %v2814_v14 = vadd.f32 1.0, %v8129_v4 }
 0x788   :  { %8136 = vrcp.f32 %v2814_v14 }
 0x78e   :  { %v8133_v8 = vpop.eup %8132 }
 0x78f   :  { %v8135_v11 = vpop.eup %8134  ;;  %v2821_v12 = vmul.f32 %v8133_v8, %v8131_v5 }
 0x790   :  { %v2820_v47 = vmul.f32 %v8135_v11, %v2818_v9 }
 0x792   :  { %v2822_v52 = vadd.f32 %v2821_v12, %v2820_v47  ;;  %v8137_v15 = vpop.eup %8136 }
 0x794   :  { %8138 = vtanh.f32 %v2822_v52  ;;  %v3145_v4 = vrot.slane %v2822_v52, 6 }
 0x79e   :  { %v8139_v17 = vpop.eup %8138 }
 0x79f   :  { %v8923_v23 = vmul.f32 %v8139_v17, %v8137_v15  ;;  %v172_v17 = vld [vmem:[%s9398_s6] sm:$0xff] }
 0x7a1   :  { %v2826_v24 = vrot.slane %v8923_v23, 2  ;;  %v6071_v52 = vsel %vm6066_vm7, %v8893_v27, %v8923_v23 }
 0x7a3   :  { %7477 = vmatmul.mubr.msk.f32.vlgmr.msra.gmra.mrb[30].mxu0 %vm892_vm5, %v2826_v24  ;;  %7484 = vmatmul.mubr.msk.f32.vlgmr.msra.gmra.mrb[36].mxu1 %vm892_vm5, %v2826_v24 }
 0x7a4   :  { %7914 = vmatpush3.bf16.msra.mxu0 %v8667_v10  ;;  %7917 = vmatpush3.bf16.msra.mxu1 %v8681_v13 }
 0x7a5   :  { %7490 = vmatprep.mubr.msk.f32.mxu0 %vm8389_vm6, %v8387_v19  ;;  %7497 = vmatprep.mubr.msk.f32.mxu1 %vm8389_vm6, %v8387_v19 }
 0x7a6   :  { %7918 = vmatprep.subr.bf16.mxu0 %v8388_v3  ;;  %7921 = vmatprep.subr.bf16.mxu1 %v8388_v3 }
 0x7a7   :  { %7491 = vmatmul.mubr.msk.f32.vlgmr.msra.gmra.mrb[32].mxu0 %vm892_vm5, %v2826_v24  ;;  %7498 = vmatmul.mubr.msk.f32.vlgmr.msra.gmra.mrb[38].mxu1 %vm892_vm5, %v2826_v24 }
 0x7a8   :  { %7920 = vmatpush3.bf16.msra.mxu0 %v8627_v2  ;;  %7923 = vmatpush3.bf16.msra.mxu1 %v8647_v7 }
 0x7a9   :  { %7504 = vmatprep.mubr.msk.f32.mxu0 %vm8389_vm6, %v8387_v19  ;;  %7511 = vmatprep.mubr.msk.f32.mxu1 %vm8389_vm6, %v8387_v19 }
 0x7aa   :  { %7924 = vmatprep.subr.bf16.mxu0 %v8388_v3  ;;  %7927 = vmatprep.subr.bf16.mxu1 %v8388_v3 }
 0x876   :  { %v2895_v22 = vpop.f32.mrb[30].mxu0  ;;  %v2969_v61 = vpop.f32.mrb[36].mxu1 }
 0x877   :  { %v2900_v31 = vrot.slane %v2895_v22, 4  ;;  %v2974_v25 = vrot.slane %v2969_v61, 4  ;;  %v7478_v60 = vpop.f32.mrb[31].mxu0  ;;  %v7485_v44 = vpop.f32.mrb[37].mxu1  ;;  %v173_v22 = vld [vmem:[%s9398_s6 + $0x8] sm:$0xff]  ;;  %v6775_v61 = vld [vmem:[%s9398_s6 + $0x10] sm:$0xff] }
 0x878   :  { %v8975_v27 = vpack.c.bf16 %v173_v22, %v172_v17  ;;  %v6777_v60 = vld [vmem:[%s9398_s6 + $0x20] sm:$0xff]  ;;  %v6780_v44 = vld [vmem:[%s9398_s6 + $0x38] sm:$0xff]  ;;  %v9051_v22 = vadd.f32 %v8748_v43, %v8746_v42 }
 0x879   :  { %v2902_v2 = vadd.f32 %v2900_v31, %v8702_v20  ;;  %v2976_v7 = vadd.f32 %v2974_v25, %v8704_v21  ;;  %v6776_v31 = vld [vmem:[%s9398_s6 + $0x18] sm:$0xff] }
 0x87a   :  { %v3043_v46 = vpop.f32.mrb[32].mxu0  ;;  %v3117_v49 = vpop.f32.mrb[38].mxu1  ;;  %v8977_v23 = vpack.c.bf16 %v6776_v31, %v6775_v61 }
 0x87b   :  { %v6881_v38 = vmul.f32 -1.442695, %v2902_v2  ;;  %v6882_v26 = vmul.f32 -1.442695, %v2976_v7  ;;  %v3122_v30 = vrot.slane %v3117_v49, 4  ;;  %v7492_v36 = vpop.f32.mrb[33].mxu0 }
 0x87c   :  { %v7499_v51 = vpop.f32.mrb[39].mxu1  ;;  %v3048_v54 = vrot.slane %v3043_v46, 4 }
 0x87d   :  { %8140 = vpow2.f32 %v6881_v38  ;;  %v3124_v53 = vadd.f32 %v3122_v30, %v8714_v29 }
 0x87e   :  { %8142 = vpow2.f32 %v6882_v26  ;;  %v3050_v56 = vadd.f32 %v3048_v54, %v8712_v28 }
 0x87f   :  { %v6883_v55 = vmul.f32 -1.442695, %v3124_v53 }
 0x881   :  { %8144 = vpow2.f32 %v6883_v55 }
 0x882   :  { %8146 = vtanh.f32 %v3050_v56 }
 0x887   :  { %v8141_v57 = vpop.eup %8140 }
 0x888   :  { %v8143_v58 = vpop.eup %8142  ;;  %v3128_v59 = vadd.f32 1.0, %v8141_v57 }
 0x889   :  { %v3134_v62 = vadd.f32 1.0, %v8143_v58 }
 0x88a   :  { %8148 = vrcp.f32 %v3128_v59 }
 0x88b   :  { %8150 = vrcp.f32 %v3134_v62  ;;  %v8145_v63 = vpop.eup %8144 }
 0x88c   :  { %v8147_v0 = vpop.eup %8146  ;;  %v3141_v9 = vadd.f32 1.0, %v8145_v63 }
 0x88e   :  { %8152 = vrcp.f32 %v3141_v9 }
 0x894   :  { %v8149_v1 = vpop.eup %8148 }
 0x895   :  { %v8151_v5 = vpop.eup %8150  ;;  %v3148_v8 = vmul.f32 %v8149_v1, %v8147_v0  ;;  %v9039_v0 = vadd.f32 %v8721_v33, %v8719_v32 }
 0x896   :  { %v3147_v11 = vmul.f32 %v8151_v5, %v3145_v4 }
 0x898   :  { %v8950_v12 = vadd.f32 %v3148_v8, %v3147_v11  ;;  %v8153_v14 = vpop.eup %8152 }
 0x89a   :  { %8154 = vtanh.f32 %v8950_v12 }
 0x8a4   :  { %v8155_v47 = vpop.eup %8154 }
 0x8a5   :  { %v3151_v15 = vmul.f32 %v8155_v47, %v8153_v14 }
 0x8a7   :  { %v3153_v24 = vrot.slane %v3151_v15, 4  ;;  %v8969_v25 = vsel %vm82_vm0, %v6071_v52, %v3151_v15 }
 0x8a9   :  { %7505 = vmatmul.mubr.msk.f32.vlgmr.msra.gmra.mrb[34].mxu0 %vm892_vm5, %v3153_v24  ;;  %7512 = vmatmul.mubr.msk.f32.vlgmr.msra.gmra.mrb[40].mxu1 %vm892_vm5, %v3153_v24 }
 0x8aa   :  { %7926 = vmatpush3.bf16.msra.mxu0 %v8667_v10  ;;  %7929 = vmatpush3.bf16.msra.mxu1 %v8681_v13  ;;  %v6778_v10 = vld [vmem:[%s9398_s6 + $0x28] sm:$0xff]  ;;  %v6779_v13 = vld [vmem:[%s9398_s6 + $0x30] sm:$0xff] }
 0x8ab   :  { %7518 = vmatprep.mubr.msk.f32.mxu0 %vm8389_vm6, %v8387_v19  ;;  %7525 = vmatprep.mubr.msk.f32.mxu1 %vm8389_vm6, %v8387_v19  ;;  %v9001_v2 = vpack.c.bf16 %v6778_v10, %v6777_v60  ;;  %v9003_v7 = vpack.c.bf16 %v6780_v44, %v6779_v13  ;;  %v9056_v44 = vadd.f32 %v8741_v41, %v8739_v40 }
 0x8ac   :  { %7930 = vmatprep.subr.bf16.mxu0 %v8388_v3  ;;  %7933 = vmatprep.subr.bf16.mxu1 %v8388_v3 }
 0x8ad   :  { %7519 = vmatmul.mubr.msk.f32.vlgmr.msra.gmra.mrb[36].mxu0 %vm892_vm5, %v3153_v24  ;;  %7526 = vmatmul.mubr.msk.f32.vlgmr.msra.gmra.mrb[42].mxu1 %vm892_vm5, %v3153_v24 }
 0x8ae   :  { %7932 = vmatpush3.bf16.msra.mxu0 %v8975_v27  ;;  %7935 = vmatpush3.bf16.msra.mxu1 %v8977_v23 }
 0x8af   :  { %7532 = vmatprep.mubr.msk.f32.mxu0 %vm8389_vm6, %v8387_v19  ;;  %7539 = vmatprep.mubr.msk.f32.mxu1 %vm8389_vm6, %v8387_v19 }
 0x8b0   :  { %7936 = vmatprep.subr.bf16.mxu0 %v8388_v3  ;;  %7939 = vmatprep.subr.bf16.mxu1 %v8388_v3 }
 0x8b1   :  { %7533 = vmatmul.mubr.msk.f32.vlgmr.msra.gmra.mrb[38].mxu0 %vm892_vm5, %v8645_v6  ;;  %7540 = vmatmul.mubr.msk.f32.vlgmr.msra.gmra.mrb[44].mxu1 %vm892_vm5, %v8645_v6 }
 0x8b2   :  { %7938 = vmatpush3.bf16.msra.mxu0 %v9001_v2  ;;  %7941 = vmatpush3.bf16.msra.mxu1 %v9003_v7 }
 0x8b3   :  { %7546 = vmatprep.mubr.msk.f32.mxu0 %vm8389_vm6, %v8387_v19  ;;  %7553 = vmatprep.mubr.msk.f32.mxu1 %vm8389_vm6, %v8387_v19 }
 0x8b4   :  { %7942 = vmatprep.subr.bf16.mxu0 %v8388_v3  ;;  %7945 = vmatprep.subr.bf16.mxu1 %v8388_v3 }
 0x8b5   :  { %7547 = vmatmul.mubr.msk.f32.vlgmr.msra.gmra.mrb[40].mxu0 %vm892_vm5, %v8645_v6  ;;  %7554 = vmatmul.mubr.msk.f32.vlgmr.msra.gmra.mrb[46].mxu1 %vm892_vm5, %v8645_v6 }
 0x8b6   :  { %7944 = vmatpush3.bf16.msra.mxu0 %v8975_v27  ;;  %7947 = vmatpush3.bf16.msra.mxu1 %v8977_v23 }
 0x8b7   :  { %7560 = vmatprep.mubr.msk.f32.mxu0 %vm8389_vm6, %v8387_v19  ;;  %7567 = vmatprep.mubr.msk.f32.mxu1 %vm8389_vm6, %v8387_v19 }
 0x8b8   :  { %7948 = vmatprep.subr.bf16.mxu0 %v8388_v3  ;;  %7951 = vmatprep.subr.bf16.mxu1 %v8388_v3 }
 0x97c   :  { %v3222_v46 = vpop.f32.mrb[34].mxu0  ;;  %v3296_v49 = vpop.f32.mrb[40].mxu1 }
 0x97d   :  { %v3227_v38 = vrot.slane %v3222_v46, 2  ;;  %v3301_v26 = vrot.slane %v3296_v49, 2  ;;  %v7506_v30 = vpop.f32.mrb[35].mxu0  ;;  %v7513_v6 = vpop.f32.mrb[41].mxu1 }
 0x97f   :  { %v3229_v36 = vadd.f32 %v3227_v38, %v8702_v20  ;;  %v3303_v51 = vadd.f32 %v3301_v26, %v8704_v21  ;;  %v9043_v20 = vadd.f32 %v8728_v35, %v8726_v34 }
 0x980   :  { %v3370_v53 = vpop.f32.mrb[36].mxu0  ;;  %v3444_v54 = vpop.f32.mrb[42].mxu1 }
 0x981   :  { %v6888_v55 = vmul.f32 -1.442695, %v3229_v36  ;;  %v6889_v56 = vmul.f32 -1.442695, %v3303_v51  ;;  %v3449_v57 = vrot.slane %v3444_v54, 2  ;;  %v7520_v58 = vpop.f32.mrb[37].mxu0 }
 0x982   :  { %v7527_v59 = vpop.f32.mrb[43].mxu1  ;;  %v3375_v9 = vrot.slane %v3370_v53, 2  ;;  %v3472_v36 = vrot.slane %v8950_v12, 6 }
 0x983   :  { %8156 = vpow2.f32 %v6888_v55  ;;  %v3451_v8 = vadd.f32 %v3449_v57, %v8714_v29 }
 0x984   :  { %8158 = vpow2.f32 %v6889_v56  ;;  %v3545_v62 = vpop.f32.mrb[38].mxu0  ;;  %v3619_v63 = vpop.f32.mrb[44].mxu1  ;;  %v3377_v35 = vadd.f32 %v3375_v9, %v8712_v28  ;;  %v3795_v56 = vrot.slane %v8771_v18, 2 }
 0x985   :  { %v3550_v21 = vrot.slane %v3545_v62, 2  ;;  %v3624_v1 = vrot.slane %v3619_v63, 2  ;;  %v7534_v4 = vpop.f32.mrb[39].mxu0  ;;  %v7541_v5 = vpop.f32.mrb[45].mxu1  ;;  %v6890_v33 = vmul.f32 -1.442695, %v3451_v8 }
 0x987   :  { %v3552_v11 = vadd.f32 %v3550_v21, %v9039_v0  ;;  %v3626_v14 = vadd.f32 %v3624_v1, %v9043_v20 }
 0x988   :  { %v3693_v47 = vpop.f32.mrb[40].mxu0  ;;  %v3767_v15 = vpop.f32.mrb[46].mxu1 }
 0x989   :  { %v6895_v17 = vmul.f32 -1.442695, %v3552_v11  ;;  %v6896_v32 = vmul.f32 -1.442695, %v3626_v14  ;;  %v3772_v52 = vrot.slane %v3767_v15, 2  ;;  %v7548_v24 = vpop.f32.mrb[41].mxu0 }
 0x98a   :  { %v7555_v34 = vpop.f32.mrb[47].mxu1  ;;  %v3698_v13 = vrot.slane %v3693_v47, 2 }
 0x98b   :  { %8160 = vpow2.f32 %v6895_v17  ;;  %v3774_v60 = vadd.f32 %v3772_v52, %v9051_v22 }
 0x98c   :  { %8162 = vpow2.f32 %v6896_v32  ;;  %v3700_v42 = vadd.f32 %v3698_v13, %v9056_v44 }
 0x98d   :  { %v8157_v29 = vpop.eup %8156  ;;  %8164 = vpow2.f32 %v6890_v33  ;;  %v6897_v28 = vmul.f32 -1.442695, %v3774_v60 }
 0x98e   :  { %v8159_v61 = vpop.eup %8158  ;;  %v3455_v31 = vadd.f32 1.0, %v8157_v29  ;;  %8166 = vtanh.f32 %v3377_v35 }
 0x98f   :  { %v3461_v10 = vadd.f32 1.0, %v8159_v61 }
 0x990   :  { %8168 = vrcp.f32 %v3455_v31 }
 0x991   :  { %8170 = vrcp.f32 %v3461_v10 }
 0x992   :  { %8172 = vpow2.f32 %v6897_v28 }
 0x993   :  { %8174 = vtanh.f32 %v3700_v42 }
 0x995   :  { %v8161_v43 = vpop.eup %8160 }
 0x996   :  { %v8163_v46 = vpop.eup %8162  ;;  %v3778_v49 = vadd.f32 1.0, %v8161_v43 }
 0x997   :  { %v3784_v38 = vadd.f32 1.0, %v8163_v46  ;;  %v8165_v26 = vpop.eup %8164 }
 0x998   :  { %8176 = vrcp.f32 %v3778_v49  ;;  %v8167_v30 = vpop.eup %8166  ;;  %v3468_v41 = vadd.f32 1.0, %v8165_v26 }
 0x999   :  { %8178 = vrcp.f32 %v3784_v38 }
 0x99a   :  { %v8169_v6 = vpop.eup %8168  ;;  %8180 = vrcp.f32 %v3468_v41 }
 0x99b   :  { %v8171_v51 = vpop.eup %8170  ;;  %v3475_v40 = vmul.f32 %v8169_v6, %v8167_v30 }
 0x99c   :  { %v3474_v53 = vmul.f32 %v8171_v51, %v3472_v36  ;;  %v8173_v55 = vpop.eup %8172 }
 0x99d   :  { %v8175_v57 = vpop.eup %8174  ;;  %v3791_v63 = vadd.f32 1.0, %v8173_v55 }
 0x99e   :  { %v3476_v54 = vadd.f32 %v3475_v40, %v3474_v53 }
 0x9a0   :  { %8182 = vtanh.f32 %v3476_v54 }
 0x9a1   :  { %8184 = vrcp.f32 %v3791_v63 }
 0x9a2   :  { %v8177_v58 = vpop.eup %8176 }
 0x9a3   :  { %v8179_v59 = vpop.eup %8178  ;;  %v3798_v62 = vmul.f32 %v8177_v58, %v8175_v57 }
 0x9a4   :  { %v3797_v21 = vmul.f32 %v8179_v59, %v3795_v56  ;;  %v8181_v12 = vpop.eup %8180 }
 0x9a6   :  { %v9061_v1 = vadd.f32 %v3798_v62, %v3797_v21 }
 0x9a8   :  { %8186 = vtanh.f32 %v9061_v1  ;;  %v4122_v51 = vrot.slane %v9061_v1, 2 }
 0x9aa   :  { %v8183_v4 = vpop.eup %8182 }
 0x9ab   :  { %v3478_v5 = vmul.f32 %v8183_v4, %v8181_v12  ;;  %v8185_v18 = vpop.eup %8184 }
 0x9ad   :  { %v9066_v8 = vsel %vm6069_vm8, %v8969_v25, %v3478_v5 }
 0x9b2   :  { %v8187_v9 = vpop.eup %8186 }
 0x9b3   :  { %v9068_v11 = vmul.f32 %v8187_v9, %v8185_v18 }
 0x9b5   :  { %v3803_v14 = vrot.slane %v9068_v11, 6 }
 0x9b7   :  { %7561 = vmatmul.mubr.msk.f32.vlgmr.msra.gmra.mrb[42].mxu0 %vm892_vm5, %v3803_v14  ;;  %7568 = vmatmul.mubr.msk.f32.vlgmr.msra.gmra.mrb[48].mxu1 %vm892_vm5, %v3803_v14 }
 0x9b8   :  { %7950 = vmatpush3.bf16.msra.mxu0 %v9001_v2  ;;  %7953 = vmatpush3.bf16.msra.mxu1 %v9003_v7 }
 0x9b9   :  { %7574 = vmatprep.mubr.msk.f32.mxu0 %vm8389_vm6, %v8387_v19  ;;  %7581 = vmatprep.mubr.msk.f32.mxu1 %vm8389_vm6, %v8387_v19 }
 0x9ba   :  { %7954 = vmatprep.subr.bf16.mxu0 %v8388_v3  ;;  %7957 = vmatprep.subr.bf16.mxu1 %v8388_v3 }
 0x9bb   :  { %7575 = vmatmul.mubr.msk.f32.vlgmr.msra.gmra.mrb[44].mxu0 %vm892_vm5, %v3803_v14  ;;  %7582 = vmatmul.mubr.msk.f32.vlgmr.msra.gmra.mrb[50].mxu1 %vm892_vm5, %v3803_v14 }
 0x9bc   :  { %7956 = vmatpush3.bf16.msra.mxu0 %v8975_v27  ;;  %7959 = vmatpush3.bf16.msra.mxu1 %v8977_v23 }
 0x9bd   :  { %7588 = vmatprep.mubr.msk.f32.mxu0 %vm8389_vm6, %v8387_v19  ;;  %7595 = vmatprep.mubr.msk.f32.mxu1 %vm8389_vm6, %v8387_v19 }
 0x9be   :  { %7960 = vmatprep.subr.bf16.mxu0 %v8388_v3  ;;  %7963 = vmatprep.subr.bf16.mxu1 %v8388_v3 }
 0xa8a   :  { %v3872_v25 = vpop.f32.mrb[42].mxu0  ;;  %v3946_v47 = vpop.f32.mrb[48].mxu1 }
 0xa8b   :  { %v3877_v15 = vrot.slane %v3872_v25, 4  ;;  %v3951_v17 = vrot.slane %v3946_v47, 4  ;;  %v7562_v32 = vpop.f32.mrb[43].mxu0  ;;  %v7569_v33 = vpop.f32.mrb[49].mxu1 }
 0xa8d   :  { %v3879_v52 = vadd.f32 %v3877_v15, %v9039_v0  ;;  %v3953_v24 = vadd.f32 %v3951_v17, %v9043_v20 }
 0xa8e   :  { %v4020_v34 = vpop.f32.mrb[44].mxu0  ;;  %v4094_v35 = vpop.f32.mrb[50].mxu1 }
 0xa8f   :  { %v6902_v29 = vmul.f32 -1.442695, %v3879_v52  ;;  %v6903_v61 = vmul.f32 -1.442695, %v3953_v24  ;;  %v4099_v31 = vrot.slane %v4094_v35, 4  ;;  %v7576_v60 = vpop.f32.mrb[45].mxu0 }
 0xa90   :  { %v7583_v10 = vpop.f32.mrb[51].mxu1  ;;  %v4025_v28 = vrot.slane %v4020_v34, 4 }
 0xa91   :  { %8188 = vpow2.f32 %v6902_v29  ;;  %v4101_v13 = vadd.f32 %v4099_v31, %v9051_v22 }
 0xa92   :  { %8190 = vpow2.f32 %v6903_v61  ;;  %v4027_v43 = vadd.f32 %v4025_v28, %v9056_v44 }
 0xa93   :  { %v6904_v42 = vmul.f32 -1.442695, %v4101_v13 }
 0xa95   :  { %8192 = vpow2.f32 %v6904_v42 }
 0xa96   :  { %8194 = vtanh.f32 %v4027_v43 }
 0xa9b   :  { %v8189_v46 = vpop.eup %8188 }
 0xa9c   :  { %v8191_v49 = vpop.eup %8190  ;;  %v4105_v38 = vadd.f32 1.0, %v8189_v46 }
 0xa9d   :  { %v4111_v26 = vadd.f32 1.0, %v8191_v49 }
 0xa9e   :  { %8196 = vrcp.f32 %v4105_v38 }
 0xa9f   :  { %8198 = vrcp.f32 %v4111_v26  ;;  %v8193_v30 = vpop.eup %8192 }
 0xaa0   :  { %v8195_v6 = vpop.eup %8194  ;;  %v4118_v53 = vadd.f32 1.0, %v8193_v30 }
 0xaa2   :  { %8200 = vrcp.f32 %v4118_v53 }
 0xaa8   :  { %v8197_v36 = vpop.eup %8196 }
 0xaa9   :  { %v8199_v40 = vpop.eup %8198  ;;  %v4125_v41 = vmul.f32 %v8197_v36, %v8195_v6 }
 0xaaa   :  { %v4124_v54 = vmul.f32 %v8199_v40, %v4122_v51 }
 0xaac   :  { %v4126_v55 = vadd.f32 %v4125_v41, %v4124_v54  ;;  %v8201_v56 = vpop.eup %8200 }
 0xaae   :  { %8202 = vtanh.f32 %v4126_v55  ;;  %v4449_v28 = vrot.slane %v4126_v55, 2 }
 0xab8   :  { %v8203_v57 = vpop.eup %8202 }
 0xab9   :  { %v9096_v58 = vmul.f32 %v8203_v57, %v8201_v56 }
 0xabb   :  { %v4130_v59 = vrot.slane %v9096_v58, 4 }
 0xabd   :  { %7589 = vmatmul.mubr.msk.f32.vlgmr.msra.gmra.mrb[46].mxu0 %vm892_vm5, %v4130_v59  ;;  %7596 = vmatmul.mubr.msk.f32.vlgmr.msra.gmra.mrb[52].mxu1 %vm892_vm5, %v4130_v59 }
 0xabe   :  { %7962 = vmatpush3.bf16.msra.mxu0 %v9001_v2  ;;  %7965 = vmatpush3.bf16.msra.mxu1 %v9003_v7 }
 0xabf   :  { %7602 = vmatprep.mubr.msk.f32.mxu0 %vm8389_vm6, %v8387_v19  ;;  %7609 = vmatprep.mubr.msk.f32.mxu1 %vm8389_vm6, %v8387_v19 }
 0xac0   :  { %7966 = vmatprep.subr.bf16.mxu0 %v8388_v3  ;;  %7969 = vmatprep.subr.bf16.mxu1 %v8388_v3 }
 0xac1   :  { %7603 = vmatmul.mubr.msk.f32.vlgmr.msra.gmra.mrb[48].mxu0 %vm892_vm5, %v4130_v59  ;;  %7610 = vmatmul.mubr.msk.f32.vlgmr.msra.gmra.mrb[54].mxu1 %vm892_vm5, %v4130_v59 }
 0xac2   :  { %7968 = vmatpush3.bf16.msra.mxu0 %v8975_v27  ;;  %7971 = vmatpush3.bf16.msra.mxu1 %v8977_v23 }
 0xac3   :  { %7616 = vmatprep.mubr.msk.f32.mxu0 %vm8389_vm6, %v8387_v19  ;;  %7623 = vmatprep.mubr.msk.f32.mxu1 %vm8389_vm6, %v8387_v19 }
 0xac4   :  { %7972 = vmatprep.subr.bf16.mxu0 %v8388_v3  ;;  %7975 = vmatprep.subr.bf16.mxu1 %v8388_v3 }
 0xb90   :  { %v4199_v62 = vpop.f32.mrb[46].mxu0  ;;  %v4273_v63 = vpop.f32.mrb[52].mxu1 }
 0xb91   :  { %v4204_v21 = vrot.slane %v4199_v62, 6  ;;  %v4278_v1 = vrot.slane %v4273_v63, 6  ;;  %v7590_v12 = vpop.f32.mrb[47].mxu0  ;;  %v7597_v4 = vpop.f32.mrb[53].mxu1 }
 0xb93   :  { %v4206_v5 = vadd.f32 %v4204_v21, %v9039_v0  ;;  %v4280_v18 = vadd.f32 %v4278_v1, %v9043_v20 }
 0xb94   :  { %v4347_v9 = vpop.f32.mrb[48].mxu0  ;;  %v4421_v14 = vpop.f32.mrb[54].mxu1 }
 0xb95   :  { %v6909_v25 = vmul.f32 -1.442695, %v4206_v5  ;;  %v6910_v47 = vmul.f32 -1.442695, %v4280_v18  ;;  %v4426_v15 = vrot.slane %v4421_v14, 6  ;;  %v7604_v17 = vpop.f32.mrb[49].mxu0 }
 0xb96   :  { %v7611_v32 = vpop.f32.mrb[55].mxu1  ;;  %v4352_v52 = vrot.slane %v4347_v9, 6 }
 0xb97   :  { %8204 = vpow2.f32 %v6909_v25  ;;  %v4428_v33 = vadd.f32 %v4426_v15, %v9051_v22 }
 0xb98   :  { %8206 = vpow2.f32 %v6910_v47  ;;  %v4354_v34 = vadd.f32 %v4352_v52, %v9056_v44 }
 0xb99   :  { %v6911_v24 = vmul.f32 -1.442695, %v4428_v33 }
 0xb9b   :  { %8208 = vpow2.f32 %v6911_v24 }
 0xb9c   :  { %8210 = vtanh.f32 %v4354_v34 }
 0xba1   :  { %v8205_v35 = vpop.eup %8204 }
 0xba2   :  { %v8207_v29 = vpop.eup %8206  ;;  %v4432_v61 = vadd.f32 1.0, %v8205_v35 }
 0xba3   :  { %v4438_v31 = vadd.f32 1.0, %v8207_v29 }
 0xba4   :  { %8212 = vrcp.f32 %v4432_v61 }
 0xba5   :  { %8214 = vrcp.f32 %v4438_v31  ;;  %v8209_v60 = vpop.eup %8208 }
 0xba6   :  { %v8211_v10 = vpop.eup %8210  ;;  %v4445_v46 = vadd.f32 1.0, %v8209_v60 }
 0xba8   :  { %8216 = vrcp.f32 %v4445_v46 }
 0xbae   :  { %v8213_v13 = vpop.eup %8212 }
 0xbaf   :  { %v8215_v42 = vpop.eup %8214  ;;  %v4452_v43 = vmul.f32 %v8213_v13, %v8211_v10 }
 0xbb0   :  { %v4451_v49 = vmul.f32 %v8215_v42, %v4449_v28 }
 0xbb2   :  { %v4453_v38 = vadd.f32 %v4452_v43, %v4451_v49  ;;  %v8217_v26 = vpop.eup %8216 }
 0xbb4   :  { %8218 = vtanh.f32 %v4453_v38  ;;  %v4764_v47 = vrot.slane %v4453_v38, 2 }
 0xbbe   :  { %v8219_v30 = vpop.eup %8218 }
 0xbbf   :  { %v9123_v6 = vmul.f32 %v8219_v30, %v8217_v26 }
 0xbc1   :  { %v4457_v36 = vrot.slane %v9123_v6, 2 }
 0xbc3   :  { %7617 = vmatmul.mubr.msk.f32.vlgmr.msra.gmra.mrb[50].mxu0 %vm892_vm5, %v4457_v36  ;;  %7624 = vmatmul.mubr.msk.f32.vlgmr.msra.gmra.mrb[56].mxu1 %vm892_vm5, %v4457_v36 }
 0xbc4   :  { %7974 = vmatpush3.bf16.msra.mxu0 %v9001_v2  ;;  %7977 = vmatpush3.bf16.msra.mxu1 %v9003_v7 }
 0xbc5   :  { %7630 = vmatprep.mubr.msk.f32.mxu0 %vm8389_vm6, %v8387_v19  ;;  %7637 = vmatprep.mubr.msk.f32.mxu1 %vm8389_vm6, %v8387_v19 }
 0xbc6   :  { %7978 = vmatprep.subr.bf16.mxu0 %v8388_v3  ;;  %7981 = vmatprep.subr.bf16.mxu1 %v8388_v3 }
 0xbc7   :  { %7631 = vmatmul.mubr.msk.f32.vlgmr.msra.gmra.mrb[52].mxu0 %vm892_vm5, %v4457_v36  ;;  %7638 = vmatmul.mubr.msk.f32.vlgmr.msra.gmra.mrb[58].mxu1 %vm892_vm5, %v4457_v36 }
 0xbc8   :  { %7980 = vmatpush3.bf16.msra.mxu0 %v8975_v27  ;;  %7983 = vmatpush3.bf16.msra.mxu1 %v8977_v23 }
 0xbc9   :  { %7644 = vmatprep.mubr.msk.f32.mxu0 %vm8389_vm6, %v8387_v19  ;;  %7651 = vmatprep.mubr.msk.f32.mxu1 %vm8389_vm6, %v8387_v19 }
 0xbca   :  { %7984 = vmatprep.subr.bf16.mxu0 %v8388_v3  ;;  %7987 = vmatprep.subr.bf16.mxu1 %v8388_v3 }
 0xc96   :  { %v4526_v51 = vpop.f32.mrb[50].mxu0  ;;  %v4597_v40 = vpop.f32.mrb[56].mxu1 }
 0xc97   :  { %v4530_v41 = vadd.f32 %v4526_v51, %v9039_v0  ;;  %v4601_v53 = vadd.f32 %v4597_v40, %v9043_v20  ;;  %v7618_v54 = vpop.f32.mrb[51].mxu0  ;;  %v7625_v55 = vpop.f32.mrb[57].mxu1 }
 0xc99   :  { %v6916_v56 = vmul.f32 -1.442695, %v4530_v41  ;;  %v6917_v57 = vmul.f32 -1.442695, %v4601_v53 }
 0xc9a   :  { %v4668_v59 = vpop.f32.mrb[52].mxu0  ;;  %v4739_v62 = vpop.f32.mrb[58].mxu1 }
 0xc9b   :  { %8220 = vpow2.f32 %v6916_v56  ;;  %v7632_v63 = vpop.f32.mrb[53].mxu0  ;;  %v7639_v21 = vpop.f32.mrb[59].mxu1  ;;  %v4743_v1 = vadd.f32 %v4739_v62, %v9051_v22  ;;  %v4672_v4 = vadd.f32 %v4668_v59, %v9056_v44 }
 0xc9c   :  { %8222 = vpow2.f32 %v6917_v57 }
 0xc9d   :  { %v6918_v12 = vmul.f32 -1.442695, %v4743_v1 }
 0xc9f   :  { %8224 = vpow2.f32 %v6918_v12 }
 0xca0   :  { %8226 = vtanh.f32 %v4672_v4 }
 0xca5   :  { %v8221_v5 = vpop.eup %8220 }
 0xca6   :  { %v8223_v18 = vpop.eup %8222  ;;  %v4747_v0 = vadd.f32 1.0, %v8221_v5 }
 0xca7   :  { %v4753_v20 = vadd.f32 1.0, %v8223_v18 }
 0xca8   :  { %8228 = vrcp.f32 %v4747_v0 }
 0xca9   :  { %8230 = vrcp.f32 %v4753_v20  ;;  %v8225_v9 = vpop.eup %8224 }
 0xcaa   :  { %v8227_v14 = vpop.eup %8226  ;;  %v4760_v32 = vadd.f32 1.0, %v8225_v9 }
 0xcac   :  { %8232 = vrcp.f32 %v4760_v32 }
 0xcb2   :  { %v8229_v25 = vpop.eup %8228 }
 0xcb3   :  { %v8231_v15 = vpop.eup %8230  ;;  %v4767_v17 = vmul.f32 %v8229_v25, %v8227_v14 }
 0xcb4   :  { %v4766_v33 = vmul.f32 %v8231_v15, %v4764_v47 }
 0xcb6   :  { %v4768_v22 = vadd.f32 %v4767_v17, %v4766_v33  ;;  %v8233_v44 = vpop.eup %8232 }
 0xcb8   :  { %8234 = vtanh.f32 %v4768_v22  ;;  %v5090_v62 = vrot.slane %v4768_v22, 2 }
 0xcc2   :  { %v8235_v52 = vpop.eup %8234 }
 0xcc3   :  { %v9150_v24 = vmul.f32 %v8235_v52, %v8233_v44 }
 0xcc5   :  { %7645 = vmatmul.mubr.msk.f32.vlgmr.msra.gmra.mrb[54].mxu0 %vm892_vm5, %v9150_v24  ;;  %7652 = vmatmul.mubr.msk.f32.vlgmr.msra.gmra.mrb[60].mxu1 %vm892_vm5, %v9150_v24 }
 0xcc6   :  { %7986 = vmatpush3.bf16.msra.mxu0 %v9001_v2  ;;  %7989 = vmatpush3.bf16.msra.mxu1 %v9003_v7 }
 0xcc7   :  { %7658 = vmatprep.mubr.msk.f32.mxu0 %vm8389_vm6, %v8387_v19  ;;  %7665 = vmatprep.mubr.msk.f32.mxu1 %vm8389_vm6, %v8387_v19 }
 0xcc8   :  { %7990 = vmatprep.subr.bf16.mxu0 %v8388_v3  ;;  %7993 = vmatprep.subr.bf16.mxu1 %v8388_v3 }
 0xcc9   :  { %7659 = vmatmul.mubr.msk.f32.vlgmr.msra.gmra.mrb[56].mxu0 %vm892_vm5, %v9150_v24  ;;  %7666 = vmatmul.mubr.msk.f32.vlgmr.msra.gmra.mrb[62].mxu1 %vm892_vm5, %v9150_v24 }
 0xcca   :  { %7992 = vmatpush3.bf16.msra.mxu0 %v8975_v27  ;;  %7995 = vmatpush3.bf16.msra.mxu1 %v8977_v23 }
 0xccb   :  { %7672 = vmatprep.mubr.msk.f32.mxu0 %vm8389_vm6, %v8387_v19  ;;  %7679 = vmatprep.mubr.msk.f32.mxu1 %vm8389_vm6, %v8387_v19 }
 0xccc   :  { %7996 = vmatprep.subr.bf16.mxu0 %v8388_v3  ;;  %7999 = vmatprep.subr.bf16.mxu1 %v8388_v3 }
 0xd98   :  { %v4840_v34 = vpop.f32.mrb[54].mxu0  ;;  %v4914_v35 = vpop.f32.mrb[60].mxu1 }
 0xd99   :  { %v4845_v29 = vrot.slane %v4840_v34, 2  ;;  %v4919_v61 = vrot.slane %v4914_v35, 2  ;;  %v7646_v31 = vpop.f32.mrb[55].mxu0  ;;  %v7653_v60 = vpop.f32.mrb[61].mxu1 }
 0xd9b   :  { %v4847_v10 = vadd.f32 %v4845_v29, %v8731_v37  ;;  %v4921_v13 = vadd.f32 %v4919_v61, %v8734_v39 }
 0xd9c   :  { %v4988_v28 = vpop.f32.mrb[56].mxu0  ;;  %v5062_v42 = vpop.f32.mrb[62].mxu1 }
 0xd9d   :  { %v6923_v43 = vmul.f32 -1.442695, %v4847_v10  ;;  %v6924_v46 = vmul.f32 -1.442695, %v4921_v13  ;;  %v5067_v49 = vrot.slane %v5062_v42, 2  ;;  %v7660_v38 = vpop.f32.mrb[57].mxu0 }
 0xd9e   :  { %v7667_v26 = vpop.f32.mrb[63].mxu1  ;;  %v4993_v36 = vrot.slane %v4988_v28, 2 }
 0xd9f   :  { %8236 = vpow2.f32 %v6923_v43  ;;  %v5069_v30 = vadd.f32 %v5067_v49, %v8756_v48 }
 0xda0   :  { %8238 = vpow2.f32 %v6924_v46  ;;  %v4995_v40 = vadd.f32 %v4993_v36, %v8751_v45 }
 0xda1   :  { %v6925_v51 = vmul.f32 -1.442695, %v5069_v30 }
 0xda3   :  { %8240 = vpow2.f32 %v6925_v51 }
 0xda4   :  { %8242 = vtanh.f32 %v4995_v40 }
 0xda9   :  { %v8237_v41 = vpop.eup %8236 }
 0xdaa   :  { %v8239_v53 = vpop.eup %8238  ;;  %v5073_v54 = vadd.f32 1.0, %v8237_v41 }
 0xdab   :  { %v5079_v55 = vadd.f32 1.0, %v8239_v53 }
 0xdac   :  { %8244 = vrcp.f32 %v5073_v54 }
 0xdad   :  { %8246 = vrcp.f32 %v5079_v55  ;;  %v8241_v56 = vpop.eup %8240 }
 0xdae   :  { %v8243_v57 = vpop.eup %8242  ;;  %v5086_v1 = vadd.f32 1.0, %v8241_v56 }
 0xdb0   :  { %8248 = vrcp.f32 %v5086_v1 }
 0xdb6   :  { %v8245_v59 = vpop.eup %8244 }
 0xdb7   :  { %v8247_v63 = vpop.eup %8246  ;;  %v5093_v21 = vmul.f32 %v8245_v59, %v8243_v57 }
 0xdb8   :  { %v5092_v12 = vmul.f32 %v8247_v63, %v5090_v62 }
 0xdba   :  { %v5094_v4 = vadd.f32 %v5093_v21, %v5092_v12  ;;  %v8249_v5 = vpop.eup %8248 }
 0xdbc   :  { %8250 = vtanh.f32 %v5094_v4  ;;  %v5417_v30 = vrot.slane %v5094_v4, 2 }
 0xdc6   :  { %v8251_v18 = vpop.eup %8250 }
 0xdc7   :  { %v9180_v0 = vmul.f32 %v8251_v18, %v8249_v5 }
 0xdc9   :  { %v5098_v20 = vrot.slane %v9180_v0, 6 }
 0xdcb   :  { %7673 = vmatmul.mubr.msk.f32.vlgmr.msra.gmra.mrb[58].mxu0 %vm892_vm5, %v5098_v20  ;;  %7680 = vmatmul.mubr.msk.f32.vlgmr.msra.gmra.mrb[64].mxu1 %vm892_vm5, %v5098_v20 }
 0xdcc   :  { %7998 = vmatpush3.bf16.msra.mxu0 %v9001_v2  ;;  %8001 = vmatpush3.bf16.msra.mxu1 %v9003_v7 }
 0xdcd   :  { %7686 = vmatprep.mubr.msk.f32.mxu0 %vm8389_vm6, %v8387_v19  ;;  %7693 = vmatprep.mubr.msk.f32.mxu1 %vm8389_vm6, %v8387_v19 }
 0xdce   :  { %8002 = vmatprep.subr.bf16.mxu0 %v8388_v3  ;;  %8005 = vmatprep.subr.bf16.mxu1 %v8388_v3 }
 0xdcf   :  { %7687 = vmatmul.mubr.msk.f32.vlgmr.msra.gmra.mrb[60].mxu0 %vm892_vm5, %v5098_v20  ;;  %7694 = vmatmul.mubr.msk.f32.vlgmr.msra.gmra.mrb[66].mxu1 %vm892_vm5, %v5098_v20 }
 0xdd0   :  { %8004 = vmatpush3.bf16.msra.mxu0 %v8975_v27  ;;  %8007 = vmatpush3.bf16.msra.mxu1 %v8977_v23 }
 0xdd1   :  { %7700 = vmatprep.mubr.msk.f32.mxu0 %vm8389_vm6, %v8387_v19  ;;  %7707 = vmatprep.mubr.msk.f32.mxu1 %vm8389_vm6, %v8387_v19 }
 0xdd2   :  { %8008 = vmatprep.subr.bf16.mxu0 %v8388_v3  ;;  %8011 = vmatprep.subr.bf16.mxu1 %v8388_v3 }
 0xe9e   :  { %v5167_v9 = vpop.f32.mrb[58].mxu0  ;;  %v5241_v14 = vpop.f32.mrb[64].mxu1 }
 0xe9f   :  { %v5172_v25 = vrot.slane %v5167_v9, 4  ;;  %v5246_v47 = vrot.slane %v5241_v14, 4  ;;  %v7674_v15 = vpop.f32.mrb[59].mxu0  ;;  %v7681_v17 = vpop.f32.mrb[65].mxu1 }
 0xea1   :  { %v5174_v32 = vadd.f32 %v5172_v25, %v8731_v37  ;;  %v5248_v33 = vadd.f32 %v5246_v47, %v8734_v39 }
 0xea2   :  { %v5315_v22 = vpop.f32.mrb[60].mxu0  ;;  %v5389_v44 = vpop.f32.mrb[66].mxu1 }
 0xea3   :  { %v6930_v52 = vmul.f32 -1.442695, %v5174_v32  ;;  %v6931_v34 = vmul.f32 -1.442695, %v5248_v33  ;;  %v5394_v35 = vrot.slane %v5389_v44, 4  ;;  %v7688_v29 = vpop.f32.mrb[61].mxu0 }
 0xea4   :  { %v7695_v61 = vpop.f32.mrb[67].mxu1  ;;  %v5320_v60 = vrot.slane %v5315_v22, 4 }
 0xea5   :  { %8252 = vpow2.f32 %v6930_v52  ;;  %v5396_v31 = vadd.f32 %v5394_v35, %v8756_v48 }
 0xea6   :  { %8254 = vpow2.f32 %v6931_v34  ;;  %v5322_v13 = vadd.f32 %v5320_v60, %v8751_v45 }
 0xea7   :  { %v6932_v10 = vmul.f32 -1.442695, %v5396_v31 }
 0xea9   :  { %8256 = vpow2.f32 %v6932_v10 }
 0xeaa   :  { %8258 = vtanh.f32 %v5322_v13 }
 0xeaf   :  { %v8253_v28 = vpop.eup %8252 }
 0xeb0   :  { %v8255_v42 = vpop.eup %8254  ;;  %v5400_v43 = vadd.f32 1.0, %v8253_v28 }
 0xeb1   :  { %v5406_v46 = vadd.f32 1.0, %v8255_v42 }
 0xeb2   :  { %8260 = vrcp.f32 %v5400_v43 }
 0xeb3   :  { %8262 = vrcp.f32 %v5406_v46  ;;  %v8257_v49 = vpop.eup %8256 }
 0xeb4   :  { %v8259_v38 = vpop.eup %8258  ;;  %v5413_v40 = vadd.f32 1.0, %v8257_v49  ;;  %v6082_v49 = vld [vmem:[%s9401_s9] sm:$0xff] }
 0xeb6   :  { %8264 = vrcp.f32 %v5413_v40 }
 0xebc   :  { %v8261_v26 = vpop.eup %8260 }
 0xebd   :  { %v8263_v36 = vpop.eup %8262  ;;  %v5420_v51 = vmul.f32 %v8261_v26, %v8259_v38 }
 0xebe   :  { %v5419_v41 = vmul.f32 %v8263_v36, %v5417_v30 }
 0xec0   :  { %v5421_v53 = vadd.f32 %v5420_v51, %v5419_v41  ;;  %v8265_v54 = vpop.eup %8264 }
 0xec2   :  { %8266 = vtanh.f32 %v5421_v53  ;;  %v5744_v29 = vrot.slane %v5421_v53, 2 }
 0xecc   :  { %v8267_v55 = vpop.eup %8266 }
 0xecd   :  { %v9207_v56 = vmul.f32 %v8267_v55, %v8265_v54 }
 0xecf   :  { %v5425_v57 = vrot.slane %v9207_v56, 4 }
 0xed1   :  { %7701 = vmatmul.mubr.msk.f32.vlgmr.msra.gmra.mrb[62].mxu0 %vm892_vm5, %v5425_v57  ;;  %7708 = vmatmul.mubr.msk.f32.vlgmr.msra.gmra.mrb[68].mxu1 %vm892_vm5, %v5425_v57 }
 0xed2   :  { %8010 = vmatpush3.bf16.msra.mxu0 %v9001_v2  ;;  %8013 = vmatpush3.bf16.msra.mxu1 %v9003_v7 }
 0xed3   :  { %7714 = vmatprep.mubr.msk.f32.mxu0 %vm8389_vm6, %v8387_v19  ;;  %7721 = vmatprep.mubr.msk.f32.mxu1 %vm8389_vm6, %v8387_v19 }
 0xed4   :  { %8014 = vmatprep.subr.bf16.mxu0 %v8388_v3  ;;  %8017 = vmatprep.subr.bf16.mxu1 %v8388_v3 }
 0xed5   :  { %7715 = vmatmul.mubr.msk.f32.vlgmr.msra.gmra.mrb[64].mxu0 %vm892_vm5, %v5425_v57  ;;  %7722 = vmatmul.mubr.msk.f32.vlgmr.msra.gmra.mrb[70].mxu1 %vm892_vm5, %v5425_v57 }
 0xed6   :  { %8016 = vmatpush3.bf16.msra.mxu0 %v8975_v27  ;;  %8019 = vmatpush3.bf16.msra.mxu1 %v8977_v23 }
 0xed7   :  { %7728 = vmatprep.mubr.msk.f32.mxu0 %vm8389_vm6, %v8387_v19  ;;  %7735 = vmatprep.mubr.msk.f32.mxu1 %vm8389_vm6, %v8387_v19 }
 0xed8   :  { %8020 = vmatprep.subr.bf16.mxu0 %v8388_v3  ;;  %8023 = vmatprep.subr.bf16.mxu1 %v8388_v3 }
 0xfa4   :  { %v5494_v59 = vpop.f32.mrb[62].mxu0  ;;  %v5568_v62 = vpop.f32.mrb[68].mxu1 }
 0xfa5   :  { %v5499_v63 = vrot.slane %v5494_v59, 6  ;;  %v5573_v21 = vrot.slane %v5568_v62, 6  ;;  %v7702_v1 = vpop.f32.mrb[63].mxu0  ;;  %v7709_v12 = vpop.f32.mrb[69].mxu1 }
 0xfa7   :  { %v5501_v27 = vadd.f32 %v5499_v63, %v8731_v37  ;;  %v5575_v23 = vadd.f32 %v5573_v21, %v8734_v39 }
 0xfa8   :  { %v5642_v4 = vpop.f32.mrb[64].mxu0  ;;  %v5716_v5 = vpop.f32.mrb[70].mxu1 }
 0xfa9   :  { %v6937_v18 = vmul.f32 -1.442695, %v5501_v27  ;;  %v6938_v20 = vmul.f32 -1.442695, %v5575_v23  ;;  %v5721_v9 = vrot.slane %v5716_v5, 6  ;;  %v7716_v14 = vpop.f32.mrb[65].mxu0 }
 0xfaa   :  { %v7723_v25 = vpop.f32.mrb[71].mxu1  ;;  %v5647_v47 = vrot.slane %v5642_v4, 6 }
 0xfab   :  { %8268 = vpow2.f32 %v6937_v18  ;;  %v5723_v3 = vadd.f32 %v5721_v9, %v8756_v48 }
 0xfac   :  { %8270 = vpow2.f32 %v6938_v20  ;;  %v5649_v17 = vadd.f32 %v5647_v47, %v8751_v45 }
 0xfad   :  { %v6939_v15 = vmul.f32 -1.442695, %v5723_v3 }
 0xfaf   :  { %8272 = vpow2.f32 %v6939_v15  ;;  %v6077_v15 = vsel %vm6066_vm7, %v9150_v24, %v9123_v6  ;;  %v6268_v6 = vshrl.u32 %v58_v16, 7 }
 0xfb0   :  { %8274 = vtanh.f32 %v5649_v17 }
 0xfb1   :  { %v9294_v16 = vsub.s32 0, %v6268_v6 }
 0xfb5   :  { %v8269_v32 = vpop.eup %8268 }
 0xfb6   :  { %v8271_v33 = vpop.eup %8270  ;;  %v5727_v22 = vadd.f32 1.0, %v8269_v32 }
 0xfb7   :  { %v5733_v44 = vadd.f32 1.0, %v8271_v33  ;;  %v6078_v33 = vsel %vm82_vm0, %v6077_v15, %v9096_v58  ;;  %v6951_v58 = vld [vmem:[%s9402_s10] ss:$0 sm:$0xff] }
 0xfb8   :  { %8276 = vrcp.f32 %v5727_v22 }
 0xfb9   :  { %8278 = vrcp.f32 %v5733_v44  ;;  %v8273_v52 = vpop.eup %8272 }
 0xfba   :  { %v8275_v34 = vpop.eup %8274  ;;  %v5740_v60 = vadd.f32 1.0, %v8273_v52  ;;  %v6079_v52 = vsel %vm6069_vm8, %v6078_v33, %v9068_v11 }
 0xfbc   :  { %8280 = vrcp.f32 %v5740_v60 }
 0xfc2   :  { %v8277_v35 = vpop.eup %8276 }
 0xfc3   :  { %v8279_v61 = vpop.eup %8278  ;;  %v5747_v31 = vmul.f32 %v8277_v35, %v8275_v34 }
 0xfc4   :  { %v5746_v10 = vmul.f32 %v8279_v61, %v5744_v29  ;;  %v9300_v61 = vld [vmem:[%s9417_s29] sm:$0xff] }
 0xfc6   :  { %v5748_v13 = vadd.f32 %v5747_v31, %v5746_v10  ;;  %v8281_v28 = vpop.eup %8280 }
 0xfc8   :  { %8282 = vtanh.f32 %v5748_v13  ;;  %v6059_v20 = vrot.slane %v5748_v13, 2 }
 0xfd2   :  { %v8283_v42 = vpop.eup %8282 }
 0xfd3   :  { %v5750_v43 = vmul.f32 %v8283_v42, %v8281_v28 }
 0xfd5   :  { %v5752_v46 = vrot.slane %v5750_v43, 2 }
 0xfd7   :  { %7729 = vmatmul.mubr.msk.f32.vlgmr.msra.gmra.mrb[66].mxu0 %vm892_vm5, %v5752_v46  ;;  %7736 = vmatmul.mubr.msk.f32.vlgmr.msra.gmra.mrb[72].mxu1 %vm892_vm5, %v5752_v46 }
 0xfd8   :  { %8022 = vmatpush3.bf16.msra.mxu0 %v9001_v2  ;;  %8025 = vmatpush3.bf16.msra.mxu1 %v9003_v7  ;;  %v6083_v2 = vld [vmem:[%s9401_s9 + $0x8] sm:$0xff]  ;;  %v6080_v7 = vld [vmem:[%s9400_s8] sm:$0xff] }
 0xfd9   :  { %7742 = vmatprep.mubr.msk.f32.mxu0 %vm8389_vm6, %v8387_v19  ;;  %7749 = vmatprep.mubr.msk.f32.mxu1 %vm8389_vm6, %v8387_v19  ;;  %v8026_v38 = vpack.c.bf16 %v6083_v2, %v6082_v49  ;;  %v6081_v19 = vld [vmem:[%s9400_s8 + $0x8] sm:$0xff] }
 0xfda   :  { %v8030_v26 = vpack.c.bf16 %v6081_v19, %v6080_v7 }
 0xfdb   :  { %7743 = vmatmul.mubr.msk.f32.vlgmr.msra.gmra.mrb[68].mxu0 %vm892_vm5, %v5752_v46  ;;  %7750 = vmatmul.mubr.msk.f32.vlgmr.msra.gmra.mrb[74].mxu1 %vm892_vm5, %v5752_v46 }
 0xfdc   :  { %8027 = vmatprep.subr.bf16.mxu0 %v8026_v38 }
 0xfdd   :  { %8029 = vmatpush3.bf16.msra.mxu0 %v8026_v38 }
 0xfde   :  { %8031 = vmatprep.subr.bf16.mxu0 %v8030_v26 }
0x10aa   :  { %v5821_v30 = vpop.f32.mrb[66].mxu0  ;;  %v5892_v36 = vpop.f32.mrb[72].mxu1 }
0x10ab   :  { %v5825_v51 = vadd.f32 %v5821_v30, %v8731_v37  ;;  %v5896_v40 = vadd.f32 %v5892_v36, %v8734_v39  ;;  %v7730_v41 = vpop.f32.mrb[67].mxu0  ;;  %v7737_v53 = vpop.f32.mrb[73].mxu1 }
0x10ad   :  { %v6944_v54 = vmul.f32 -1.442695, %v5825_v51  ;;  %v6945_v55 = vmul.f32 -1.442695, %v5896_v40 }
0x10ae   :  { %v5963_v57 = vpop.f32.mrb[68].mxu0  ;;  %v6034_v59 = vpop.f32.mrb[74].mxu1 }
0x10af   :  { %8284 = vpow2.f32 %v6944_v54  ;;  %v7744_v62 = vpop.f32.mrb[69].mxu0  ;;  %v7751_v63 = vpop.f32.mrb[75].mxu1  ;;  %v6038_v21 = vadd.f32 %v6034_v59, %v8756_v48  ;;  %v5967_v12 = vadd.f32 %v5963_v57, %v8751_v45 }
0x10b0   :  { %8286 = vpow2.f32 %v6945_v55 }
0x10b1   :  { %v6946_v1 = vmul.f32 -1.442695, %v6038_v21 }
0x10b3   :  { %8288 = vpow2.f32 %v6946_v1 }
0x10b4   :  { %8290 = vtanh.f32 %v5967_v12 }
0x10b9   :  { %v8285_v27 = vpop.eup %8284 }
0x10ba   :  { %v8287_v23 = vpop.eup %8286  ;;  %v6042_v37 = vadd.f32 1.0, %v8285_v27 }
0x10bb   :  { %v6048_v39 = vadd.f32 1.0, %v8287_v23 }
0x10bc   :  { %8292 = vrcp.f32 %v6042_v37 }
0x10bd   :  { %8294 = vrcp.f32 %v6048_v39  ;;  %v8289_v4 = vpop.eup %8288 }
0x10be   :  { %v8291_v5 = vpop.eup %8290  ;;  %v6055_v25 = vadd.f32 1.0, %v8289_v4 }
0x10c0   :  { %8296 = vrcp.f32 %v6055_v25 }
0x10c6   :  { %v8293_v18 = vpop.eup %8292 }
0x10c7   :  { %v8295_v9 = vpop.eup %8294  ;;  %v6062_v14 = vmul.f32 %v8293_v18, %v8291_v5 }
0x10c8   :  { %v6061_v3 = vmul.f32 %v8295_v9, %v6059_v20 }
0x10ca   :  { %v6063_v48 = vadd.f32 %v6062_v14, %v6061_v3  ;;  %v8297_v45 = vpop.eup %8296 }
0x10cc   :  { %8298 = vtanh.f32 %v6063_v48 }
0x10d6   :  { %v8299_v47 = vpop.eup %8298 }
0x10d7   :  { %v6065_v17 = vmul.f32 %v8299_v47, %v8297_v45 }
0x10d9   :  { %v6074_v32 = vsel %vm6066_vm7, %v6065_v17, %v5750_v43 }
0x10da   :  { %v6075_v22 = vsel %vm82_vm0, %v6074_v32, %v9207_v56  ;;  %v6952_v56 = vld [vmem:[%s9404_s12] ss:$0 sm:$0xff] }
0x10db   :  { %v6076_v44 = vsel %vm6069_vm8, %v6075_v22, %v9180_v0 }
0x10dc   :  { %7756 = vmatprep.mubr.msk.f32.mxu0 %vm892_vm5, %v6076_v44 }
0x10dd   :  { %7757 = vmatmul.mubr.msk.f32.vlgmr.msra.gmra.mrb[70].mxu0 %vm892_vm5, %v6079_v52 }
0x10de   :  { %8033 = vmatpush3.bf16.msra.mxu0 %v8030_v26  ;;  %7763 = vmatprep.mubr.msk.f32.mxu0 %vm892_vm5, %v8867_v50  ;;  %v6276_v50 = vsub.s32 1, %v6268_v6 }
0x10e5   :  { %7764 = vmatmul.mubr.msk.f32.vlgmr.msra.gmra.mrb[70].mxu0 %vm892_vm5, %v9066_v8 }
0x11b8   :  { %v7765_v24 = vpop.f32.mrb[70].mxu0 }
0x11b9   :  { %v9282_v0 = vadd.f32 %v7765_v24, %v6951_v58  ;;  %v6237_v11 = vpop.f32.mrb[71].mxu0 }
0x11ba   :  { %v9287_v34 = vadd.f32 %v6951_v58, %v6237_v11 }
0x11bb   :  { %6257 = vst.msk [vmem:[#allocation2 + $0x8] sm:$0xff] %vm6255_vm9, %v9282_v0 }
0x11bc   :  { %v6266_v8 = vadd.f32 %v6952_v56, %v9287_v34  ;;  %6256 = vst.msk [vmem:[#allocation2] sm:$0xff] %vm6255_vm9, %v9287_v34  ;;  %v6325_v48 = vrot.slane %v9287_v34, 3  ;;  %v6324_v33 = vrot.slane %v9287_v34, 2 }
0x11be   :  { %v6277_v35 = vrot.slane %v6266_v8, %v6276_v50  ;;  %v6270_v29 = vrot.slane %v6266_v8, %v9294_v16 }
0x11c0   :  { %6279 = vbcast.lane.b32.xlu1 %v6277_v35, 256 }
0x11c4   :  { %6272 = vbcast.lane.b32.xlu1 %v6270_v29, 256 }
0x1232   :  { %v6280_v31 = vpop.permute.xlu1 %6279 }
0x1233   :  { %v6282_v60 = vadd.f32 %v6280_v31, %v9300_v61 }
0x1235   :  { %v6290_v10 = vsel %vm6255_vm9, %v6282_v60, -inf }
0x1236   :  { %v6291_v13 = vrot.slane %v6290_v10, 4  ;;  %v6273_v28 = vpop.permute.xlu1 %6272 }
0x1237   :  { %v6281_v42 = vadd.f32 %v6273_v28, %v9300_v61 }
0x1238   :  { %v6292_v43 = vmax.f32 %v6290_v10, %v6291_v13 }
0x1239   :  { %v6283_v46 = vsel %vm6255_vm9, %v6281_v42, -inf }
0x123a   :  { %v6293_v49 = vrot.slane %v6292_v43, 2  ;;  %v6284_v2 = vrot.slane %v6283_v46, 4 }
0x123c   :  { %v6294_v38 = vmax.f32 %v6292_v43, %v6293_v49  ;;  %v6285_v7 = vmax.f32 %v6283_v46, %v6284_v2 }
0x123e   :  { %v6295_v19 = vrot.slane %v6294_v38, 1  ;;  %v6286_v26 = vrot.slane %v6285_v7, 2 }
0x1240   :  { %v6296_v30 = vmax.f32 %v6294_v38, %v6295_v19  ;;  %v6287_v36 = vmax.f32 %v6285_v7, %v6286_v26 }
0x1242   :  { %v6298_v51 = vsub.f32 %v6282_v60, %v6296_v30  ;;  %v6288_v40 = vrot.slane %v6287_v36, 1 }
0x1244   :  { %v6301_v41 = vmul.f32 1.442695, %v6298_v51  ;;  %v6289_v53 = vmax.f32 %v6287_v36, %v6288_v40 }
0x1246   :  { %8300 = vpow2.f32 %v6301_v41  ;;  %v6297_v54 = vsub.f32 %v6281_v42, %v6289_v53 }
0x1248   :  { %v6299_v55 = vmul.f32 1.442695, %v6297_v54 }
0x124a   :  { %8302 = vpow2.f32 %v6299_v55 }
0x1250   :  { %v8301_v57 = vpop.eup %8300 }
0x1251   :  { %v6310_v59 = vsel %vm6255_vm9, %v8301_v57, 0.0 }
0x1252   :  { %v6311_v62 = vrot.slane %v6310_v59, 4 }
0x1254   :  { %v8303_v63 = vpop.eup %8302  ;;  %v6312_v21 = vadd.f32 %v6311_v62, %v6310_v59 }
0x1255   :  { %v6303_v1 = vsel %vm6255_vm9, %v8303_v63, 0.0 }
0x1256   :  { %v6304_v12 = vrot.slane %v6303_v1, 4  ;;  %v6313_v27 = vrot.slane %v6312_v21, 2 }
0x1258   :  { %v6314_v23 = vadd.f32 %v6313_v27, %v6312_v21  ;;  %v6305_v37 = vadd.f32 %v6304_v12, %v6303_v1 }
0x125a   :  { %v6315_v39 = vrot.slane %v6314_v23, 1  ;;  %v6306_v4 = vrot.slane %v6305_v37, 2 }
0x125c   :  { %v6316_v5 = vadd.f32 %v6315_v39, %v6314_v23  ;;  %v6307_v18 = vadd.f32 %v6306_v4, %v6305_v37  ;;  %v6387_v37 = vrot.slane %v9287_v34, 5 }
0x125e   :  { %8304 = vlog2.f32 %v6316_v5  ;;  %v6308_v20 = vrot.slane %v6307_v18, 1 }
0x1260   :  { %v6309_v9 = vadd.f32 %v6308_v20, %v6307_v18 }
0x1262   :  { %8306 = vlog2.f32 %v6309_v9  ;;  %v6386_v9 = vrot.slane %v9287_v34, 4 }
0x1268   :  { %v8305_v14 = vpop.eup %8304 }
0x1269   :  { %v6320_v25 = vmul.f32 0.6931472, %v8305_v14 }
0x126b   :  { %v6322_v3 = vadd.f32 %v6320_v25, %v6296_v30 }
0x126c   :  { %v8307_v45 = vpop.eup %8306 }
0x126d   :  { %v6329_v47 = vadd.f32 %v6325_v48, %v6322_v3  ;;  %v6318_v15 = vmul.f32 0.6931472, %v8307_v45 }
0x126f   :  { %v6340_v17 = vrot.slane %v6329_v47, %v9294_v16  ;;  %v6321_v32 = vadd.f32 %v6318_v15, %v6289_v53 }
0x1271   :  { %6342 = vbcast.lane.b32.xlu0 %v6340_v17, 256  ;;  %v6328_v22 = vadd.f32 %v6324_v33, %v6321_v32 }
0x1273   :  { %v6333_v44 = vrot.slane %v6328_v22, %v9294_v16 }
0x1275   :  { %6335 = vbcast.lane.b32.xlu1 %v6333_v44, 256 }
0x12e3   :  { %v6343_v52 = vpop.permute.xlu0 %6342 }
0x12e4   :  { %v6345_v58 = vadd.f32 %v6343_v52, %v9300_v61 }
0x12e6   :  { %v6353_v6 = vsel %vm6255_vm9, %v6345_v58, -inf }
0x12e7   :  { %v6354_v24 = vrot.slane %v6353_v6, 4  ;;  %v6336_v11 = vpop.permute.xlu1 %6335 }
0x12e8   :  { %v6344_v56 = vadd.f32 %v6336_v11, %v9300_v61 }
0x12e9   :  { %v6355_v50 = vmax.f32 %v6353_v6, %v6354_v24 }
0x12ea   :  { %v6346_v8 = vsel %vm6255_vm9, %v6344_v56, -inf }
0x12eb   :  { %v6356_v35 = vrot.slane %v6355_v50, 2  ;;  %v6347_v29 = vrot.slane %v6346_v8, 4 }
0x12ed   :  { %v6357_v31 = vmax.f32 %v6355_v50, %v6356_v35  ;;  %v6348_v60 = vmax.f32 %v6346_v8, %v6347_v29 }
0x12ef   :  { %v6358_v10 = vrot.slane %v6357_v31, 1  ;;  %v6349_v13 = vrot.slane %v6348_v60, 2 }
0x12f1   :  { %v6359_v28 = vmax.f32 %v6357_v31, %v6358_v10  ;;  %v6350_v42 = vmax.f32 %v6348_v60, %v6349_v13 }
0x12f3   :  { %v6361_v43 = vsub.f32 %v6345_v58, %v6359_v28  ;;  %v6351_v46 = vrot.slane %v6350_v42, 1 }
0x12f5   :  { %v6364_v49 = vmul.f32 1.442695, %v6361_v43  ;;  %v6352_v2 = vmax.f32 %v6350_v42, %v6351_v46 }
0x12f7   :  { %8308 = vpow2.f32 %v6364_v49  ;;  %v6360_v38 = vsub.f32 %v6344_v56, %v6352_v2 }
0x12f9   :  { %v6362_v7 = vmul.f32 1.442695, %v6360_v38 }
0x12fb   :  { %8310 = vpow2.f32 %v6362_v7 }
0x1301   :  { %v8309_v19 = vpop.eup %8308 }
0x1302   :  { %v6373_v26 = vsel %vm6255_vm9, %v8309_v19, 0.0 }
0x1303   :  { %v6374_v30 = vrot.slane %v6373_v26, 4 }
0x1305   :  { %v8311_v36 = vpop.eup %8310  ;;  %v6375_v51 = vadd.f32 %v6374_v30, %v6373_v26 }
0x1306   :  { %v6366_v40 = vsel %vm6255_vm9, %v8311_v36, 0.0 }
0x1307   :  { %v6367_v41 = vrot.slane %v6366_v40, 4  ;;  %v6376_v53 = vrot.slane %v6375_v51, 2 }
0x1309   :  { %v6377_v54 = vadd.f32 %v6376_v53, %v6375_v51  ;;  %v6368_v55 = vadd.f32 %v6367_v41, %v6366_v40 }
0x130b   :  { %v6378_v57 = vrot.slane %v6377_v54, 1  ;;  %v6369_v59 = vrot.slane %v6368_v55, 2 }
0x130d   :  { %v6379_v62 = vadd.f32 %v6378_v57, %v6377_v54  ;;  %v6370_v63 = vadd.f32 %v6369_v59, %v6368_v55  ;;  %v6449_v55 = vrot.slane %v9287_v34, 7 }
0x130f   :  { %8312 = vlog2.f32 %v6379_v62  ;;  %v6371_v21 = vrot.slane %v6370_v63, 1 }
0x1311   :  { %v6372_v1 = vadd.f32 %v6371_v21, %v6370_v63 }
0x1313   :  { %8314 = vlog2.f32 %v6372_v1  ;;  %v6448_v1 = vrot.slane %v9287_v34, 6 }
0x1319   :  { %v8313_v12 = vpop.eup %8312 }
0x131a   :  { %v6383_v27 = vmul.f32 0.6931472, %v8313_v12 }
0x131c   :  { %v6385_v23 = vadd.f32 %v6383_v27, %v6359_v28 }
0x131d   :  { %v8315_v39 = vpop.eup %8314 }
0x131e   :  { %v6391_v4 = vadd.f32 %v6387_v37, %v6385_v23  ;;  %v6381_v5 = vmul.f32 0.6931472, %v8315_v39 }
0x1320   :  { %v6402_v18 = vrot.slane %v6391_v4, %v9294_v16  ;;  %v6384_v20 = vadd.f32 %v6381_v5, %v6352_v2 }
0x1322   :  { %6404 = vbcast.lane.b32.xlu0 %v6402_v18, 256  ;;  %v6390_v14 = vadd.f32 %v6386_v9, %v6384_v20 }
0x1324   :  { %v6395_v25 = vrot.slane %v6390_v14, %v9294_v16 }
0x1326   :  { %6397 = vbcast.lane.b32.xlu1 %v6395_v25, 256 }
0x1394   :  { %v6405_v3 = vpop.permute.xlu0 %6404 }
0x1395   :  { %v6407_v48 = vadd.f32 %v6405_v3, %v9300_v61 }
0x1397   :  { %v6415_v45 = vsel %vm6255_vm9, %v6407_v48, -inf }
0x1398   :  { %v6416_v47 = vrot.slane %v6415_v45, 4  ;;  %v6398_v15 = vpop.permute.xlu1 %6397 }
0x1399   :  { %v6406_v17 = vadd.f32 %v6398_v15, %v9300_v61 }
0x139a   :  { %v6417_v32 = vmax.f32 %v6415_v45, %v6416_v47 }
0x139b   :  { %v6408_v33 = vsel %vm6255_vm9, %v6406_v17, -inf }
0x139c   :  { %v6418_v22 = vrot.slane %v6417_v32, 2  ;;  %v6409_v44 = vrot.slane %v6408_v33, 4 }
0x139e   :  { %v6419_v52 = vmax.f32 %v6417_v32, %v6418_v22  ;;  %v6410_v58 = vmax.f32 %v6408_v33, %v6409_v44 }
0x13a0   :  { %v6420_v6 = vrot.slane %v6419_v52, 1  ;;  %v6411_v24 = vrot.slane %v6410_v58, 2 }
0x13a2   :  { %v6421_v11 = vmax.f32 %v6419_v52, %v6420_v6  ;;  %v6412_v56 = vmax.f32 %v6410_v58, %v6411_v24 }
0x13a4   :  { %v6423_v50 = vsub.f32 %v6407_v48, %v6421_v11  ;;  %v6413_v8 = vrot.slane %v6412_v56, 1 }
0x13a6   :  { %v6426_v35 = vmul.f32 1.442695, %v6423_v50  ;;  %v6414_v29 = vmax.f32 %v6412_v56, %v6413_v8 }
0x13a8   :  { %8316 = vpow2.f32 %v6426_v35  ;;  %v6422_v31 = vsub.f32 %v6406_v17, %v6414_v29 }
0x13aa   :  { %v6424_v60 = vmul.f32 1.442695, %v6422_v31 }
0x13ac   :  { %8318 = vpow2.f32 %v6424_v60 }
0x13b2   :  { %v8317_v10 = vpop.eup %8316 }
0x13b3   :  { %v6435_v13 = vsel %vm6255_vm9, %v8317_v10, 0.0 }
0x13b4   :  { %v6436_v28 = vrot.slane %v6435_v13, 4 }
0x13b6   :  { %v8319_v42 = vpop.eup %8318  ;;  %v6437_v43 = vadd.f32 %v6436_v28, %v6435_v13 }
0x13b7   :  { %v6428_v46 = vsel %vm6255_vm9, %v8319_v42, 0.0 }
0x13b8   :  { %v6429_v49 = vrot.slane %v6428_v46, 4  ;;  %v6438_v2 = vrot.slane %v6437_v43, 2 }
0x13ba   :  { %v6439_v38 = vadd.f32 %v6438_v2, %v6437_v43  ;;  %v6430_v7 = vadd.f32 %v6429_v49, %v6428_v46 }
0x13bc   :  { %v6440_v19 = vrot.slane %v6439_v38, 1  ;;  %v6431_v26 = vrot.slane %v6430_v7, 2 }
0x13be   :  { %v6441_v30 = vadd.f32 %v6440_v19, %v6439_v38  ;;  %v6432_v36 = vadd.f32 %v6431_v26, %v6430_v7  ;;  %v6511_v38 = vrot.slane %v9282_v0, 1 }
0x13c0   :  { %8320 = vlog2.f32 %v6441_v30  ;;  %v6433_v51 = vrot.slane %v6432_v36, 1 }
0x13c2   :  { %v6434_v40 = vadd.f32 %v6433_v51, %v6432_v36 }
0x13c4   :  { %8322 = vlog2.f32 %v6434_v40 }
0x13ca   :  { %v8321_v41 = vpop.eup %8320 }
0x13cb   :  { %v6445_v53 = vmul.f32 0.6931472, %v8321_v41 }
0x13cd   :  { %v6447_v54 = vadd.f32 %v6445_v53, %v6421_v11 }
0x13ce   :  { %v8323_v57 = vpop.eup %8322 }
0x13cf   :  { %v6453_v59 = vadd.f32 %v6449_v55, %v6447_v54  ;;  %v6443_v62 = vmul.f32 0.6931472, %v8323_v57 }
0x13d1   :  { %v6464_v63 = vrot.slane %v6453_v59, %v9294_v16  ;;  %v6446_v21 = vadd.f32 %v6443_v62, %v6414_v29 }
0x13d3   :  { %6466 = vbcast.lane.b32.xlu0 %v6464_v63, 256  ;;  %v6452_v12 = vadd.f32 %v6448_v1, %v6446_v21 }
0x13d5   :  { %v6457_v27 = vrot.slane %v6452_v12, %v9294_v16 }
0x13d7   :  { %6459 = vbcast.lane.b32.xlu1 %v6457_v27, 256 }
0x1445   :  { %v6467_v23 = vpop.permute.xlu0 %6466 }
0x1446   :  { %v6469_v37 = vadd.f32 %v6467_v23, %v9300_v61 }
0x1448   :  { %v6477_v39 = vsel %vm6255_vm9, %v6469_v37, -inf }
0x1449   :  { %v6478_v4 = vrot.slane %v6477_v39, 4  ;;  %v6460_v5 = vpop.permute.xlu1 %6459 }
0x144a   :  { %v6468_v18 = vadd.f32 %v6460_v5, %v9300_v61 }
0x144b   :  { %v6479_v20 = vmax.f32 %v6477_v39, %v6478_v4 }
0x144c   :  { %v6470_v9 = vsel %vm6255_vm9, %v6468_v18, -inf }
0x144d   :  { %v6480_v14 = vrot.slane %v6479_v20, 2  ;;  %v6471_v25 = vrot.slane %v6470_v9, 4 }
0x144f   :  { %v6481_v34 = vmax.f32 %v6479_v20, %v6480_v14  ;;  %v6472_v3 = vmax.f32 %v6470_v9, %v6471_v25 }
0x1451   :  { %v6482_v48 = vrot.slane %v6481_v34, 1  ;;  %v6473_v45 = vrot.slane %v6472_v3, 2 }
0x1453   :  { %v6483_v47 = vmax.f32 %v6481_v34, %v6482_v48  ;;  %v6474_v15 = vmax.f32 %v6472_v3, %v6473_v45 }
0x1455   :  { %v6485_v17 = vsub.f32 %v6469_v37, %v6483_v47  ;;  %v6475_v32 = vrot.slane %v6474_v15, 1 }
0x1457   :  { %v6488_v33 = vmul.f32 1.442695, %v6485_v17  ;;  %v6476_v22 = vmax.f32 %v6474_v15, %v6475_v32 }
0x1459   :  { %8324 = vpow2.f32 %v6488_v33  ;;  %v6484_v44 = vsub.f32 %v6468_v18, %v6476_v22 }
0x145b   :  { %v6486_v52 = vmul.f32 1.442695, %v6484_v44 }
0x145d   :  { %8326 = vpow2.f32 %v6486_v52 }
0x1463   :  { %v8325_v58 = vpop.eup %8324 }
0x1464   :  { %v6497_v6 = vsel %vm6255_vm9, %v8325_v58, 0.0 }
0x1465   :  { %v6498_v24 = vrot.slane %v6497_v6, 4 }
0x1467   :  { %v8327_v11 = vpop.eup %8326  ;;  %v6499_v56 = vadd.f32 %v6498_v24, %v6497_v6 }
0x1468   :  { %v6490_v50 = vsel %vm6255_vm9, %v8327_v11, 0.0 }
0x1469   :  { %v6491_v8 = vrot.slane %v6490_v50, 4  ;;  %v6500_v35 = vrot.slane %v6499_v56, 2 }
0x146b   :  { %v6501_v29 = vadd.f32 %v6500_v35, %v6499_v56  ;;  %v6492_v31 = vadd.f32 %v6491_v8, %v6490_v50  ;;  %v6573_v35 = vrot.slane %v9282_v0, 3 }
0x146d   :  { %v6502_v60 = vrot.slane %v6501_v29, 1  ;;  %v6493_v10 = vrot.slane %v6492_v31, 2 }
0x146f   :  { %v6503_v13 = vadd.f32 %v6502_v60, %v6501_v29  ;;  %v6494_v28 = vadd.f32 %v6493_v10, %v6492_v31 }
0x1471   :  { %8328 = vlog2.f32 %v6503_v13  ;;  %v6495_v42 = vrot.slane %v6494_v28, 1 }
0x1473   :  { %v6496_v43 = vadd.f32 %v6495_v42, %v6494_v28  ;;  %v6572_v28 = vrot.slane %v9282_v0, 2 }
0x1475   :  { %8330 = vlog2.f32 %v6496_v43 }
0x147b   :  { %v8329_v46 = vpop.eup %8328 }
0x147c   :  { %v6507_v49 = vmul.f32 0.6931472, %v8329_v46 }
0x147e   :  { %v6509_v2 = vadd.f32 %v6507_v49, %v6483_v47 }
0x147f   :  { %v8331_v7 = vpop.eup %8330 }
0x1480   :  { %v6515_v19 = vadd.f32 %v6511_v38, %v6509_v2  ;;  %v6505_v26 = vmul.f32 0.6931472, %v8331_v7 }
0x1482   :  { %v6526_v30 = vrot.slane %v6515_v19, %v9294_v16  ;;  %v6508_v36 = vadd.f32 %v6505_v26, %v6476_v22 }
0x1484   :  { %6528 = vbcast.lane.b32.xlu0 %v6526_v30, 256  ;;  %v6514_v51 = vadd.f32 %v6508_v36, %v9282_v0 }
0x1486   :  { %v6519_v40 = vrot.slane %v6514_v51, %v9294_v16 }
0x1488   :  { %6521 = vbcast.lane.b32.xlu1 %v6519_v40, 256 }
0x14f6   :  { %v6529_v41 = vpop.permute.xlu0 %6528 }
0x14f7   :  { %v6531_v53 = vadd.f32 %v6529_v41, %v9300_v61 }
0x14f9   :  { %v6539_v54 = vsel %vm6255_vm9, %v6531_v53, -inf }
0x14fa   :  { %v6540_v55 = vrot.slane %v6539_v54, 4  ;;  %v6522_v57 = vpop.permute.xlu1 %6521 }
0x14fb   :  { %v6530_v59 = vadd.f32 %v6522_v57, %v9300_v61 }
0x14fc   :  { %v6541_v62 = vmax.f32 %v6539_v54, %v6540_v55 }
0x14fd   :  { %v6532_v63 = vsel %vm6255_vm9, %v6530_v59, -inf }
0x14fe   :  { %v6542_v21 = vrot.slane %v6541_v62, 2  ;;  %v6533_v1 = vrot.slane %v6532_v63, 4 }
0x1500   :  { %v6543_v12 = vmax.f32 %v6541_v62, %v6542_v21  ;;  %v6534_v27 = vmax.f32 %v6532_v63, %v6533_v1 }
0x1502   :  { %v6544_v23 = vrot.slane %v6543_v12, 1  ;;  %v6535_v37 = vrot.slane %v6534_v27, 2 }
0x1504   :  { %v6545_v39 = vmax.f32 %v6543_v12, %v6544_v23  ;;  %v6536_v4 = vmax.f32 %v6534_v27, %v6535_v37 }
0x1506   :  { %v6547_v5 = vsub.f32 %v6531_v53, %v6545_v39  ;;  %v6537_v18 = vrot.slane %v6536_v4, 1 }
0x1508   :  { %v6550_v20 = vmul.f32 1.442695, %v6547_v5  ;;  %v6538_v9 = vmax.f32 %v6536_v4, %v6537_v18 }
0x150a   :  { %8332 = vpow2.f32 %v6550_v20  ;;  %v6546_v14 = vsub.f32 %v6530_v59, %v6538_v9 }
0x150c   :  { %v6548_v25 = vmul.f32 1.442695, %v6546_v14 }
0x150e   :  { %8334 = vpow2.f32 %v6548_v25 }
0x1514   :  { %v8333_v34 = vpop.eup %8332 }
0x1515   :  { %v6559_v3 = vsel %vm6255_vm9, %v8333_v34, 0.0 }
0x1516   :  { %v6560_v48 = vrot.slane %v6559_v3, 4 }
0x1518   :  { %v8335_v45 = vpop.eup %8334  ;;  %v6561_v47 = vadd.f32 %v6560_v48, %v6559_v3 }
0x1519   :  { %v6552_v15 = vsel %vm6255_vm9, %v8335_v45, 0.0 }
0x151a   :  { %v6553_v17 = vrot.slane %v6552_v15, 4  ;;  %v6562_v32 = vrot.slane %v6561_v47, 2 }
0x151c   :  { %v6563_v33 = vadd.f32 %v6562_v32, %v6561_v47  ;;  %v6554_v22 = vadd.f32 %v6553_v17, %v6552_v15 }
0x151e   :  { %v6564_v44 = vrot.slane %v6563_v33, 1  ;;  %v6555_v52 = vrot.slane %v6554_v22, 2 }
0x1520   :  { %v6565_v58 = vadd.f32 %v6564_v44, %v6563_v33  ;;  %v6556_v6 = vadd.f32 %v6555_v52, %v6554_v22  ;;  %v6635_v33 = vrot.slane %v9282_v0, 5 }
0x1522   :  { %8336 = vlog2.f32 %v6565_v58  ;;  %v6557_v24 = vrot.slane %v6556_v6, 1 }
0x1524   :  { %v6558_v11 = vadd.f32 %v6557_v24, %v6556_v6  ;;  %v6634_v24 = vrot.slane %v9282_v0, 4 }
0x1526   :  { %8338 = vlog2.f32 %v6558_v11 }
0x152c   :  { %v8337_v56 = vpop.eup %8336 }
0x152d   :  { %v6569_v50 = vmul.f32 0.6931472, %v8337_v56 }
0x152f   :  { %v6571_v8 = vadd.f32 %v6569_v50, %v6545_v39 }
0x1530   :  { %v8339_v29 = vpop.eup %8338 }
0x1531   :  { %v6577_v31 = vadd.f32 %v6573_v35, %v6571_v8  ;;  %v6567_v60 = vmul.f32 0.6931472, %v8339_v29 }
0x1533   :  { %v6588_v10 = vrot.slane %v6577_v31, %v9294_v16  ;;  %v6570_v13 = vadd.f32 %v6567_v60, %v6538_v9 }
0x1535   :  { %6590 = vbcast.lane.b32.xlu0 %v6588_v10, 256  ;;  %v6576_v42 = vadd.f32 %v6572_v28, %v6570_v13 }
0x1537   :  { %v6581_v43 = vrot.slane %v6576_v42, %v9294_v16 }
0x1539   :  { %6583 = vbcast.lane.b32.xlu1 %v6581_v43, 256 }
0x15a7   :  { %v6591_v46 = vpop.permute.xlu0 %6590 }
0x15a8   :  { %v6593_v49 = vadd.f32 %v6591_v46, %v9300_v61 }
0x15aa   :  { %v6601_v2 = vsel %vm6255_vm9, %v6593_v49, -inf }
0x15ab   :  { %v6602_v38 = vrot.slane %v6601_v2, 4  ;;  %v6584_v7 = vpop.permute.xlu1 %6583 }
0x15ac   :  { %v6592_v19 = vadd.f32 %v6584_v7, %v9300_v61 }
0x15ad   :  { %v6603_v26 = vmax.f32 %v6601_v2, %v6602_v38 }
0x15ae   :  { %v6594_v30 = vsel %vm6255_vm9, %v6592_v19, -inf }
0x15af   :  { %v6604_v36 = vrot.slane %v6603_v26, 2  ;;  %v6595_v51 = vrot.slane %v6594_v30, 4 }
0x15b1   :  { %v6605_v40 = vmax.f32 %v6603_v26, %v6604_v36  ;;  %v6596_v41 = vmax.f32 %v6594_v30, %v6595_v51 }
0x15b3   :  { %v6606_v53 = vrot.slane %v6605_v40, 1  ;;  %v6597_v54 = vrot.slane %v6596_v41, 2 }
0x15b5   :  { %v6607_v55 = vmax.f32 %v6605_v40, %v6606_v53  ;;  %v6598_v57 = vmax.f32 %v6596_v41, %v6597_v54 }
0x15b7   :  { %v6609_v59 = vsub.f32 %v6593_v49, %v6607_v55  ;;  %v6599_v62 = vrot.slane %v6598_v57, 1 }
0x15b9   :  { %v6612_v63 = vmul.f32 1.442695, %v6609_v59  ;;  %v6600_v21 = vmax.f32 %v6598_v57, %v6599_v62 }
0x15bb   :  { %8340 = vpow2.f32 %v6612_v63  ;;  %v6608_v1 = vsub.f32 %v6592_v19, %v6600_v21 }
0x15bd   :  { %v6610_v12 = vmul.f32 1.442695, %v6608_v1 }
0x15bf   :  { %8342 = vpow2.f32 %v6610_v12 }
0x15c5   :  { %v8341_v27 = vpop.eup %8340 }
0x15c6   :  { %v6621_v23 = vsel %vm6255_vm9, %v8341_v27, 0.0 }
0x15c7   :  { %v6622_v37 = vrot.slane %v6621_v23, 4 }
0x15c9   :  { %v8343_v39 = vpop.eup %8342  ;;  %v6623_v4 = vadd.f32 %v6622_v37, %v6621_v23 }
0x15ca   :  { %v6614_v5 = vsel %vm6255_vm9, %v8343_v39, 0.0 }
0x15cb   :  { %v6615_v18 = vrot.slane %v6614_v5, 4  ;;  %v6624_v20 = vrot.slane %v6623_v4, 2 }
0x15cd   :  { %v6625_v9 = vadd.f32 %v6624_v20, %v6623_v4  ;;  %v6616_v14 = vadd.f32 %v6615_v18, %v6614_v5  ;;  %v6697_v5 = vrot.slane %v9282_v0, 7 }
0x15cf   :  { %v6626_v25 = vrot.slane %v6625_v9, 1  ;;  %v6617_v34 = vrot.slane %v6616_v14, 2 }
0x15d1   :  { %v6627_v3 = vadd.f32 %v6626_v25, %v6625_v9  ;;  %v6618_v48 = vadd.f32 %v6617_v34, %v6616_v14  ;;  %v6953_v9 = vld [vmem:[%s9405_s13] ss:$0 sm:$0xff]  ;;  %s8390_s13 = smov [#allocation2]  }
0x15d2   :  { %s6749_s3 = sshll.u32 %s8390_s13, 4  ;;  %s6750_s3 = int_to_ptr.vmem [resolvable:$true] %s6749_s3 }
0x15d3   :  { %8344 = vlog2.f32 %v6627_v3  ;;  %v6619_v45 = vrot.slane %v6618_v48, 1  ;;  %v6696_v3 = vrot.slane %v9282_v0, 6  ;;  %s8362_s18 = scalar_lea.vmem %s6750_s3, 256  ;;  %p8367_p1 = scmp.lt.s32.totalorder %s6750_s3, %s6750_s3 }
0x15d4   :  { %p8363_p0 = scmp.ne.s32.totalorder %s6750_s3, %s8362_s18  ;;  %p8368_p2 = scmp.lt.s32.totalorder %s8362_s18, %s8362_s18 }
0x15d5   :  { %v6620_v47 = vadd.f32 %v6619_v45, %v6618_v48 }
0x15d6   :  { %p8369_p3 = por %p8368_p2, %p8367_p1 }
0x15d7   :  { %8346 = vlog2.f32 %v6620_v47 }
0x15d8   :  { %p8370_p4 = pnand %p8369_p3, %p8363_p0 }
0x15dd   :  { %v8345_v15 = vpop.eup %8344 }
0x15de   :  { %v6631_v17 = vmul.f32 0.6931472, %v8345_v15 }
0x15e0   :  { %v6633_v32 = vadd.f32 %v6631_v17, %v6607_v55 }
0x15e1   :  { %v8347_v22 = vpop.eup %8346 }
0x15e2   :  { %v6639_v44 = vadd.f32 %v6635_v33, %v6633_v32  ;;  %v6629_v52 = vmul.f32 0.6931472, %v8347_v22 }
0x15e4   :  { %v6650_v58 = vrot.slane %v6639_v44, %v9294_v16  ;;  %v6632_v6 = vadd.f32 %v6629_v52, %v6600_v21 }
0x15e6   :  { %6652 = vbcast.lane.b32.xlu0 %v6650_v58, 256  ;;  %v6638_v11 = vadd.f32 %v6634_v24, %v6632_v6 }
0x15e8   :  { %v6643_v56 = vrot.slane %v6638_v11, %v9294_v16 }
0x15ea   :  { %6645 = vbcast.lane.b32.xlu1 %v6643_v56, 256 }
0x1658   :  { %v6653_v50 = vpop.permute.xlu0 %6652 }
0x1659   :  { %v6655_v8 = vadd.f32 %v6653_v50, %v9300_v61 }
0x165b   :  { %v6663_v35 = vsel %vm6255_vm9, %v6655_v8, -inf }
0x165c   :  { %v6664_v29 = vrot.slane %v6663_v35, 4  ;;  %v6646_v31 = vpop.permute.xlu1 %6645 }
0x165d   :  { %v6654_v60 = vadd.f32 %v6646_v31, %v9300_v61 }
0x165e   :  { %v6665_v10 = vmax.f32 %v6663_v35, %v6664_v29 }
0x165f   :  { %v6656_v13 = vsel %vm6255_vm9, %v6654_v60, -inf }
0x1660   :  { %v6666_v28 = vrot.slane %v6665_v10, 2  ;;  %v6657_v42 = vrot.slane %v6656_v13, 4 }
0x1662   :  { %v6667_v43 = vmax.f32 %v6665_v10, %v6666_v28  ;;  %v6658_v46 = vmax.f32 %v6656_v13, %v6657_v42 }
0x1664   :  { %v6668_v49 = vrot.slane %v6667_v43, 1  ;;  %v6659_v2 = vrot.slane %v6658_v46, 2 }
0x1666   :  { %v6669_v16 = vmax.f32 %v6667_v43, %v6668_v49  ;;  %v6660_v38 = vmax.f32 %v6658_v46, %v6659_v2 }
0x1668   :  { %v6671_v7 = vsub.f32 %v6655_v8, %v6669_v16  ;;  %v6661_v19 = vrot.slane %v6660_v38, 1 }
0x166a   :  { %v6674_v26 = vmul.f32 1.442695, %v6671_v7  ;;  %v6662_v30 = vmax.f32 %v6660_v38, %v6661_v19 }
0x166c   :  { %8348 = vpow2.f32 %v6674_v26  ;;  %v6670_v36 = vsub.f32 %v6654_v60, %v6662_v30 }
0x166e   :  { %v6672_v51 = vmul.f32 1.442695, %v6670_v36 }
0x1670   :  { %8350 = vpow2.f32 %v6672_v51 }
0x1676   :  { %v8349_v61 = vpop.eup %8348 }
0x1677   :  { %v6683_v40 = vsel %vm6255_vm9, %v8349_v61, 0.0 }
0x1678   :  { %v6684_v41 = vrot.slane %v6683_v40, 4 }
0x167a   :  { %v8351_v53 = vpop.eup %8350  ;;  %v6685_v54 = vadd.f32 %v6684_v41, %v6683_v40 }
0x167b   :  { %v6676_v55 = vsel %vm6255_vm9, %v8351_v53, 0.0 }
0x167c   :  { %v6686_v57 = vrot.slane %v6685_v54, 2  ;;  %v6677_v59 = vrot.slane %v6676_v55, 4 }
0x167e   :  { %v6687_v62 = vadd.f32 %v6686_v57, %v6685_v54  ;;  %v6678_v63 = vadd.f32 %v6677_v59, %v6676_v55 }
0x1680   :  { %v6688_v21 = vrot.slane %v6687_v62, 1  ;;  %v6679_v1 = vrot.slane %v6678_v63, 2 }
0x1682   :  { %v6689_v12 = vadd.f32 %v6688_v21, %v6687_v62  ;;  %v6680_v27 = vadd.f32 %v6679_v1, %v6678_v63 }
0x1684   :  { %8352 = vlog2.f32 %v6689_v12  ;;  %v6681_v23 = vrot.slane %v6680_v27, 1 }
0x1686   :  { %v6682_v37 = vadd.f32 %v6681_v23, %v6680_v27 }
0x1688   :  { %8354 = vlog2.f32 %v6682_v37 }
0x168e   :  { %v8353_v39 = vpop.eup %8352 }
0x168f   :  { %v6693_v4 = vmul.f32 0.6931472, %v8353_v39 }
0x1691   :  { %v6695_v18 = vadd.f32 %v6693_v4, %v6669_v16 }
0x1692   :  { %v8355_v20 = vpop.eup %8354 }
0x1693   :  { %v6701_v14 = vadd.f32 %v6697_v5, %v6695_v18  ;;  %v6691_v25 = vmul.f32 0.6931472, %v8355_v20 }
0x1695   :  { %v6694_v34 = vadd.f32 %v6691_v25, %v6662_v30  ;;  %v6710_v48 = vadd.f32 %v6953_v9, %v6701_v14 }
0x1697   :  { %v6700_v45 = vadd.f32 %v6696_v3, %v6694_v34  ;;  %v6713_v15 = vrot.slane %v6710_v48, 7 }
0x1699   :  { %v6709_v47 = vadd.f32 %v6953_v9, %v6700_v45 }
0x169b   :  { %v6715_v17 = vsel %vm6714_vm10, %v6713_v15, %v6709_v47 }
0x169c   :  { %v6718_v32 = vsel %vm6717_vm11, %v6715_v17, -inf }
0x169d   :  { %6719 = vmax.xlane.f32.xlu0 %v6718_v32 }
0x172a   :  { %v6720_v33 = vpop.xlane.xlu0 %6719 }
0x172b   :  { %v6722_v22 = vrot.slane %v6720_v33, 1  ;;  %v6725_v44 = vsub.f32 %v6709_v47, %v6720_v33 }
0x172d   :  { %v6726_v52 = vsub.f32 %v6710_v48, %v6722_v22  ;;  %v6727_v58 = vmul.f32 1.442695, %v6725_v44 }
0x172f   :  { %v6729_v6 = vmul.f32 1.442695, %v6726_v52 }
0x1731   :  { %8356 = vpow2.f32 %v6729_v6 }
0x1732   :  { %8358 = vpow2.f32 %v6727_v58 }
0x173b   :  { %v8357_v0 = vpop.eup %8356 }
0x173c   :  { %v6733_v24 = vrot.slane %v8357_v0, 7  ;;  %v8359_v11 = vpop.eup %8358 }
0x173e   :  { %v6734_v56 = vsel %vm6714_vm10, %v6733_v24, %v8359_v11 }
0x173f   :  { %v6736_v50 = vsel %vm6717_vm11, %v6734_v56, 0.0 }
0x1740   :  { %6737 = vadd.xlane.f32.xlu1 %v6736_v50 }
0x1741   :  { %8373 = shalt.err (!%p8370_p4)
}
0x1742   :  { %s8374_s5 = scalar_lea.hbm %s9408_s16, 256 }
0x1743   :  { %p8375_p5 = scmp.ne.s32.totalorder %s9408_s16, %s8374_s5  ;;  %p8378_p6 = scmp.lt.u32.totalorder %s8374_s5, %s9408_s16 }
0x1745   :  { %p8380_p7 = pnand %p8378_p6, %p8375_p5 }
0x1747   :  { %8383 = shalt.err (!%p8380_p7)
}
0x1748   :  { %s8391_s24 = smov 128   ;;  %s8392_s25 = smov 8   ;;  %vm6742_vm12 = vcmask 1024  }
0x1749   :  { %6755 = dma.vmem_to_hbm [thread:$0]  %s6750_s3, 256, %s9408_s16, [#allocation3], %s8391_s24, %s8391_s24, %s8392_s25  }
0x17cd   :  { %v6738_v8 = vpop.xlane.xlu1 %6737 }
0x17ce   :  { %8360 = vlog2.f32 %v6738_v8 }
0x17d8   :  { %v8361_v35 = vpop.eup %8360 }
0x17d9   :  { %v6740_v29 = vmul.f32 0.6931472, %v8361_v35 }
0x17db   :  { %v6741_v31 = vadd.f32 %v6740_v29, %v6720_v33 }
0x17dd   :  { %6743 = vst.msk [vmem:[%s9409_s17] sm:$0x3] %vm6742_vm12, %v6741_v31 }
0x17de   :  { %8384 = dma.done.wait [#allocation3], 256  }
0x17df   :  { %8385 = vsyncadd [#allocation3], 4294967040 }
0x17e0   :  { %6763 = vsyncpa [#allocation3], 1 }

</bundles_post_ra>
